<compile_context>
chip_gen: v5e
topology: v5e:2x2
jax: 0.10.0
libtpu: 0.0.40
codegen_flags: <defaults>
</compile_context>

<pallas_src>
import jax
import jax.numpy as jnp
from jax import lax
from jax.experimental import pallas as pl
from jax.experimental.pallas import tpu as pltpu

BN_EPS = 1e-5


def _make_cga_kernel(n_heads: int, head_w: int):
    def kernel(inv_gs_ref, x_ref, w_ref, scale_ref, bias_ref, h_ref, s_ref):
        Bt, P, C = x_ref.shape
        H, W = n_heads, head_w

        # Fused qkv Linear over the whole batch block (no bias):
        #   y[bp, o] = sum_c x[bp, c] * w[o, c]
        x2 = x_ref[...].reshape(Bt * P, C).astype(jnp.bfloat16)
        wb = w_ref[...].astype(jnp.bfloat16)
        y = lax.dot_general(x2, wb, (((1,), (1,)), ((), ())),
                            preferred_element_type=jnp.float32)    # (Bt*P, C)

        # Folded inference BatchNorm1d over the channel axis C.
        y = y * scale_ref[...] + bias_ref[...]

        # Split heads: p = hh*W + w  ->  (Bt*H, W, C);  q == k == v == y3.
        y3 = y.reshape(Bt * H, W, C).astype(jnp.bfloat16)

        # Raw scores: s[bh, c1, c2] = sum_w y3[bh, w, c1] * y3[bh, w, c2] / gs
        raw = jnp.einsum('bwc,bwd->bcd', y3, y3,
                         preferred_element_type=jnp.float32)       # (Bt*H, C, C)
        raw = raw.reshape(Bt, H, C, C) * inv_gs_ref[0]

        # softmax over the HEAD axis (torch: F.softmax(scores, dim=1)).
        m = jnp.max(raw, axis=1, keepdims=True)
        e = jnp.exp(raw - m)
        denom = jnp.sum(e, axis=1, keepdims=True)
        attn = e * pl.reciprocal(denom, approx=True)               # (Bt, H, C, C)

        # Lane-dense scores: (Bt, C, H*C) -> one unmasked full-block store.
        s_ref[...] = jnp.concatenate([attn[:, hh] for hh in range(H)], axis=-1)

        # h[bh, w, c1] = sum_c2 attn[bh, c1, c2] * v[bh, c2, w],  with v == y3.
        attn3 = attn.reshape(Bt * H, C, C).astype(jnp.bfloat16)
        out = jnp.einsum('bwd,bcd->bwc', y3, attn3,
                         preferred_element_type=jnp.float32)       # (Bt*H, W, C)
        h_ref[...] = out.reshape(Bt, P, C).astype(h_ref.dtype)

        # TODO(synk): nn.Dropout is identity here (eval mode / p=0).
    return kernel


def channel_group_attention(x, w, gamma, beta, run_mean, run_var,
                            gra_sharp, n_heads, block_b=8):
    """x: (B, P, C) float32.  Returns (h: (B, P, C), scores: (B, H, C, C))."""
    B, P, C = x.shape
    assert P % n_heads == 0, "seq len must be divisible by num_heads"
    head_w = P // n_heads

    # Batch block size: largest value <= block_b that divides B.
    bb = min(block_b, B)
    while B % bb:
        bb -= 1

    # Fold BatchNorm (inference) into a single scale/bias pair.
    inv_std = 1.0 / jnp.sqrt(run_var.astype(jnp.float32) + BN_EPS)
    scale = (gamma * inv_std).reshape(1, C).astype(jnp.float32)
    bias = (beta - run_mean * gamma * inv_std).reshape(1, C).astype(jnp.float32)
    inv_gs = jnp.asarray([1.0 / gra_sharp], dtype=jnp.float32)

    kernel = _make_cga_kernel(n_heads, head_w)

    out_shape = (
        jax.ShapeDtypeStruct((B, P, C), jnp.float32),
        jax.ShapeDtypeStruct((B, C, n_heads * C), jnp.float32),    # lane-dense
    )
    in_specs = [
        pl.BlockSpec(memory_space=pltpu.MemorySpace.SMEM),         # 1/gra_sharp
        pl.BlockSpec((bb, P, C), lambda b: (b, 0, 0)),             # x
        pl.BlockSpec((C, C), lambda b: (0, 0)),                    # qkv weight
        pl.BlockSpec((1, C), lambda b: (0, 0)),                    # folded BN scale
        pl.BlockSpec((1, C), lambda b: (0, 0)),                    # folded BN bias
    ]
    out_specs = (
        pl.BlockSpec((bb, P, C), lambda b: (b, 0, 0)),             # h
        pl.BlockSpec((bb, C, n_heads * C), lambda b: (b, 0, 0)),   # scores (lane-dense)
    )
    h, s_lane = pl.pallas_call(
        kernel,
        out_shape=out_shape,
        grid=(B // bb,),
        in_specs=in_specs,
        out_specs=out_specs,
        compiler_params=pltpu.CompilerParams(
            dimension_semantics=("parallel",)),
    )(inv_gs, x, w, scale, bias)

    # Un-interleave lane-dense scores back to the module's (B, H, C, C) layout.
    scores = jnp.transpose(s_lane.reshape(B, C, n_heads, C), (0, 2, 1, 3))
    return h, scores


def reference(x, w, gamma, beta, run_mean, run_var, gra_sharp, n_heads):
    """Pure-JAX (f32, HIGHEST precision) mirror of the PyTorch forward (eval)."""
    B, P, C = x.shape
    head_w = P // n_heads
    hi = jax.lax.Precision.HIGHEST
    y = jnp.einsum('bpc,oc->bpo', x, w, precision=hi)              # Linear
    yt = jnp.transpose(y, (0, 2, 1))                               # (B, C, P)
    yb = ((yt - run_mean[None, :, None])
          / jnp.sqrt(run_var[None, :, None] + BN_EPS)
          * gamma[None, :, None] + beta[None, :, None])
    q = jnp.transpose(yb.reshape(B, C, n_heads, head_w), (0, 2, 1, 3))  # (B,H,C,W)
    k = q
    v = q
    scores = jnp.einsum('bhcw,bhdw->bhcd', q, k, precision=hi) / gra_sharp
    scores = jax.nn.softmax(scores, axis=1)                        # softmax over H!
    h = jnp.einsum('bhcd,bhdw->bhcw', scores, v, precision=hi)
    h = jnp.transpose(h, (0, 2, 1, 3)).reshape(B, C, P)            # merge_last
    h = jnp.transpose(h, (0, 2, 1))                                # (B, P, C)
    return h, scores


if __name__ == "__main__":
    B, P, C = 16, 32, 32       # batch, seq(patches), dim
    n_heads = 4                # head width W = P // n_heads = 8
    gra_sharp = 2.0

    key = jax.random.PRNGKey(0)
    kx, kw, kg, kb, km, kv = jax.random.split(key, 6)
    x = jax.random.normal(kx, (B, P, C), jnp.float32)
    w = jax.random.normal(kw, (C, C), jnp.float32) / jnp.sqrt(C)   # Linear weight
    gamma = 1.0 + 0.1 * jax.random.normal(kg, (C,), jnp.float32)   # BN affine
    beta = 0.1 * jax.random.normal(kb, (C,), jnp.float32)
    run_mean = 0.1 * jax.random.normal(km, (C,), jnp.float32)      # BN running stats
    run_var = 1.0 + 0.1 * jax.random.uniform(kv, (C,), jnp.float32)

    h_out, s_out = channel_group_attention(
        x, w, gamma, beta, run_mean, run_var, gra_sharp, n_heads, block_b=8)
    jax.block_until_ready((h_out, s_out))

    h_ref, s_ref = reference(
        x, w, gamma, beta, run_mean, run_var, gra_sharp, n_heads)

    assert h_out.shape == (B, P, C)
    assert s_out.shape == (B, n_heads, C, C)

    def rel_err(a, b):
        return float(jnp.sqrt(jnp.sum((a - b) ** 2) / (jnp.sum(b ** 2) + 1e-12)))

    # bf16 matmul operands (f32 accumulation) + approx reciprocal: compare with
    # a relative-L2 criterion that is robust to single-element low-precision tails.
    eh, es = rel_err(h_out, h_ref), rel_err(s_out, s_ref)
    assert eh < 5e-2, f"h relative L2 error too large: {eh}"
    assert es < 5e-2, f"scores relative L2 error too large: {es}"
    print("KERNEL_OK")
</pallas_src>

<mosaic_0001>
module attributes {stable_mosaic.version = 11 : i64} {
  func.func @kernel(%arg0: i32, %arg1: memref<1xf32, #tpu.memory_space<smem>>, %arg2: memref<8x32x32xf32, #tpu.memory_space<vmem>>, %arg3: memref<32x32xf32, #tpu.memory_space<vmem>>, %arg4: memref<1x32xf32, #tpu.memory_space<vmem>>, %arg5: memref<1x32xf32, #tpu.memory_space<vmem>>, %arg6: memref<8x32x32xf32, #tpu.memory_space<vmem>>, %arg7: memref<8x32x128xf32, #tpu.memory_space<vmem>>) attributes {dimension_semantics = [#tpu.dimension_semantics<parallel>], iteration_bounds = array<i64: 2>, scalar_prefetch = 0 : i64, scratch_operands = 0 : i64, tpu.core_type = #tpu.core_type<tc>, window_params = [{transform_indices = @transform_0, window_bounds = array<i64: 1>}, {transform_indices = @transform_1, window_bounds = array<i64: 8, 32, 32>}, {pipeline_mode = #tpu.pipeline_mode<synchronous>, transform_indices = @transform_2, window_bounds = array<i64: 32, 32>}, {pipeline_mode = #tpu.pipeline_mode<synchronous>, transform_indices = @transform_3, window_bounds = array<i64: 1, 32>}, {pipeline_mode = #tpu.pipeline_mode<synchronous>, transform_indices = @transform_4, window_bounds = array<i64: 1, 32>}, {transform_indices = @transform_5, window_bounds = array<i64: 8, 32, 32>}, {transform_indices = @transform_6, window_bounds = array<i64: 8, 32, 128>}]} {
    %c0 = arith.constant 0 : index
    %c0_0 = arith.constant 0 : index
    %c0_1 = arith.constant 0 : index
    %0 = vector.load %arg2[%c0, %c0_0, %c0_1] : memref<8x32x32xf32, #tpu.memory_space<vmem>>, vector<8x32x32xf32>
    %1 = vector.shape_cast %0 : vector<8x32x32xf32> to vector<256x32xf32>
    %2 = arith.truncf %1 : vector<256x32xf32> to vector<256x32xbf16>
    %c0_2 = arith.constant 0 : index
    %c0_3 = arith.constant 0 : index
    %3 = vector.load %arg3[%c0_2, %c0_3] : memref<32x32xf32, #tpu.memory_space<vmem>>, vector<32x32xf32>
    %4 = arith.truncf %3 : vector<32x32xf32> to vector<32x32xbf16>
    %cst = arith.constant dense<0.000000e+00> : vector<256x32xf32>
    %5 = tpu.matmul %2, %4, %cst {dimension_numbers = #tpu.dot_dimension_numbers<[1], [1], [0], [0], [0, 0, 1, 0], [], []>} : vector<256x32xbf16>, vector<32x32xbf16>, vector<256x32xf32> -> vector<256x32xf32>
    %c0_4 = arith.constant 0 : index
    %c0_5 = arith.constant 0 : index
    %6 = vector.load %arg4[%c0_4, %c0_5] : memref<1x32xf32, #tpu.memory_space<vmem>>, vector<1x32xf32>
    %7 = vector.broadcast %6 : vector<1x32xf32> to vector<256x32xf32>
    %8 = arith.mulf %5, %7 : vector<256x32xf32>
    %c0_6 = arith.constant 0 : index
    %c0_7 = arith.constant 0 : index
    %9 = vector.load %arg5[%c0_6, %c0_7] : memref<1x32xf32, #tpu.memory_space<vmem>>, vector<1x32xf32>
    %10 = vector.broadcast %9 : vector<1x32xf32> to vector<256x32xf32>
    %11 = arith.addf %8, %10 : vector<256x32xf32>
    %12 = vector.shape_cast %11 : vector<256x32xf32> to vector<32x8x32xf32>
    %13 = arith.truncf %12 : vector<32x8x32xf32> to vector<32x8x32xbf16>
    "tpu.trace_start"() <{level = 10 : i32, message = "bwc,bwd->bcd"}> : () -> ()
    %cst_8 = arith.constant dense<0.000000e+00> : vector<32x32x32xf32>
    %14 = tpu.matmul %13, %13, %cst_8 {dimension_numbers = #tpu.dot_dimension_numbers<[1], [1], [2], [2], [0, 0, 0, 2, 1, 2], [0], [0]>} : vector<32x8x32xbf16>, vector<32x8x32xbf16>, vector<32x32x32xf32> -> vector<32x32x32xf32>
    "tpu.trace_stop"() : () -> ()
    %15 = vector.shape_cast %14 : vector<32x32x32xf32> to vector<8x4x32x32xf32>
    %c0_9 = arith.constant 0 : index
    %16 = memref.load %arg1[%c0_9] : memref<1xf32, #tpu.memory_space<smem>>
    %17 = vector.broadcast %16 : f32 to vector<8x4x32x32xf32>
    %18 = arith.mulf %15, %17 : vector<8x4x32x32xf32>
    %cst_10 = arith.constant dense<0xFF800000> : vector<8x32x32xf32>
    %19 = vector.multi_reduction <maximumf>, %18, %cst_10 [1] : vector<8x4x32x32xf32> to vector<8x32x32xf32>
    %20 = vector.shape_cast %19 : vector<8x32x32xf32> to vector<8x1x32x32xf32>
    %21 = vector.broadcast %20 : vector<8x1x32x32xf32> to vector<8x4x32x32xf32>
    %22 = arith.subf %18, %21 : vector<8x4x32x32xf32>
    %23 = math.exp %22 : vector<8x4x32x32xf32>
    %cst_11 = arith.constant dense<0.000000e+00> : vector<8x32x32xf32>
    %24 = vector.multi_reduction <add>, %23, %cst_11 [1] : vector<8x4x32x32xf32> to vector<8x32x32xf32>
    %25 = vector.shape_cast %24 : vector<8x32x32xf32> to vector<8x1x32x32xf32>
    %26 = tpu.reciprocal %25 {approx = true} : vector<8x1x32x32xf32> -> vector<8x1x32x32xf32>
    %27 = vector.broadcast %26 : vector<8x1x32x32xf32> to vector<8x4x32x32xf32>
    %28 = arith.mulf %23, %27 : vector<8x4x32x32xf32>
    %29 = vector.extract_strided_slice %28 {offsets = [0, 0, 0, 0], sizes = [8, 1, 32, 32], strides = [1, 1, 1, 1]} : vector<8x4x32x32xf32> to vector<8x1x32x32xf32>
    %30 = vector.shape_cast %29 : vector<8x1x32x32xf32> to vector<8x32x32xf32>
    %31 = vector.extract_strided_slice %28 {offsets = [0, 1, 0, 0], sizes = [8, 1, 32, 32], strides = [1, 1, 1, 1]} : vector<8x4x32x32xf32> to vector<8x1x32x32xf32>
    %32 = vector.shape_cast %31 : vector<8x1x32x32xf32> to vector<8x32x32xf32>
    %33 = vector.extract_strided_slice %28 {offsets = [0, 2, 0, 0], sizes = [8, 1, 32, 32], strides = [1, 1, 1, 1]} : vector<8x4x32x32xf32> to vector<8x1x32x32xf32>
    %34 = vector.shape_cast %33 : vector<8x1x32x32xf32> to vector<8x32x32xf32>
    %35 = vector.extract_strided_slice %28 {offsets = [0, 3, 0, 0], sizes = [8, 1, 32, 32], strides = [1, 1, 1, 1]} : vector<8x4x32x32xf32> to vector<8x1x32x32xf32>
    %36 = vector.shape_cast %35 : vector<8x1x32x32xf32> to vector<8x32x32xf32>
    %37 = tpu.concatenate %30, %32, %34, %36 in 2 : vector<8x32x32xf32>, vector<8x32x32xf32>, vector<8x32x32xf32>, vector<8x32x32xf32> -> vector<8x32x128xf32>
    %c0_12 = arith.constant 0 : index
    %c0_13 = arith.constant 0 : index
    %c0_14 = arith.constant 0 : index
    %38 = vector.load %arg7[%c0_12, %c0_13, %c0_14] : memref<8x32x128xf32, #tpu.memory_space<vmem>>, vector<8x32x128xf32>
    tpu.vector_store %arg7[%c0_12, %c0_13, %c0_14], %37 {strides = array<i32>} : memref<8x32x128xf32, #tpu.memory_space<vmem>>, vector<8x32x128xf32>,
    %39 = vector.shape_cast %28 : vector<8x4x32x32xf32> to vector<32x32x32xf32>
    %40 = arith.truncf %39 : vector<32x32x32xf32> to vector<32x32x32xbf16>
    "tpu.trace_start"() <{level = 10 : i32, message = "bwd,bcd->bwc"}> : () -> ()
    %cst_15 = arith.constant dense<0.000000e+00> : vector<32x8x32xf32>
    %41 = tpu.matmul %13, %40, %cst_15 {dimension_numbers = #tpu.dot_dimension_numbers<[2], [2], [1], [1], [0, 0, 0, 1, 1, 1], [0], [0]>} : vector<32x8x32xbf16>, vector<32x32x32xbf16>, vector<32x8x32xf32> -> vector<32x8x32xf32>
    "tpu.trace_stop"() : () -> ()
    %42 = vector.shape_cast %41 : vector<32x8x32xf32> to vector<8x32x32xf32>
    %c0_16 = arith.constant 0 : index
    %c0_17 = arith.constant 0 : index
    %c0_18 = arith.constant 0 : index
    %43 = vector.load %arg6[%c0_16, %c0_17, %c0_18] : memref<8x32x32xf32, #tpu.memory_space<vmem>>, vector<8x32x32xf32>
    tpu.vector_store %arg6[%c0_16, %c0_17, %c0_18], %42 {strides = array<i32>} : memref<8x32x32xf32, #tpu.memory_space<vmem>>, vector<8x32x32xf32>,
    return
  }
  func.func @transform_0(%arg0: i32) -> i32 {
    %c0_i32 = arith.constant 0 : i32
    %c0_i32_0 = arith.constant 0 : i32
    return %c0_i32 : i32
  }
  func.func @transform_1(%arg0: i32) -> (i32, i32, i32) {
    %c0_i32 = arith.constant 0 : i32
    %c0_i32_0 = arith.constant 0 : i32
    %c0_i32_1 = arith.constant 0 : i32
    return %arg0, %c0_i32, %c0_i32_0 : i32, i32, i32
  }
  func.func @transform_2(%arg0: i32) -> (i32, i32) {
    %c0_i32 = arith.constant 0 : i32
    %c0_i32_0 = arith.constant 0 : i32
    %c0_i32_1 = arith.constant 0 : i32
    return %c0_i32, %c0_i32_0 : i32, i32
  }
  func.func @transform_3(%arg0: i32) -> (i32, i32) {
    %c0_i32 = arith.constant 0 : i32
    %c0_i32_0 = arith.constant 0 : i32
    %c0_i32_1 = arith.constant 0 : i32
    return %c0_i32, %c0_i32_0 : i32, i32
  }
  func.func @transform_4(%arg0: i32) -> (i32, i32) {
    %c0_i32 = arith.constant 0 : i32
    %c0_i32_0 = arith.constant 0 : i32
    %c0_i32_1 = arith.constant 0 : i32
    return %c0_i32, %c0_i32_0 : i32, i32
  }
  func.func @transform_5(%arg0: i32) -> (i32, i32, i32) {
    %c0_i32 = arith.constant 0 : i32
    %c0_i32_0 = arith.constant 0 : i32
    %c0_i32_1 = arith.constant 0 : i32
    return %arg0, %c0_i32, %c0_i32_0 : i32, i32, i32
  }
  func.func @transform_6(%arg0: i32) -> (i32, i32, i32) {
    %c0_i32 = arith.constant 0 : i32
    %c0_i32_0 = arith.constant 0 : i32
    %c0_i32_1 = arith.constant 0 : i32
    return %arg0, %c0_i32, %c0_i32_0 : i32, i32, i32
  }
}

</mosaic_0001>

<bundles_post_ra>
// kernel: tpu_custom_call.1
= control target key start
LH: loop header
LB: loop body
LE: loop exit
PB: predicated region body
PF: predicated region fallthrough
CT: control target
= control target key end

     0   :  { %s9564_s0 = inlined_call_operand.<no memory space> [shape: f32[1], index: 0, kind: input, shape index: {}]   ;;  %s9565_s1 = inlined_call_operand.hbm [shape: f32[16,32,32], index: 1, kind: input, shape index: {}]   ;;  %s9566_s2 = inlined_call_operand.hbm [shape: f32[32,32], index: 2, kind: input, shape index: {}]   ;;  %s9567_s3 = inlined_call_operand.vmem [shape: f32[1,32], index: 3, kind: input, shape index: {}]   ;;  %s9568_s4 = inlined_call_operand.vmem [shape: f32[1,32], index: 4, kind: input, shape index: {}]   ;;  %s9569_s5 = inlined_call_operand.hbm [shape: f32[16,32,32], index: 5, kind: output, shape index: {0}]   ;;  %s9570_s6 = inlined_call_operand.hbm [shape: f32[16,32,128], index: 6, kind: output, shape index: {1}]  }
   0x1   :  { %12 = sst [smem:[#allocation2]] %s9564_s0 }
   0x2   :  { %13 = vsyncpa [#allocation4], 0 }
   0x3   :  { %15 = vsyncpa [#allocation4 + $0x1], 0 }
   0x4   :  { %16 = vsyncpa [#allocation7], 0 }
   0x5   :  { %17 = vsyncpa [#allocation5], 0 }
   0x6   :  { %19 = vsyncpa [#allocation5 + $0x1], 0 }
   0x7   :  { %20 = vsyncpa [#allocation10], 0 }
   0x8   :  { %22 = vsyncpa [#allocation10 + $0x1], 0  ;;  %s5785_s23 = smov 0   ;;  %s5787_s24 = smov 0  }
   0x9   :  { %s5789_s25 = smov 0   ;;  %s5791_s26 = smov 0  }
   0xa LB: > { %s5806_s0 = sadd.s32 4294967295, %s5737_s26   ;;  %s4962_s27 = sadd.s32 4294967294, %s5737_s26   ;;  %s5737_s26 = sphi %s5791_s26, %s9922_s26   ;;  %s5733_s25 = sphi %s5789_s25, %s9921_s25   ;;  %s5729_s24 = sphi %s5787_s24, %s9920_s24   ;;  %s5725_s23 = sphi %s5785_s23, %s9919_s23  }
   0xb   : > { %p69_p0 = scmp.ne.s32.totalorder %s5729_s24, %s5725_s23  ;;  %p70_p1 = scmp.eq.s32.totalorder %s5806_s0, 0 }
   0xc   : > { %p156_p2 = scmp.eq.s32.totalorder %s5806_s0, 1  ;;  %p162_p3 = scmp.eq.s32.totalorder %s4962_s27, 1 }
   0xd   : > { %p5815_p4 = por %p70_p1, %p69_p0  ;;  %p4963_p5 = scmp.ge.s32.totalorder %s5737_s26, 1 }
   0xe   : > { %p5820_p6 = por %p162_p3, %p69_p0  ;;  %p195_p7 = scmp.lt.s32.totalorder %s5737_s26, 3 }
   0xf   : > { %s209_s8 = sshll.u32 %s9566_s2, 4  ;;  %s5739_s10 = smov [#allocation6]   ;;  %s210_s8 = int_to_ptr.hbm [resolvable:$true] %s209_s8 }
  0x10   : > { %p5828_p8 = pnand %p4963_p5, %p195_p7  ;;  %s211_s11 = sshll.u32 %s5739_s10, 4  ;;  %s212_s11 = int_to_ptr.vmem [resolvable:$true] %s211_s11 }
  0x11   : > { %s5838_s12 = sadd.s32 1, %s5737_s26   ;;  %s9571_s13 = smov 128  }
  0x12   : > { %p5113_p9 = pneg %p5828_p8  ;;  %s5741_s14 = smov 8  }
  0x13   : > { %s53_s15 = ssub.s32 %s5737_s26, %s5838_s12  ;;  %s56_s16 = sadd.s32 1, %s5733_s25 }
  0x14   : > { %p5114_p10 = pnand %p5113_p9, %p70_p1  ;;  %p54_p12 = scmp.eq.s32.totalorder %s53_s15, 0 }
  0x15   : > { %p63_p13 = scmp.ne.s32.totalorder %s5733_s25, %s5729_s24  ;;  %p64_p0 = scmp.eq.s32.totalorder %s5737_s26, 0 }
  0x16   : > { %5116 = dma.hbm_to_vmem [thread:$0]  (!%p5114_p10), %s210_s8, 512, %s212_s11, [#allocation7], %s9571_s13, %s9571_s13, %s5741_s14  }
  0x17   : > { %s5850_s17 = scalar_select %p54_p12, %s5733_s25, %s56_s16  }
  0x18   : > { %p5854_p3 = por %p156_p2, %p63_p13  ;;  %p5129_p5 = scmp.lt.s32.totalorder %s5737_s26, 2 }
  0x19   : > { %s231_s19 = sand.u32 1, %s5733_s25   ;;  %s5098_s20 = sshll.u32 %s5737_s26, 8 }
  0x1a   : > { %p65_p7 = por %p64_p0, %p63_p13  ;;  %s4966_s21 = sshll.u32 %s231_s19, 8 }
  0x1b   : > { %s241_s30 = scalar_lea.hbm %s9565_s1, %s5098_s20  ;;  %s235_s8 = scalar_lea.vmem [#allocation3], %s4966_s21 }
  0x1c   : > { %s242_s7 = sshll.u32 %s241_s30, 4  ;;  %s244_s10 = sshll.u32 %s235_s8, 4  ;;  %s243_s7 = int_to_ptr.hbm [resolvable:$true] %s242_s7  ;;  %s245_s10 = int_to_ptr.vmem [resolvable:$true] %s244_s10 }
  0x1d   : > { %p5864_p9 = pnand %p5129_p5, %p65_p7  ;;  %s232_s15 = scalar_lea.sflag [#allocation4], %s231_s19 }
  0x1e   : > { %s5605_s16 = sshra.s32 %s243_s7, 4  ;;  %s5612_s21 = scalar_lea.hbm %s9565_s1, 512  ;;  %s5606_s16 = int_to_ptr.hbm [resolvable:$true] %s5605_s16 }
  0x1f   : > { %s5607_s13 = scalar_lea.hbm %s5606_s16, 256  ;;  %p5609_p10 = pneg %p5864_p9 }
  0x20   : > { %p5608_p2 = scmp.ne.s32.totalorder %s5606_s16, %s5607_s13  ;;  %p5613_p0 = scmp.lt.s32.totalorder %s5606_s16, %s9565_s1 }
  0x21   : > { %p5614_p5 = scmp.lt.s32.totalorder %s5612_s21, %s5607_s13 }
  0x22   : > { %p5610_p12 = pnand %p5609_p10, %p5608_p2 }
  0x23   : > { %p5615_p7 = por %p5614_p5, %p5613_p0 }
  0x24   : > { %p5611_p13 = pneg %p5610_p12 }
  0x26   : > { %p5616_p11 = pnand %p5615_p7, %p5611_p13 }
  0x28   : > { %5619 = shalt.err (!%p5616_p11)
}
  0x29   : > { %s9669_s19 = smov 128   ;;  %256 = sbr.rel (%p5828_p8) target bundleno = 1120 (0x460), region = 40 }
  0x2a   : > { %5120 = dma.hbm_to_vmem [thread:$0]  (!%p5864_p9), %s243_s7, 4096, %s245_s10, %s232_s15, %s9669_s19, %s9669_s19, %s5741_s14  }
  0x2e   : > { %s5884_s8 = sand.u32 1, %s5729_s24  }
  0x2f   : > { %s5887_s16 = sshll.u32 %s5884_s8, 8  ;;  %s259_s13 = scalar_lea.sflag [#allocation4], %s5884_s8 }
  0x30   : > { %s5891_s20 = scalar_lea.vmem [#allocation3], %s5887_s16 }
  0x31   : > { %5708 = dma.done.wait (%p5815_p4), %s259_s13, 4096  }
  0x32   : > { %5710 = vsyncadd (%p5815_p4), %s259_s13, 4294963200 }
  0x33   : > { %5712 = dma.done.wait (%p70_p1), [#allocation7], 512  }
  0x34   : > { %5714 = vsyncadd (%p70_p1), [#allocation7], 4294966784  ;;  %v356_v0 = vld [vmem:[#allocation6 + $0x10] sm:$0xff]  ;;  %v357_v1 = vld [vmem:[#allocation6 + $0x18] sm:$0xff]  ;;  %vm360_vm0 = vcmask 261120   ;;  %vm631_vm1 = vcmask 1043456  }
  0x35   : > { %v359_v2 = vpack.c.bf16 %v357_v1, %v356_v0  ;;  %v354_v3 = vld [vmem:[#allocation6] sm:$0xff]  ;;  %v355_v4 = vld [vmem:[#allocation6 + $0x8] sm:$0xff]  ;;  %v308_v11 = vld [vmem:[%s5891_s20 + $0x10] sm:$0xff]  ;;  %vm624_vm2 = vcmask 64512   ;;  %s2018_s10 = sld [smem:[#allocation2]]  ;;  %s5742_s11 = smov 32  }
  0x36   : > { %v358_v6 = vpack.c.bf16 %v355_v4, %v354_v3  ;;  %v306_v8 = vld [vmem:[%s5891_s20] sm:$0xff]  ;;  %v307_v9 = vld [vmem:[%s5891_s20 + $0x8] sm:$0xff]  ;;  %v309_v12 = vld [vmem:[%s5891_s20 + $0x18] sm:$0xff]  ;;  %s5743_s15 = smov 96   ;;  %s5744_s22 = smov 64   ;;  %vm3556_vm3 = vcmask 523264  }
  0x37   : > { %v413_v5 = vsel %vm360_vm0, %v359_v2, 0  ;;  %v338_v10 = vpack.c.bf16 %v307_v9, %v306_v8  ;;  %v339_v13 = vpack.c.bf16 %v309_v12, %v308_v11  ;;  %v310_v14 = vld [vmem:[%s5891_s20 + $0x20] sm:$0xff]  ;;  %v311_v15 = vld [vmem:[%s5891_s20 + $0x28] sm:$0xff]  ;;  %v312_v17 = vld [vmem:[%s5891_s20 + $0x30] sm:$0xff]  ;;  %vm3589_vm4 = vcmask 785408   ;;  %s7452_s21 = scalar_lea.vmem [#allocation9], %s5887_s16 }
  0x38   : > { %421 = vmatpush.bf16.xpose.msra.mxu0 %v413_v5  ;;  %v410_v7 = vsel %vm360_vm0, %v358_v6, 0  ;;  %v340_v16 = vpack.c.bf16 %v311_v15, %v310_v14  ;;  %v313_v18 = vld [vmem:[%s5891_s20 + $0x38] sm:$0xff]  ;;  %v314_v20 = vld [vmem:[%s5891_s20 + $0x40] sm:$0xff]  ;;  %v315_v21 = vld [vmem:[%s5891_s20 + $0x48] sm:$0xff]  ;;  %s8289_s27 = scalar_lea.vmem [#allocation8], %s5887_s16  ;;  %s5100_s30 = sshll.u32 %s5806_s0, 8 }
  0x39   : > { %v341_v19 = vpack.c.bf16 %v313_v18, %v312_v17  ;;  %v342_v22 = vpack.c.bf16 %v315_v21, %v314_v20  ;;  %v316_v23 = vld [vmem:[%s5891_s20 + $0x50] sm:$0xff]  ;;  %v317_v24 = vld [vmem:[%s5891_s20 + $0x58] sm:$0xff]  ;;  %v318_v26 = vld [vmem:[%s5891_s20 + $0x60] sm:$0xff]  ;;  %s4842_s13 = scalar_lea.hbm %s9570_s6, %s5100_s30  ;;  %s4812_s9 = scalar_lea.sflag [#allocation10], %s5884_s8 }
  0x3a   : > { %v343_v25 = vpack.c.bf16 %v317_v24, %v316_v23  ;;  %v319_v27 = vld [vmem:[%s5891_s20 + $0x68] sm:$0xff]  ;;  %v320_v29 = vld [vmem:[%s5891_s20 + $0x70] sm:$0xff]  ;;  %v321_v30 = vld [vmem:[%s5891_s20 + $0x78] sm:$0xff]  ;;  %s4845_s28 = sshll.u32 %s4842_s13, 4  ;;  %s4846_s28 = int_to_ptr.hbm [resolvable:$true] %s4845_s28 }
  0x3b   : > { %v344_v28 = vpack.c.bf16 %v319_v27, %v318_v26  ;;  %v345_v31 = vpack.c.bf16 %v321_v30, %v320_v29  ;;  %v322_v32 = vld [vmem:[%s5891_s20 + $0x80] sm:$0xff]  ;;  %v323_v33 = vld [vmem:[%s5891_s20 + $0x88] sm:$0xff]  ;;  %v324_v45 = vld [vmem:[%s5891_s20 + $0x90] sm:$0xff]  ;;  %s5649_s14 = sshra.s32 %s4846_s28, 4  ;;  %s5650_s14 = int_to_ptr.hbm [resolvable:$true] %s5649_s14 }
  0x3c   : > { %v5932_v34 = vld [vmem:[%s9567_s3] ss:$0 sm:$0xff]  ;;  %v346_v36 = vpack.c.bf16 %v323_v33, %v322_v32  ;;  %v325_v46 = vld [vmem:[%s5891_s20 + $0x98] sm:$0xff]  ;;  %v327_v59 = vld [vmem:[%s5891_s20 + $0xa8] sm:$0xff]  ;;  %s5651_s7 = scalar_lea.hbm %s5650_s14, 256  ;;  %p5656_p11 = scmp.lt.s32.totalorder %s5650_s14, %s9570_s6 }
  0x3d   : > { %v5937_v35 = vld [vmem:[%s9568_s4] ss:$0 sm:$0xff]  ;;  %v347_v49 = vpack.c.bf16 %v325_v46, %v324_v45  ;;  %v329_v8 = vld [vmem:[%s5891_s20 + $0xb8] sm:$0xff]  ;;  %v331_v15 = vld [vmem:[%s5891_s20 + $0xc8] sm:$0xff]  ;;  %p5652_p1 = scmp.ne.s32.totalorder %s5650_s14, %s5651_s7 }
  0x3e   : > { %v326_v58 = vld [vmem:[%s5891_s20 + $0xa0] sm:$0xff]  ;;  %v332_v30 = vld [vmem:[%s5891_s20 + $0xd0] sm:$0xff] }
  0x3f   : > { %v348_v62 = vpack.c.bf16 %v327_v59, %v326_v58  ;;  %v330_v14 = vld [vmem:[%s5891_s20 + $0xc0] sm:$0xff]  ;;  %v337_v58 = vld [vmem:[%s5891_s20 + $0xf8] sm:$0xff]  ;;  %p5653_p4 = pnand %p5652_p1, %p5854_p3 }
  0x40   : > { %422 = vmatpush.bf16.xpose.msra.mxu0 %v410_v7  ;;  %v328_v7 = vld [vmem:[%s5891_s20 + $0xb0] sm:$0xff] }
  0x41   : > { %v349_v11 = vpack.c.bf16 %v329_v8, %v328_v7  ;;  %p5654_p8 = pneg %p5653_p4 }
  0x47   : > { %4975 = vmatmul.msk.bf16.vlgmr.msra.gmra.mxu0 %vm360_vm0, %v338_v10 }
  0x57   : > { %4976 = vmatmul.msk.bf16.gmra.mxu0 %vm360_vm0, %v339_v13 }
  0x67   : > { %4977 = vmatmul.msk.bf16.gmra.mxu0 %vm360_vm0, %v340_v16  ;;  %v350_v16 = vpack.c.bf16 %v331_v15, %v330_v14 }
  0x77   : > { %4978 = vmatmul.msk.bf16.gmra.mxu0 %vm360_vm0, %v341_v19 }
  0x87   : > { %4979 = vmatmul.msk.bf16.gmra.mxu0 %vm360_vm0, %v342_v22 }
  0x97   : > { %4980 = vmatmul.msk.bf16.gmra.mxu0 %vm360_vm0, %v343_v25 }
  0xa7   : > { %4981 = vmatmul.msk.bf16.gmra.mxu0 %vm360_vm0, %v344_v28 }
  0xb7   : > { %4982 = vmatmul.msk.bf16.gmra.mxu0 %vm360_vm0, %v345_v31  ;;  %v333_v31 = vld [vmem:[%s5891_s20 + $0xd8] sm:$0xff] }
  0xb8   : > { %v351_v33 = vpack.c.bf16 %v333_v31, %v332_v30 }
  0xc4   : > { %v424_v37 = vpop.f32.mrf.mxu0 }
  0xc5   : > { %v508_v38 = vmul.f32 %v5932_v34, %v424_v37 }
  0xc7   : > { %v544_v39 = vadd.f32 %v5937_v35, %v508_v38  ;;  %4983 = vmatmul.msk.bf16.gmra.mxu0 %vm360_vm0, %v346_v36  ;;  %v334_v38 = vld [vmem:[%s5891_s20 + $0xe0] sm:$0xff] }
  0xc9   : > { %v5942_v40 = vpack.c.bf16 %v544_v39, %v544_v39  ;;  %v335_v39 = vld [vmem:[%s5891_s20 + $0xe8] sm:$0xff] }
  0xcb   : > { %9670 = vst [vmem:[#allocation15_spill] sm:$0xff] %v5942_v40  ;;  %v633_v41 = vsel %vm631_vm1, %v5942_v40, 0 }
  0xcc   : > { %v426_v42 = vpop.f32.mrf.mxu0  ;;  %642 = vmatpush.bf16.msra.mxu1 %v633_v41  ;;  %v352_v41 = vpack.c.bf16 %v335_v39, %v334_v38 }
  0xcd   : > { %v509_v43 = vmul.f32 %v5932_v34, %v426_v42 }
  0xcf   : > { %v545_v44 = vadd.f32 %v5937_v35, %v509_v43 }
  0xd1   : > { %v5950_v47 = vpack.c.bf16 %v545_v44, %v545_v44 }
  0xd3   : > { %9671 = vst [vmem:[#allocation16_spill] sm:$0xff] %v5950_v47  ;;  %5173 = vxpose.binary.xlu0.c.b16.start.end [1/2] (short) (narrow) %v5950_v47, %v5942_v40, 32  ;;  %v677_v48 = vsel %vm631_vm1, %v5950_v47, 0 }
  0xd4   : > { %v429_v50 = vpop.f32.mrf.mxu0  ;;  %686 = vmatpush.bf16.msra.mxu2 %v677_v48 }
  0xd5   : > { %v510_v51 = vmul.f32 %v5932_v34, %v429_v50 }
  0xd7   : > { %v546_v52 = vadd.f32 %v5937_v35, %v510_v51  ;;  %4984 = vmatmul.msk.bf16.gmra.mxu0 %vm360_vm0, %v347_v49 }
  0xd9   : > { %v5959_v53 = vpack.c.bf16 %v546_v52, %v546_v52 }
  0xdb   : > { %9672 = vst [vmem:[#allocation17_spill] sm:$0xff] %v5959_v53  ;;  %v721_v54 = vsel %vm631_vm1, %v5959_v53, 0 }
  0xdc   : > { %v431_v55 = vpop.f32.mrf.mxu0  ;;  %730 = vmatpush.bf16.msra.mxu3 %v721_v54 }
  0xdd   : > { %v511_v56 = vmul.f32 %v5932_v34, %v431_v55 }
  0xdf   : > { %v547_v57 = vadd.f32 %v5937_v35, %v511_v56 }
  0xe1   : > { %v5967_v60 = vpack.c.bf16 %v547_v57, %v547_v57  ;;  %v336_v57 = vld [vmem:[%s5891_s20 + $0xf0] sm:$0xff]  ;;  %s4843_s20 = sshll.u32 %s7452_s21, 4  ;;  %s4844_s20 = int_to_ptr.vmem [resolvable:$true] %s4843_s20 }
  0xe3   : > { %9673 = vst [vmem:[#allocation18_spill] sm:$0xff] %v5967_v60  ;;  %v765_v61 = vsel %vm631_vm1, %v5967_v60, 0 }
  0xe4   : > { %v434_v63 = vpop.f32.mrf.mxu0  ;;  %774 = vmatpush.bf16.msrb.mxu1 %v765_v61  ;;  %v353_v61 = vpack.c.bf16 %v337_v58, %v336_v57 }
  0xe5   : > { %v512_v0 = vmul.f32 %v5932_v34, %v434_v63 }
  0xe7   : > { %v548_v1 = vadd.f32 %v5937_v35, %v512_v0  ;;  %4985 = vmatmul.msk.bf16.gmra.mxu0 %vm360_vm0, %v348_v62 }
  0xe9   : > { %v5974_v2 = vpack.c.bf16 %v548_v1, %v548_v1 }
  0xeb   : > { %9674 = vst [vmem:[#allocation19_spill] sm:$0xff] %v5974_v2  ;;  %v809_v3 = vsel %vm631_vm1, %v5974_v2, 0 }
  0xec   : > { %v436_v4 = vpop.f32.mrf.mxu0  ;;  %818 = vmatpush.bf16.msrb.mxu2 %v809_v3 }
  0xed   : > { %v513_v5 = vmul.f32 %v5932_v34, %v436_v4 }
  0xef   : > { %v549_v6 = vadd.f32 %v5937_v35, %v513_v5 }
  0xf1   : > { %v5982_v9 = vpack.c.bf16 %v549_v6, %v549_v6 }
  0xf3   : > { %9675 = vst [vmem:[#allocation20_spill] sm:$0xff] %v5982_v9  ;;  %5178 = vxpose.binary.xlu0.c.b16.start.end [1/2] (short) (narrow) %v5967_v60, %v5959_v53, 32  ;;  %v853_v10 = vsel %vm631_vm1, %v5982_v9, 0 }
  0xf4   : > { %5183 = vxpose.binary.xlu1.c.b16.start.end [1/2] (short) (narrow) %v5982_v9, %v5974_v2, 32  ;;  %v439_v12 = vpop.f32.mrf.mxu0 }
  0xf5   : > { %862 = vmatpush.bf16.msrb.mxu3 %v853_v10  ;;  %v514_v19 = vmul.f32 %v5932_v34, %v439_v12 }
  0xf7   : > { %4986 = vmatmul.msk.bf16.gmra.mxu0 %vm360_vm0, %v349_v11  ;;  %v550_v22 = vadd.f32 %v5937_v35, %v514_v19 }
  0xf9   : > { %v6004_v28 = vpack.c.bf16 %v550_v22, %v550_v22 }
  0xfb   : > { %9677 = vst [vmem:[#allocation22_spill] sm:$0xff] %v6004_v28 }
  0xfc   : > { %v441_v13 = vpop.f32.mrf.mxu0 }
  0xfd   : > { %v515_v20 = vmul.f32 %v5932_v34, %v441_v13 }
  0xff   : > { %v551_v23 = vadd.f32 %v5937_v35, %v515_v20 }
 0x101   : > { %v6006_v29 = vpack.c.bf16 %v551_v23, %v551_v23 }
 0x103   : > { %9678 = vst [vmem:[#allocation23_spill] sm:$0xff] %v6006_v29  ;;  %v941_v57 = vsel %vm631_vm1, %v6006_v29, 0 }
 0x104   : > { %v444_v17 = vpop.f32.mrf.mxu0 }
 0x105   : > { %v516_v18 = vmul.f32 %v5932_v34, %v444_v17 }
 0x107   : > { %4987 = vmatmul.msk.bf16.gmra.mxu0 %vm360_vm0, %v350_v16  ;;  %v552_v21 = vadd.f32 %v5937_v35, %v516_v18 }
 0x109   : > { %v6001_v26 = vpack.c.bf16 %v552_v21, %v552_v21 }
 0x10b   : > { %9676 = vst [vmem:[#allocation21_spill] sm:$0xff] %v6001_v26 }
 0x10c   : > { %v446_v24 = vpop.f32.mrf.mxu0 }
 0x10d   : > { %v517_v25 = vmul.f32 %v5932_v34, %v446_v24 }
 0x10f   : > { %v553_v27 = vadd.f32 %v5937_v35, %v517_v25 }
 0x111   : > { %v6010_v32 = vpack.c.bf16 %v553_v27, %v553_v27 }
 0x113   : > { %9679 = vst [vmem:[#allocation24_spill] sm:$0xff] %v6010_v32  ;;  %5193 = vxpose.binary.xlu2.c.b16.start.end [1/2] (short) (narrow) %v6010_v32, %v6001_v26, 32 }
 0x114   : > { %5188 = vxpose.binary.xlu1.c.b16.start.end [1/2] (short) (narrow) %v6006_v29, %v6004_v28, 32  ;;  %v449_v36 = vpop.f32.mrf.mxu0 }
 0x115   : > { %v518_v43 = vmul.f32 %v5932_v34, %v449_v36 }
 0x117   : > { %4988 = vmatmul.msk.bf16.gmra.mxu0 %vm360_vm0, %v351_v33  ;;  %v554_v46 = vadd.f32 %v5937_v35, %v518_v43 }
 0x119   : > { %v6027_v52 = vpack.c.bf16 %v554_v46, %v554_v46 }
 0x11b   : > { %9680 = vst [vmem:[#allocation25_spill] sm:$0xff] %v6027_v52 }
 0x11c   : > { %v451_v37 = vpop.f32.mrf.mxu0 }
 0x11d   : > { %v519_v44 = vmul.f32 %v5932_v34, %v451_v37 }
 0x11f   : > { %v555_v48 = vadd.f32 %v5937_v35, %v519_v44 }
 0x121   : > { %v6030_v55 = vpack.c.bf16 %v555_v48, %v555_v48  ;;  %v897_v48 = vsel %vm631_vm1, %v6004_v28, 0 }
 0x123   : > { %9681 = vst [vmem:[#allocation26_spill] sm:$0xff] %v6030_v55 }
 0x124   : > { %v454_v42 = vpop.f32.mrf.mxu0 }
 0x125   : > { %v520_v45 = vmul.f32 %v5932_v34, %v454_v42 }
 0x127   : > { %4989 = vmatmul.msk.bf16.gmra.mxu0 %vm360_vm0, %v352_v41  ;;  %v556_v49 = vadd.f32 %v5937_v35, %v520_v45 }
 0x129   : > { %v6032_v56 = vpack.c.bf16 %v556_v49, %v556_v49 }
 0x12b   : > { %9682 = vst [vmem:[#allocation27_spill] sm:$0xff] %v6032_v56 }
 0x12c   : > { %v456_v50 = vpop.f32.mrf.mxu0 }
 0x12d   : > { %v521_v51 = vmul.f32 %v5932_v34, %v456_v50 }
 0x12f   : > { %v557_v54 = vadd.f32 %v5937_v35, %v521_v51 }
 0x131   : > { %v6036_v59 = vpack.c.bf16 %v557_v54, %v557_v54 }
 0x133   : > { %9683 = vst [vmem:[#allocation28_spill] sm:$0xff] %v6036_v59  ;;  %5198 = vxpose.binary.xlu2.c.b16.start.end [1/2] (short) (narrow) %v6030_v55, %v6027_v52, 32 }
 0x134   : > { %5203 = vxpose.binary.xlu0.c.b16.start.end [1/2] (short) (narrow) %v6036_v59, %v6032_v56, 32  ;;  %v459_v62 = vpop.f32.mrf.mxu0 }
 0x135   : > { %v522_v63 = vmul.f32 %v5932_v34, %v459_v62 }
 0x137   : > { %4990 = vmatmul.msk.bf16.gmra.mxu0 %vm360_vm0, %v353_v61  ;;  %v558_v0 = vadd.f32 %v5937_v35, %v522_v63 }
 0x139   : > { %v6046_v4 = vpack.c.bf16 %v558_v0, %v558_v0 }
 0x13b   : > { %9684 = vst [vmem:[#allocation29_spill] sm:$0xff] %v6046_v4 }
 0x13c   : > { %v461_v1 = vpop.f32.mrf.mxu0 }
 0x13d   : > { %v523_v3 = vmul.f32 %v5932_v34, %v461_v1 }
 0x13f   : > { %v559_v5 = vadd.f32 %v5937_v35, %v523_v3 }
 0x141   : > { %v6049_v6 = vpack.c.bf16 %v559_v5, %v559_v5 }
 0x143   : > { %9685 = vst [vmem:[#allocation30_spill] sm:$0xff] %v6049_v6  ;;  %5208 = vxpose.binary.xlu1.c.b16.start.end [1/2] (short) (narrow) %v6049_v6, %v6046_v4, 32 }
 0x144   : > { %v464_v7 = vpop.f32.mrf.mxu0 }
 0x145   : > { %v524_v8 = vmul.f32 %v5932_v34, %v464_v7 }
 0x147   : > { %v560_v10 = vadd.f32 %v5937_v35, %v524_v8 }
 0x149   : > { %v6056_v13 = vpack.c.bf16 %v560_v10, %v560_v10 }
 0x14b   : > { %9686 = vst [vmem:[#allocation31_spill] sm:$0xff] %v6056_v13 }
 0x14c   : > { %v466_v11 = vpop.f32.mrf.mxu0 }
 0x14d   : > { %v525_v12 = vmul.f32 %v5932_v34, %v466_v11 }
 0x14f   : > { %v561_v14 = vadd.f32 %v5937_v35, %v525_v12 }
 0x151   : > { %v6059_v15 = vpack.c.bf16 %v561_v14, %v561_v14 }
 0x153   : > { %9687 = vst [vmem:[#allocation32_spill] sm:$0xff] %v6059_v15  ;;  %5213 = vxpose.binary.xlu2.c.b16.start.end [1/2] (short) (narrow) %v6059_v15, %v6056_v13, 32 }
 0x154   : > { %v469_v16 = vpop.f32.mrf.mxu0 }
 0x155   : > { %v526_v17 = vmul.f32 %v5932_v34, %v469_v16 }
 0x157   : > { %v562_v18 = vadd.f32 %v5937_v35, %v526_v17 }
 0x159   : > { %v6066_v21 = vpack.c.bf16 %v562_v18, %v562_v18 }
 0x15b   : > { %9688 = vst [vmem:[#allocation33_spill] sm:$0xff] %v6066_v21 }
 0x15c   : > { %v471_v19 = vpop.f32.mrf.mxu0 }
 0x15d   : > { %v527_v20 = vmul.f32 %v5932_v34, %v471_v19  ;;  %v985_v19 = vsel %vm631_vm1, %v6001_v26, 0 }
 0x15f   : > { %v563_v22 = vadd.f32 %v5937_v35, %v527_v20 }
 0x161   : > { %v6069_v23 = vpack.c.bf16 %v563_v22, %v563_v22 }
 0x163   : > { %9689 = vst [vmem:[#allocation34_spill] sm:$0xff] %v6069_v23  ;;  %5218 = vxpose.binary.xlu0.c.b16.start.end [1/2] (short) (narrow) %v6069_v23, %v6066_v21, 32 }
 0x164   : > { %v474_v24 = vpop.f32.mrf.mxu0 }
 0x165   : > { %v528_v25 = vmul.f32 %v5932_v34, %v474_v24 }
 0x167   : > { %v564_v27 = vadd.f32 %v5937_v35, %v528_v25 }
 0x169   : > { %v6076_v33 = vpack.c.bf16 %v564_v27, %v564_v27 }
 0x16b   : > { %9690 = vst [vmem:[#allocation35_spill] sm:$0xff] %v6076_v33 }
 0x16c   : > { %v476_v30 = vpop.f32.mrf.mxu0 }
 0x16d   : > { %v529_v31 = vmul.f32 %v5932_v34, %v476_v30  ;;  %v1029_v30 = vsel %vm631_vm1, %v6010_v32, 0 }
 0x16f   : > { %v565_v36 = vadd.f32 %v5937_v35, %v529_v31  ;;  %v1073_v31 = vsel %vm631_vm1, %v6027_v52, 0 }
 0x171   : > { %v6079_v37 = vpack.c.bf16 %v565_v36, %v565_v36 }
 0x173   : > { %9691 = vst [vmem:[#allocation36_spill] sm:$0xff] %v6079_v37  ;;  %5223 = vxpose.binary.xlu1.c.b16.start.end [1/2] (short) (narrow) %v6079_v37, %v6076_v33, 32 }
 0x174   : > { %v479_v38 = vpop.f32.mrf.mxu0 }
 0x175   : > { %v530_v39 = vmul.f32 %v5932_v34, %v479_v38 }
 0x177   : > { %v566_v41 = vadd.f32 %v5937_v35, %v530_v39 }
 0x179   : > { %v6086_v44 = vpack.c.bf16 %v566_v41, %v566_v41 }
 0x17b   : > { %9692 = vst [vmem:[#allocation37_spill] sm:$0xff] %v6086_v44 }
 0x17c   : > { %v481_v42 = vpop.f32.mrf.mxu0 }
 0x17d   : > { %v531_v43 = vmul.f32 %v5932_v34, %v481_v42 }
 0x17f   : > { %v567_v45 = vadd.f32 %v5937_v35, %v531_v43  ;;  %v5174_v46 = vpop.trf.xlu0 }
 0x180   : > { %4991 = vmatmul.msk.bf16.vlgmr.msra.gmra.mxu1 %vm624_vm2, %v5174_v46 }
 0x181   : > { %906 = vmatpush.bf16.msra.mxu1 %v897_v48  ;;  %v6092_v49 = vpack.c.bf16 %v567_v45, %v567_v45 }
 0x183   : > { %9693 = vst [vmem:[#allocation38_spill] sm:$0xff] %v6092_v49  ;;  %5228 = vxpose.binary.xlu2.c.b16.start.end [1/2] (short) (narrow) %v6092_v49, %v6086_v44, 32 }
 0x184   : > { %v484_v50 = vpop.f32.mrf.mxu0 }
 0x185   : > { %v532_v51 = vmul.f32 %v5932_v34, %v484_v50 }
 0x187   : > { %v5175_v54 = vpop.trf.xlu0  ;;  %v568_v58 = vadd.f32 %v5937_v35, %v532_v51 }
 0x188   : > { %4993 = vmatmul.msk.bf16.vlgmr.msra.gmra.mxu2 %vm624_vm2, %v5175_v54 }
 0x189   : > { %950 = vmatpush.bf16.msra.mxu2 %v941_v57  ;;  %v6102_v63 = vpack.c.bf16 %v568_v58, %v568_v58 }
 0x18b   : > { %9694 = vst [vmem:[#allocation39_spill] sm:$0xff] %v6102_v63 }
 0x18c   : > { %v486_v61 = vpop.f32.mrf.mxu0 }
 0x18d   : > { %v533_v62 = vmul.f32 %v5932_v34, %v486_v61 }
 0x18f   : > { %v569_v0 = vadd.f32 %v5937_v35, %v533_v62  ;;  %v5176_v1 = vpop.trf.xlu0 }
 0x190   : > { %4992 = vmatmul.msk.bf16.gmra.mxu1 %vm624_vm2, %v5176_v1 }
 0x191   : > { %v6106_v3 = vpack.c.bf16 %v569_v0, %v569_v0 }
 0x193   : > { %9695 = vst [vmem:[#allocation40_spill] sm:$0xff] %v6106_v3  ;;  %5233 = vxpose.binary.xlu0.c.b16.start.end [1/2] (short) (narrow) %v6106_v3, %v6102_v63, 32 }
 0x194   : > { %v489_v5 = vpop.f32.mrf.mxu0 }
 0x195   : > { %v534_v7 = vmul.f32 %v5932_v34, %v489_v5 }
 0x197   : > { %v5177_v8 = vpop.trf.xlu0  ;;  %v570_v10 = vadd.f32 %v5937_v35, %v534_v7 }
 0x198   : > { %4994 = vmatmul.msk.bf16.gmra.mxu2 %vm624_vm2, %v5177_v8  ;;  %v1117_v8 = vsel %vm631_vm1, %v6030_v55, 0 }
 0x199   : > { %v6114_v14 = vpack.c.bf16 %v570_v10, %v570_v10 }
 0x19b   : > { %9696 = vst [vmem:[#allocation41_spill] sm:$0xff] %v6114_v14 }
 0x19c   : > { %v491_v11 = vpop.f32.mrf.mxu0 }
 0x19d   : > { %v535_v12 = vmul.f32 %v5932_v34, %v491_v11 }
 0x19f   : > { %v571_v16 = vadd.f32 %v5937_v35, %v535_v12  ;;  %v5179_v17 = vpop.trf.xlu0 }
 0x1a0   : > { %v5184_v18 = vpop.trf.xlu1  ;;  %4995 = vmatmul.msk.bf16.vlgmr.msra.gmra.mxu3 %vm624_vm2, %v5179_v17 }
 0x1a1   : > { %994 = vmatpush.bf16.msra.mxu3 %v985_v19  ;;  %v6120_v20 = vpack.c.bf16 %v571_v16, %v571_v16 }
 0x1a3   : > { %9697 = vst [vmem:[#allocation42_spill] sm:$0xff] %v6120_v20  ;;  %5238 = vxpose.binary.xlu1.c.b16.start.end [1/2] (short) (narrow) %v6120_v20, %v6114_v14, 32  ;;  %v1821_v22 = vsel %vm631_vm1, %v6120_v20, 0 }
 0x1a4   : > { %v494_v24 = vpop.f32.mrf.mxu0  ;;  %1830 = vmatpush.bf16.msrb.mxu0 %v1821_v22  ;;  %v1249_v22 = vsel %vm631_vm1, %v6046_v4, 0 }
 0x1a5   : > { %v536_v46 = vmul.f32 %v5932_v34, %v494_v24 }
 0x1a7   : > { %v5180_v25 = vpop.trf.xlu0  ;;  %v572_v61 = vadd.f32 %v5937_v35, %v536_v46 }
 0x1a8   : > { %v5185_v27 = vpop.trf.xlu1  ;;  %4997 = vmatmul.msk.bf16.vlgmr.msrb.gmra.mxu1 %vm624_vm2, %v5180_v25  ;;  %4999 = vmatmul.msk.bf16.vlgmr.msrb.gmra.mxu2 %vm624_vm2, %v5184_v18  ;;  %v1293_v25 = vsel %vm631_vm1, %v6049_v6, 0  ;;  %v1733_v6 = vsel %vm631_vm1, %v6106_v3, 0 }
 0x1a9   : > { %1038 = vmatpush.bf16.msrb.mxu1 %v1029_v30  ;;  %1082 = vmatpush.bf16.msrb.mxu2 %v1073_v31  ;;  %v6148_v1 = vpack.c.bf16 %v572_v61, %v572_v61 }
 0x1ab   : > { %9700 = vst [vmem:[#allocation45_spill] sm:$0xff] %v6148_v1 }
 0x1ac   : > { %v496_v36 = vpop.f32.mrf.mxu0 }
 0x1ad   : > { %v537_v38 = vmul.f32 %v5932_v34, %v496_v36 }
 0x1af   : > { %v5181_v39 = vpop.trf.xlu0  ;;  %v573_v42 = vadd.f32 %v5937_v35, %v537_v38 }
 0x1b0   : > { %v5186_v41 = vpop.trf.xlu1  ;;  %4996 = vmatmul.msk.bf16.gmra.mxu3 %vm624_vm2, %v5181_v39 }
 0x1b1   : > { %v6138_v51 = vpack.c.bf16 %v573_v42, %v573_v42  ;;  %v1381_v42 = vsel %vm631_vm1, %v6059_v15, 0 }
 0x1b3   : > { %9698 = vst [vmem:[#allocation43_spill] sm:$0xff] %v6138_v51 }
 0x1b4   : > { %v499_v43 = vpop.f32.mrf.mxu0  ;;  %v5194_v58 = vpop.trf.xlu2 }
 0x1b5   : > { %v538_v45 = vmul.f32 %v5932_v34, %v499_v43 }
 0x1b7   : > { %v574_v48 = vadd.f32 %v5937_v35, %v538_v45  ;;  %v5182_v50 = vpop.trf.xlu0  ;;  %v1425_v45 = vsel %vm631_vm1, %v6066_v21, 0 }
 0x1b8   : > { %v5187_v54 = vpop.trf.xlu1  ;;  %4998 = vmatmul.msk.bf16.gmra.mxu1 %vm624_vm2, %v5182_v50  ;;  %5000 = vmatmul.msk.bf16.gmra.mxu2 %vm624_vm2, %v5186_v41  ;;  %v1469_v50 = vsel %vm631_vm1, %v6069_v23, 0 }
 0x1b9   : > { %v6142_v57 = vpack.c.bf16 %v574_v48, %v574_v48 }
 0x1bb   : > { %9699 = vst [vmem:[#allocation44_spill] sm:$0xff] %v6142_v57  ;;  %5243 = vxpose.binary.xlu2.c.b16.start.end [1/2] (short) (narrow) %v6142_v57, %v6138_v51, 32 }
 0x1bc   : > { %v501_v62 = vpop.f32.mrf.mxu0  ;;  %v5195_v11 = vpop.trf.xlu2 }
 0x1bd   : > { %v539_v0 = vmul.f32 %v5932_v34, %v501_v62  ;;  %v1161_v34 = vsel %vm631_vm1, %v6032_v56, 0 }
 0x1bf   : > { %v575_v5 = vadd.f32 %v5937_v35, %v539_v0  ;;  %v1205_v35 = vsel %vm631_vm1, %v6036_v59, 0 }
 0x1c0   : > { %v5189_v7 = vpop.trf.xlu1  ;;  %5001 = vmatmul.msk.bf16.vlgmr.msrb.gmra.mxu3 %vm624_vm2, %v5185_v27  ;;  %v1337_v27 = vsel %vm631_vm1, %v6056_v13, 0 }
 0x1c1   : > { %1126 = vmatpush.bf16.msrb.mxu3 %v1117_v8  ;;  %v6154_v10 = vpack.c.bf16 %v575_v5, %v575_v5 }
 0x1c3   : > { %9701 = vst [vmem:[#allocation46_spill] sm:$0xff] %v6154_v10  ;;  %5248 = vxpose.binary.xlu0.c.b16.start.end [1/2] (short) (narrow) %v6154_v10, %v6148_v1, 32  ;;  %v1997_v31 = vsel %vm631_vm1, %v6154_v10, 0 }
 0x1c4   : > { %v5196_v16 = vpop.trf.xlu2  ;;  %2006 = vmatpush.bf16.msra.mxu0 %v1997_v31 }
 0x1c8   : > { %v5190_v12 = vpop.trf.xlu1  ;;  %5003 = vmatmul.msk.bf16.vlgmr.msra.gmra.mxu1 %vm624_vm2, %v5189_v7 }
 0x1c9   : > { %5005 = vmatmul.msk.bf16.vlgmr.msra.gmra.mxu2 %vm624_vm2, %v5190_v12  ;;  %1170 = vmatpush.bf16.msra.mxu1 %v1161_v34  ;;  %v6197_v12 = vstv %s2018_s10 }
 0x1ca   : > { %1214 = vmatpush.bf16.msra.mxu2 %v1205_v35 }
 0x1cc   : > { %v5197_v19 = vpop.trf.xlu2 }
 0x1d0   : > { %v5191_v17 = vpop.trf.xlu1  ;;  %5002 = vmatmul.msk.bf16.gmra.mxu3 %vm624_vm2, %v5187_v54 }
 0x1d4   : > { %v5199_v24 = vpop.trf.xlu2 }
 0x1d8   : > { %v5192_v18 = vpop.trf.xlu1  ;;  %5004 = vmatmul.msk.bf16.gmra.mxu1 %vm624_vm2, %v5191_v17 }
 0x1d9   : > { %5006 = vmatmul.msk.bf16.gmra.mxu2 %vm624_vm2, %v5192_v18  ;;  %v1513_v18 = vsel %vm631_vm1, %v6076_v33, 0 }
 0x1dc   : > { %v5200_v30 = vpop.trf.xlu2 }
 0x1e0   : > { %5007 = vmatmul.msk.bf16.vlgmr.msra.gmra.mxu3 %vm624_vm2, %v5194_v58  ;;  %v5204_v38 = vpop.trf.xlu0 }
 0x1e1   : > { %1258 = vmatpush.bf16.msra.mxu3 %v1249_v22 }
 0x1e4   : > { %v5201_v36 = vpop.trf.xlu2 }
 0x1e8   : > { %5009 = vmatmul.msk.bf16.vlgmr.msrb.gmra.mxu1 %vm624_vm2, %v5195_v11  ;;  %v5205_v43 = vpop.trf.xlu0 }
 0x1e9   : > { %5011 = vmatmul.msk.bf16.vlgmr.msrb.gmra.mxu2 %vm624_vm2, %v5199_v24  ;;  %1302 = vmatpush.bf16.msrb.mxu1 %v1293_v25 }
 0x1ea   : > { %1346 = vmatpush.bf16.msrb.mxu2 %v1337_v27 }
 0x1ec   : > { %v5202_v61 = vpop.trf.xlu2 }
 0x1ef   : > { %v5209_v39 = vpop.trf.xlu1 }
 0x1f0   : > { %5008 = vmatmul.msk.bf16.gmra.mxu3 %vm624_vm2, %v5196_v16  ;;  %v5206_v58 = vpop.trf.xlu0 }
 0x1f4   : > { %v5214_v22 = vpop.trf.xlu2 }
 0x1f7   : > { %v5210_v46 = vpop.trf.xlu1 }
 0x1f8   : > { %5010 = vmatmul.msk.bf16.gmra.mxu1 %vm624_vm2, %v5197_v19  ;;  %v5207_v7 = vpop.trf.xlu0 }
 0x1f9   : > { %5012 = vmatmul.msk.bf16.gmra.mxu2 %vm624_vm2, %v5201_v36 }
 0x1fd   : > { %v644_v41 = vpop.f32.mrf.mxu1 }
 0x1fe   : > { %v2020_v17 = vmul.f32 %v6197_v12, %v644_v41 }
 0x1ff   : > { %v6191_v62 = vpop.trf.xlu1 }
 0x200   : > { %5013 = vmatmul.msk.bf16.vlgmr.msrb.gmra.mxu3 %vm624_vm2, %v5200_v30  ;;  %v2148_v27 = vsel %vm360_vm0, %v2020_v17, -inf }
 0x201   : > { %1390 = vmatpush.bf16.msrb.mxu3 %v1381_v42 }
 0x205   : > { %v646_v48 = vpop.f32.mrf.mxu1 }
 0x207   : > { %v6195_v11 = vpop.trf.xlu1 }
 0x208   : > { %5015 = vmatmul.msk.bf16.vlgmr.msra.gmra.mxu1 %vm624_vm2, %v5204_v38 }
 0x209   : > { %5017 = vmatmul.msk.bf16.vlgmr.msra.gmra.mxu2 %vm624_vm2, %v5205_v43  ;;  %1434 = vmatpush.bf16.msra.mxu1 %v1425_v45  ;;  %v2021_v45 = vmul.f32 %v6197_v12, %v646_v48 }
 0x20a   : > { %1478 = vmatpush.bf16.msra.mxu2 %v1469_v50 }
 0x20b   : > { %v688_v54 = vpop.f32.mrf.mxu2 }
 0x20c   : > { %v2024_v35 = vmul.f32 %v6197_v12, %v688_v54  ;;  %v1557_v54 = vsel %vm631_vm1, %v6079_v37, 0 }
 0x20d   : > { %v649_v0 = vpop.f32.mrf.mxu1 }
 0x20e   : > { %v2149_v19 = vsel %vm360_vm0, %v2024_v35, -inf }
 0x20f   : > { %v6202_v16 = vpop.trf.xlu0  ;;  %v2150_v31 = vmax.f32 %v2148_v27, %v2149_v19 }
 0x210   : > { %5014 = vmatmul.msk.bf16.gmra.mxu3 %vm624_vm2, %v5202_v61 }
 0x213   : > { %v690_v5 = vpop.f32.mrf.mxu2 }
 0x214   : > { %v6212_v38 = vmul.f32 %v6197_v12, %v690_v5  ;;  %v1601_v5 = vsel %vm631_vm1, %v6086_v44, 0 }
 0x215   : > { %v6199_v34 = vpop.f32.mrf.mxu1 }
 0x218   : > { %5016 = vmatmul.msk.bf16.gmra.mxu1 %vm624_vm2, %v5206_v58  ;;  %v6223_v58 = vpop.trf.xlu0 }
 0x219   : > { %5018 = vmatmul.msk.bf16.gmra.mxu2 %vm624_vm2, %v5207_v7  ;;  %v2156_v7 = vsel %vm360_vm0, %v6212_v38, -inf }
 0x21b   : > { %v693_v8 = vpop.f32.mrf.mxu2 }
 0x21c   : > { %v6237_v10 = vmul.f32 %v6197_v12, %v693_v8 }
 0x21f   : > { %v6216_v42 = vpop.trf.xlu1 }
 0x220   : > { %5019 = vmatmul.msk.bf16.vlgmr.msra.gmra.mxu3 %vm624_vm2, %v5209_v39 }
 0x221   : > { %1522 = vmatpush.bf16.msra.mxu3 %v1513_v18 }
 0x223   : > { %v695_v24 = vpop.f32.mrf.mxu2  ;;  %v732_v25 = vpop.f32.mrf.mxu3 }
 0x224   : > { %v2028_v30 = vmul.f32 %v6197_v12, %v732_v25 }
 0x225   : > { %v776_v36 = vpop.f32.mrf.mxu1 }
 0x226   : > { %v2151_v39 = vsel %vm360_vm0, %v2028_v30, -inf  ;;  %v2032_v41 = vmul.f32 %v6197_v12, %v776_v36 }
 0x227   : > { %v2152_v43 = vmax.f32 %v2150_v31, %v2151_v39  ;;  %v2155_v31 = vsel %vm360_vm0, %v2021_v45, -inf }
 0x228   : > { %v2153_v50 = vsel %vm360_vm0, %v2032_v41, -inf  ;;  %5021 = vmatmul.msk.bf16.vlgmr.msrb.gmra.mxu1 %vm624_vm2, %v5210_v46  ;;  %v2157_v39 = vmax.f32 %v2155_v31, %v2156_v7  ;;  %v6245_v7 = vpop.trf.xlu1 }
 0x229   : > { %v2154_v61 = vmax.f32 %v2152_v43, %v2153_v50  ;;  %5023 = vmatmul.msk.bf16.vlgmr.msrb.gmra.mxu2 %vm624_vm2, %v5214_v22  ;;  %1566 = vmatpush.bf16.msrb.mxu1 %v1557_v54  ;;  %v6234_v22 = vpop.trf.xlu2 }
 0x22a   : > { %1610 = vmatpush.bf16.msrb.mxu2 %v1601_v5  ;;  %v2022_v5 = vmul.f32 %v6197_v12, %v649_v0 }
 0x22b   : > { %v2372_v48 = vsub.f32 %v2020_v17, %v2154_v61  ;;  %v2376_v18 = vsub.f32 %v2024_v35, %v2154_v61  ;;  %v2380_v19 = vsub.f32 %v2028_v30, %v2154_v61  ;;  %v2384_v46 = vsub.f32 %v2032_v41, %v2154_v61  ;;  %v734_v25 = vpop.f32.mrf.mxu3  ;;  %v6230_v27 = vpop.f32.mrf.mxu2 }
 0x22c   : > { %v2029_v36 = vmul.f32 %v6197_v12, %v734_v25 }
 0x22d   : > { %v2500_v43 = vmul.f32 1.442695, %v2372_v48  ;;  %v2516_v50 = vmul.f32 1.442695, %v2380_v19  ;;  %v778_v54 = vpop.f32.mrf.mxu1  ;;  %v2508_v30 = vmul.f32 1.442695, %v2376_v18  ;;  %v6250_v19 = vmul.f32 %v6197_v12, %v695_v24  ;;  %v6252_v18 = vpop.trf.xlu0 }
 0x22e   : > { %v2158_v35 = vsel %vm360_vm0, %v2029_v36, -inf  ;;  %v2033_v17 = vmul.f32 %v6197_v12, %v778_v54  ;;  %v2524_v41 = vmul.f32 1.442695, %v2384_v46  ;;  %v2163_v48 = vsel %vm360_vm0, %v6237_v10, -inf }
 0x22f   : > { %5255 = vpow2.f32 %v2500_v43  ;;  %v2159_v61 = vmax.f32 %v2157_v39, %v2158_v35  ;;  %v2162_v43 = vsel %vm360_vm0, %v2022_v5, -inf }
 0x230   : > { %v2160_v25 = vsel %vm360_vm0, %v2033_v17, -inf  ;;  %5020 = vmatmul.msk.bf16.gmra.mxu3 %vm624_vm2, %v6191_v62  ;;  %5257 = vpow2.f32 %v2516_v50  ;;  %v6260_v50 = vmul.f32 %v6197_v12, %v6199_v34  ;;  %v2164_v35 = vmax.f32 %v2162_v43, %v2163_v48 }
 0x231   : > { %v2161_v8 = vmax.f32 %v2159_v61, %v2160_v25  ;;  %5259 = vpow2.f32 %v2508_v30  ;;  %v2170_v61 = vsel %vm360_vm0, %v6250_v19, -inf  ;;  %v5216_v20 = vpop.trf.xlu2 }
 0x232   : > { %5261 = vpow2.f32 %v2524_v41 }
 0x233   : > { %v2373_v0 = vsub.f32 %v2021_v45, %v2161_v8  ;;  %v2381_v46 = vsub.f32 %v2029_v36, %v2161_v8  ;;  %v737_v31 = vpop.f32.mrf.mxu3  ;;  %v6254_v39 = vpop.f32.mrf.mxu2  ;;  %v2377_v62 = vsub.f32 %v6212_v38, %v2161_v8  ;;  %v2385_v30 = vsub.f32 %v2033_v17, %v2161_v8 }
 0x234   : > { %v2030_v24 = vmul.f32 %v6197_v12, %v737_v31  ;;  %v2169_v8 = vsel %vm360_vm0, %v6260_v50, -inf }
 0x235   : > { %v6263_v54 = vpop.eup %5255  ;;  %v2502_v41 = vmul.f32 1.442695, %v2373_v0  ;;  %v2518_v45 = vmul.f32 1.442695, %v2381_v46  ;;  %v781_v36 = vpop.f32.mrf.mxu1  ;;  %v2510_v48 = vmul.f32 1.442695, %v2377_v62 }
 0x236   : > { %v2165_v38 = vsel %vm360_vm0, %v2030_v24, -inf  ;;  %v2034_v25 = vmul.f32 %v6197_v12, %v781_v36  ;;  %v6269_v33 = vpop.eup %5257  ;;  %v2756_v34 = vsel %vm360_vm0, %v6263_v54, 0.0  ;;  %v2526_v43 = vmul.f32 1.442695, %v2385_v30  ;;  %v6297_v13 = vpop.trf.xlu0 }
 0x237   : > { %5263 = vpow2.f32 %v2502_v41  ;;  %v2166_v31 = vmax.f32 %v2164_v35, %v2165_v38  ;;  %v6273_v17 = vpop.eup %5259  ;;  %v2171_v35 = vmax.f32 %v2169_v8, %v2170_v61  ;;  %v6285_v41 = vpop.trf.xlu1  ;;  %v2759_v44 = vsel %vm360_vm0, %v6269_v33, 0.0 }
 0x238   : > { %v2167_v0 = vsel %vm360_vm0, %v2034_v25, -inf  ;;  %5022 = vmatmul.msk.bf16.gmra.mxu1 %vm624_vm2, %v6195_v11  ;;  %v6280_v46 = vpop.eup %5261  ;;  %5265 = vpow2.f32 %v2518_v45  ;;  %v2757_v62 = vsel %vm360_vm0, %v6273_v17, 0.0 }
 0x239   : > { %v2168_v36 = vmax.f32 %v2166_v31, %v2167_v0  ;;  %5024 = vmatmul.msk.bf16.gmra.mxu2 %vm624_vm2, %v5216_v20  ;;  %v2758_v38 = vadd.f32 %v2757_v62, %v2756_v34  ;;  %5267 = vpow2.f32 %v2510_v48  ;;  %v2761_v20 = vsel %vm360_vm0, %v6280_v46, 0.0 }
 0x23a   : > { %5269 = vpow2.f32 %v2526_v43 }
 0x23b   : > { %v2374_v37 = vsub.f32 %v2022_v5, %v2168_v36  ;;  %v2378_v11 = vsub.f32 %v6237_v10, %v2168_v36  ;;  %v2386_v23 = vsub.f32 %v2034_v25, %v2168_v36  ;;  %v739_v45 = vpop.f32.mrf.mxu3  ;;  %v6290_v30 = vpop.f32.mrf.mxu2  ;;  %v2382_v31 = vsub.f32 %v2030_v24, %v2168_v36 }
 0x23c   : > { %v2031_v61 = vmul.f32 %v6197_v12, %v739_v45  ;;  %v2760_v8 = vadd.f32 %v2759_v44, %v2758_v38 }
 0x23d   : > { %v6295_v0 = vpop.eup %5263  ;;  %v2504_v34 = vmul.f32 1.442695, %v2374_v37  ;;  %v2512_v48 = vmul.f32 1.442695, %v2378_v11  ;;  %v2528_v62 = vmul.f32 1.442695, %v2386_v23  ;;  %v783_v5 = vpop.f32.mrf.mxu1 }
 0x23e   : > { %v2172_v10 = vsel %vm360_vm0, %v2031_v61, -inf  ;;  %v6301_v25 = vmul.f32 %v6197_v12, %v783_v5  ;;  %v2762_v21 = vadd.f32 %v2761_v20, %v2760_v8  ;;  %v6303_v15 = vpop.eup %5265  ;;  %v2763_v44 = vsel %vm360_vm0, %v6295_v0, 0.0 }
 0x23f   : > { %5271 = vpow2.f32 %v2504_v34  ;;  %v2173_v24 = vmax.f32 %v2171_v35, %v2172_v10  ;;  %v6307_v43 = vpop.eup %5267  ;;  %v1645_v37 = vsel %vm631_vm1, %v6092_v49, 0  ;;  %v2520_v36 = vmul.f32 1.442695, %v2382_v31 }
 0x240   : > { %5273 = vpow2.f32 %v2512_v48  ;;  %v2174_v23 = vsel %vm360_vm0, %v6301_v25, -inf  ;;  %5025 = vmatmul.msk.bf16.vlgmr.msrb.gmra.mxu3 %vm624_vm2, %v6234_v22  ;;  %v2764_v35 = vsel %vm360_vm0, %v6307_v43, 0.0  ;;  %v6317_v45 = vpop.eup %5269  ;;  %v2766_v20 = vsel %vm360_vm0, %v6303_v15, 0.0 }
 0x241   : > { %5275 = vpow2.f32 %v2528_v62  ;;  %v2175_v38 = vmax.f32 %v2173_v24, %v2174_v23  ;;  %1654 = vmatpush.bf16.msrb.mxu3 %v1645_v37  ;;  %v2765_v11 = vadd.f32 %v2764_v35, %v2763_v44  ;;  %v6326_v31 = vmul.f32 %v6197_v12, %v6230_v27  ;;  %v6333_v44 = vpop.trf.xlu1 }
 0x242   : > { %5277 = vrcp.f32 %v2762_v21  ;;  %v2768_v23 = vsel %vm360_vm0, %v6317_v45, 0.0  ;;  %v1689_v37 = vsel %vm631_vm1, %v6102_v63, 0 }
 0x243   : > { %v2375_v8 = vsub.f32 %v6260_v50, %v2175_v38  ;;  %v6322_v22 = vpop.f32.mrf.mxu2  ;;  %v864_v34 = vpop.f32.mrf.mxu3  ;;  %5279 = vpow2.f32 %v2520_v36  ;;  %v2767_v21 = vadd.f32 %v2766_v20, %v2765_v11  ;;  %v2383_v5 = vsub.f32 %v2031_v61, %v2175_v38 }
 0x244   : > { %v6329_v48 = vmul.f32 %v6197_v12, %v864_v34  ;;  %v2379_v36 = vsub.f32 %v6250_v19, %v2175_v38  ;;  %v6353_v34 = vpop.trf.xlu0  ;;  %v2176_v63 = vsel %vm360_vm0, %v6326_v31, -inf  ;;  %v2387_v19 = vsub.f32 %v6301_v25, %v2175_v38 }
 0x245   : > { %v6331_v62 = vpop.eup %5271  ;;  %v2506_v10 = vmul.f32 1.442695, %v2375_v8  ;;  %v908_v24 = vpop.f32.mrf.mxu1  ;;  %v2769_v8 = vadd.f32 %v2768_v23, %v2767_v21 }
 0x246   : > { %v6335_v50 = vpop.eup %5273  ;;  %v2770_v27 = vsel %vm360_vm0, %v6331_v62, 0.0  ;;  %v2177_v11 = vsel %vm360_vm0, %v6329_v48, -inf  ;;  %v6351_v20 = vmul.f32 %v6197_v12, %v908_v24  ;;  %v2522_v24 = vmul.f32 1.442695, %v2383_v5 }
 0x247   : > { %v6344_v35 = vpop.eup %5275  ;;  %v2771_v61 = vsel %vm360_vm0, %v6335_v50, 0.0  ;;  %5281 = vpow2.f32 %v2506_v10  ;;  %v2178_v25 = vmax.f32 %v2176_v63, %v2177_v11  ;;  %v2514_v38 = vmul.f32 1.442695, %v2379_v36 }
 0x248   : > { %v5278_v49 = vpop.eup %5277  ;;  %v2772_v4 = vadd.f32 %v2771_v61, %v2770_v27  ;;  %5027 = vmatmul.msk.bf16.vlgmr.msra.gmra.mxu1 %vm624_vm2, %v6202_v16  ;;  %5283 = vrcp.f32 %v2769_v8  ;;  %v2179_v5 = vsel %vm360_vm0, %v6351_v20, -inf  ;;  %v2530_v63 = vmul.f32 1.442695, %v2387_v19  ;;  %v5217_v61 = vpop.trf.xlu2 }
 0x249   : > { %v6362_v59 = vpop.eup %5279  ;;  %v6365_v21 = vmul.f32 %v5278_v49, %v6273_v17  ;;  %v6368_v23 = vmul.f32 %v5278_v49, %v6280_v46  ;;  %5029 = vmatmul.msk.bf16.vlgmr.msra.gmra.mxu2 %vm624_vm2, %v6223_v58  ;;  %1698 = vmatpush.bf16.msra.mxu1 %v1689_v37  ;;  %5285 = vpow2.f32 %v2514_v38  ;;  %v6383_v10 = vmul.f32 %v5278_v49, %v6263_v54 }
 0x24a   : > { %1742 = vmatpush.bf16.msra.mxu2 %v1733_v6  ;;  %v2773_v16 = vsel %vm360_vm0, %v6362_v59, 0.0  ;;  %v2775_v6 = vsel %vm360_vm0, %v6344_v35, 0.0  ;;  %5287 = vpow2.f32 %v2522_v24  ;;  %v6395_v19 = vmul.f32 %v6197_v12, %v6254_v39 }
 0x24b   : > { %3172 = vrot.lane.b32.xlu1 %v6365_v21, %s5742_s11  ;;  %3428 = vrot.lane.b32.xlu2 %v6368_v23, %s5743_s15  ;;  %v866_v58 = vpop.f32.mrf.mxu3  ;;  %v2774_v17 = vadd.f32 %v2773_v16, %v2772_v4  ;;  %9702 = vst [vmem:[#allocation47_spill] sm:$0xff] %v6383_v10  ;;  %v2180_v4 = vmax.f32 %v2178_v25, %v2179_v5  ;;  %v6403_v16 = vsel %vm631_vm1, %v6114_v14, 0 }
 0x24c   : > { %v952_v46 = vpop.f32.mrf.mxu2  ;;  %v6386_v27 = vmul.f32 %v6197_v12, %v866_v58  ;;  %v6409_v25 = vmul.f32 %v6197_v12, %v6290_v30  ;;  %v6414_v39 = vmul.f32 %v5278_v49, %v6269_v33 }
 0x24d   : > { %v6389_v37 = vmul.f32 %v6197_v12, %v952_v46  ;;  %v910_v36 = vpop.f32.mrf.mxu1  ;;  %v2776_v11 = vadd.f32 %v2775_v6, %v2774_v17  ;;  %v6391_v8 = vpop.eup %5281 }
 0x24e   : > { %v6405_v38 = vpop.eup %5283  ;;  %v2184_v58 = vsel %vm360_vm0, %v6386_v27, -inf  ;;  %v6420_v17 = vmul.f32 %v6197_v12, %v910_v36  ;;  %v2777_v36 = vsel %vm360_vm0, %v6391_v8, 0.0 }
 0x24f   : > { %v2181_v54 = vsel %vm360_vm0, %v6389_v37, -inf  ;;  %v6399_v24 = vpop.trf.xlu1  ;;  %5289 = vrcp.f32 %v2776_v11  ;;  %v6424_v6 = vmul.f32 %v6405_v38, %v6307_v43  ;;  %v6428_v30 = vmul.f32 %v6405_v38, %v6303_v15  ;;  %v6432_v33 = vpop.eup %5285 }
 0x250   : > { %9703 = vst [vmem:[#allocation48_spill] sm:$0xff] %v6399_v24  ;;  %5291 = vpow2.f32 %v2530_v63  ;;  %v6411_v5 = vmax.f32 %v2180_v4, %v2181_v54  ;;  %5026 = vmatmul.msk.bf16.gmra.mxu3 %vm624_vm2, %v5217_v61  ;;  %v6430_v63 = vpop.trf.xlu0  ;;  %v6442_v43 = vsel %vm631_vm1, %v6148_v1, 0  ;;  %v6444_v61 = vpop.eup %5287  ;;  %v2183_v15 = vsel %vm360_vm0, %v6395_v19, -inf }
 0x251   : > { %v6456_v11 = vsel %vm631_vm1, %v6138_v51, 0  ;;  %v6460_v4 = vsel %vm631_vm1, %v6142_v57, 0  ;;  %v2190_v54 = vsel %vm360_vm0, %v6409_v25, -inf  ;;  %v2185_v1 = vmax.f32 %v2183_v15, %v2184_v58  ;;  %3302 = vrot.lane.b32.xlu0 %v6428_v30, %s5744_s22 }
 0x252   : > { %v2388_v49 = vsub.f32 %v6326_v31, %v6411_v5  ;;  %v2392_v46 = vsub.f32 %v6329_v48, %v6411_v5  ;;  %v2778_v48 = vsel %vm360_vm0, %v6432_v33, 0.0  ;;  %v2186_v28 = vsel %vm360_vm0, %v6420_v17, -inf }
 0x253   : > { %3300 = vrot.lane.b32.xlu1 %v6414_v39, %s5744_s22  ;;  %3174 = vrot.lane.b32.xlu2 %v6424_v6, %s5742_s11  ;;  %v869_v31 = vpop.f32.mrf.mxu3  ;;  %v2779_v32 = vadd.f32 %v2778_v48, %v2777_v36  ;;  %v6482_v15 = vmul.f32 %v6197_v12, %v6322_v22  ;;  %v2187_v53 = vmax.f32 %v2185_v1, %v2186_v28 }
 0x254   : > { %v2532_v14 = vmul.f32 1.442695, %v2388_v49  ;;  %v6467_v3 = vmul.f32 %v6197_v12, %v869_v31  ;;  %v954_v56 = vpop.f32.mrf.mxu2  ;;  %v2540_v51 = vmul.f32 1.442695, %v2392_v46  ;;  %v2780_v49 = vsel %vm360_vm0, %v6444_v61, 0.0 }
 0x255   : > { %v6469_v52 = vpop.eup %5289  ;;  %v6474_v57 = vmul.f32 %v6197_v12, %v954_v56  ;;  %v913_v26 = vpop.f32.mrf.mxu1  ;;  %v2396_v46 = vsub.f32 %v6351_v20, %v6411_v5  ;;  %v2400_v31 = vsub.f32 %v6389_v37, %v6411_v5  ;;  %v3025_v20 = vmul.f32 %v6405_v38, %v6317_v45 }
 0x256   : > { %v6476_v58 = vpop.eup %5291  ;;  %v2191_v56 = vsel %vm360_vm0, %v6467_v3, -inf  ;;  %v6493_v48 = vmul.f32 %v6197_v12, %v913_v26  ;;  %v6497_v55 = vmul.f32 %v6469_v52, %v6362_v59  ;;  %5293 = vpow2.f32 %v2532_v14 }
 0x257   : > { %v2188_v36 = vsel %vm360_vm0, %v6474_v57, -inf  ;;  %v5240_v22 = vpop.trf.xlu1  ;;  %v6503_v37 = vmul.f32 %v6469_v52, %v6335_v50  ;;  %v3666_v26 = vpack.c.bf16 %v6368_v23, %v6368_v23  ;;  %5295 = vpow2.f32 %v2540_v51 }
 0x258   : > { %5028 = vmatmul.msk.bf16.gmra.mxu1 %vm624_vm2, %v6252_v18  ;;  %5045 = vmatmul.msk.bf16.vlgmr.msrb.gmra.mxu0 %vm624_vm2, %v5240_v22  ;;  %v2781_v28 = vadd.f32 %v2780_v49, %v2779_v32  ;;  %v3654_v59 = vpack.c.bf16 %v6383_v10, %v6383_v10  ;;  %v2782_v14 = vsel %vm360_vm0, %v6476_v58, 0.0  ;;  %v2556_v1 = vmul.f32 1.442695, %v2400_v31  ;;  %v6518_v18 = vpop.trf.xlu2  ;;  %v6529_v5 = vpop.trf.xlu0 }
 0x259   : > { %5030 = vmatmul.msk.bf16.gmra.mxu2 %vm624_vm2, %v6297_v13  ;;  %v2192_v45 = vmax.f32 %v2190_v54, %v2191_v56  ;;  %v6516_v50 = vmax.f32 %v2187_v53, %v2188_v36  ;;  %v6522_v23 = vsel %vm360_vm0, %v6482_v15, -inf  ;;  %v2193_v13 = vsel %vm360_vm0, %v6493_v48, -inf  ;;  %3176 = vrot.lane.b32.xlu0 %v6503_v37, %s5742_s11 }
 0x25a   : > { %v2783_v51 = vadd.f32 %v2782_v14, %v2781_v28  ;;  %v2548_v53 = vmul.f32 1.442695, %v2396_v46  ;;  %v3667_v31 = vpack.c.bf16 %v3025_v20, %v3025_v20  ;;  %v3026_v46 = vmul.f32 %v6469_v52, %v6344_v35 }
 0x25b   : > { %3430 = vrot.lane.b32.xlu1 %v3025_v20, %s5743_s15  ;;  %3304 = vrot.lane.b32.xlu2 %v6497_v55, %s5744_s22  ;;  %v871_v32 = vpop.f32.mrf.mxu3  ;;  %v6543_v14 = vunpack.c.l.b16 %v3666_v26  ;;  %v2389_v20 = vsub.f32 %v6395_v19, %v6516_v50  ;;  %v2194_v49 = vmax.f32 %v2192_v45, %v2193_v13  ;;  %v6549_v9 = vunpack.c.l.b16 %v3654_v59 }
 0x25c   : > { %v6538_v56 = vmul.f32 %v6197_v12, %v871_v32  ;;  %v957_v36 = vpop.f32.mrf.mxu2  ;;  %5297 = vrcp.f32 %v2783_v51  ;;  %v6545_v54 = vpop.eup %5293  ;;  %v2401_v45 = vsub.f32 %v6474_v57, %v6516_v50 }
 0x25d   : > { %v2050_v22 = vmul.f32 %v6197_v12, %v957_v36  ;;  %v915_v28 = vpop.f32.mrf.mxu1  ;;  %5299 = vpow2.f32 %v2556_v1  ;;  %v6551_v32 = vpop.eup %5295  ;;  %v2397_v36 = vsub.f32 %v6420_v17, %v6516_v50  ;;  %v6569_v17 = vunpack.c.l.b16 %v3667_v31 }
 0x25e   : > { %v2198_v51 = vsel %vm360_vm0, %v6538_v56, -inf  ;;  %v6558_v35 = vmul.f32 %v6197_v12, %v915_v28  ;;  %5301 = vpow2.f32 %v2548_v53  ;;  %v3668_v28 = vpack.c.bf16 %v3026_v46, %v3026_v46 }
 0x25f   : > { %v6560_v26 = vpop.trf.xlu1  ;;  %v2195_v1 = vsel %vm360_vm0, %v2050_v22, -inf  ;;  %v2784_v59 = vsel %vm360_vm0, %v6545_v54, 0.0  ;;  %v2785_v19 = vsel %vm360_vm0, %v6551_v32, 0.0  ;;  %v2199_v31 = vmax.f32 %v6522_v23, %v2198_v51 }
 0x260   : > { %9704 = vst [vmem:[#allocation49_spill] sm:$0xff] %v6560_v26  ;;  %5031 = vmatmul.msk.bf16.vlgmr.msra.gmra.mxu3 %vm624_vm2, %v6216_v42  ;;  %v6575_v53 = vmax.f32 %v2194_v49, %v2195_v1  ;;  %v2534_v42 = vmul.f32 1.442695, %v2389_v20  ;;  %v2550_v57 = vmul.f32 1.442695, %v2397_v36  ;;  %v3660_v20 = vpack.c.bf16 %v6503_v37, %v6503_v37  ;;  %v6605_v51 = vpop.trf.xlu2  ;;  %v6612_v24 = vpop.trf.xlu0 }
 0x261   : > { %1786 = vmatpush.bf16.msra.mxu3 %v6403_v16  ;;  %v2200_v16 = vsel %vm360_vm0, %v6558_v35, -inf  ;;  %3432 = vrot.lane.b32.xlu0 %v3026_v46, %s5743_s15  ;;  %v2786_v10 = vadd.f32 %v2785_v19, %v2784_v59  ;;  %v2558_v26 = vmul.f32 1.442695, %v2401_v45  ;;  %v3881_v29 = vunpack.c.l.b16 %v3668_v28 }
 0x262   : > { %v6583_v2 = vpop.eup %5297  ;;  %v2390_v13 = vsub.f32 %v6409_v25, %v6575_v53  ;;  %v2398_v49 = vsub.f32 %v6493_v48, %v6575_v53  ;;  %v2402_v23 = vsub.f32 %v2050_v22, %v6575_v53  ;;  %5303 = vpow2.f32 %v2534_v42 }
 0x263   : > { %v6591_v1 = vpop.f32.mrf.mxu3  ;;  %v6593_v47 = vpop.eup %5299  ;;  %v6600_v36 = vmul.f32 %v6583_v2, %v6432_v33  ;;  %v3027_v25 = vmul.f32 %v6583_v2, %v6476_v58  ;;  %v2201_v60 = vmax.f32 %v2199_v31, %v2200_v16  ;;  %5305 = vpow2.f32 %v2550_v57 }
 0x264   : > { %v959_v48 = vpop.f32.mrf.mxu2  ;;  %v6607_v40 = vpop.eup %5301  ;;  %v2536_v33 = vmul.f32 1.442695, %v2390_v13  ;;  %v2789_v46 = vsel %vm360_vm0, %v6593_v47, 0.0  ;;  %v2552_v19 = vmul.f32 1.442695, %v2398_v49  ;;  %5307 = vpow2.f32 %v2558_v26 }
 0x265   : > { %v6610_v37 = vmul.f32 %v6197_v12, %v959_v48  ;;  %v1040_v22 = vpop.f32.mrf.mxu1  ;;  %3178 = vrot.lane.b32.xlu1 %v6600_v36, %s5742_s11  ;;  %v3669_v58 = vpack.c.bf16 %v3027_v25, %v3027_v25  ;;  %3434 = vrot.lane.b32.xlu2 %v3027_v25, %s5743_s15  ;;  %v2560_v28 = vmul.f32 1.442695, %v2402_v23  ;;  %v2787_v13 = vsel %vm360_vm0, %v6607_v40, 0.0 }
 0x266   : > { %v2788_v31 = vadd.f32 %v2787_v13, %v2786_v10  ;;  %v3883_v57 = vpack.c.b16 %v6569_v17, %v6543_v14  ;;  %5309 = vpow2.f32 %v2536_v33  ;;  %v9706_v16 = vpack.c.bf16 %v6497_v55, %v6497_v55 }
 0x267   : > { %v2202_v59 = vsel %vm360_vm0, %v6610_v37, -inf  ;;  %v5242_v45 = vpop.trf.xlu1  ;;  %v3882_v48 = vunpack.c.l.b16 %v3669_v58  ;;  %5311 = vpow2.f32 %v2552_v19  ;;  %v6661_v25 = vunpack.c.l.b16 %v3660_v20 }
 0x268   : > { %v6621_v42 = vmax.f32 %v2201_v60, %v2202_v59  ;;  %5033 = vmatmul.msk.bf16.vlgmr.msrb.gmra.mxu1 %vm624_vm2, %v6245_v7  ;;  %5046 = vmatmul.msk.bf16.gmra.mxu0 %vm624_vm2, %v5242_v45  ;;  %v2393_v60 = vsub.f32 %v6386_v27, %v6516_v50  ;;  %v2394_v7 = vsub.f32 %v6467_v3, %v6575_v53  ;;  %v6646_v50 = vpop.eup %5303  ;;  %5313 = vpow2.f32 %v2560_v28 }
 0x269   : > { %5035 = vmatmul.msk.bf16.vlgmr.msrb.gmra.mxu2 %vm624_vm2, %v6518_v18  ;;  %1874 = vmatpush.bf16.msrb.mxu1 %v6442_v43  ;;  %v3884_v10 = vpack.c.b16 %v3882_v48, %v3881_v29  ;;  %v6644_v43 = vmul.f32 %v6583_v2, %v6444_v61  ;;  %v2790_v27 = vadd.f32 %v2789_v46, %v2788_v31  ;;  %v6659_v23 = vunpack.c.l.b16 %v9706_v16 }
 0x26a   : > { %v2391_v49 = vsub.f32 %v6482_v15, %v6621_v42  ;;  %v2395_v26 = vsub.f32 %v6538_v56, %v6621_v42  ;;  %1918 = vmatpush.bf16.msrb.mxu2 %v6456_v11  ;;  %9705 = vst [vmem:[#allocation50_spill] sm:$0xff] %v6646_v50  ;;  %v2403_v3 = vsub.f32 %v6610_v37, %v6621_v42  ;;  %v6650_v56 = vpop.eup %5305  ;;  %v2542_v53 = vmul.f32 1.442695, %v2393_v60 }
 0x26b   : > { %v998_v18 = vpop.f32.mrf.mxu3  ;;  %v6653_v11 = vmul.f32 %v6197_v12, %v1040_v22  ;;  %v3891_v29 = vsel %vm360_vm0, %v3884_v10, 0  ;;  %5315 = vrcp.f32 %v2790_v27  ;;  %v6665_v37 = vmul.f32 %v6197_v12, %v6591_v1  ;;  %v6669_v22 = vpop.trf.xlu2 }
 0x26c   : > { %v2538_v15 = vmul.f32 1.442695, %v2391_v49  ;;  %v2546_v14 = vmul.f32 1.442695, %v2395_v26  ;;  %v1084_v17 = vpop.f32.mrf.mxu2  ;;  %3899 = vmatpush.bf16.xpose.msrb.mxu0 %v3891_v29  ;;  %v6671_v33 = vpop.eup %5307  ;;  %v3888_v55 = vsel %vm360_vm0, %v3883_v57, 0  ;;  %v6678_v46 = vmul.f32 %v6469_v52, %v6331_v62 }
 0x26d   : > { %v1042_v61 = vpop.f32.mrf.mxu1  ;;  %3306 = vrot.lane.b32.xlu1 %v6644_v43, %s5744_s22  ;;  %v2544_v20 = vmul.f32 1.442695, %v2394_v7  ;;  %v6680_v1 = vpop.eup %5309  ;;  %v3661_v19 = vpack.c.bf16 %v6600_v36, %v6600_v36  ;;  %v2562_v59 = vmul.f32 1.442695, %v2403_v3  ;;  %v6688_v45 = vmul.f32 %v6405_v38, %v6295_v0 }
 0x26e   : > { %5317 = vpow2.f32 %v2538_v15  ;;  %v9709_v28 = vpack.c.bf16 %v6365_v21, %v6365_v21  ;;  %v6695_v52 = vpop.eup %5311  ;;  %v2205_v62 = vsel %vm360_vm0, %v6653_v11, -inf  ;;  %v6700_v36 = vmul.f32 %v6197_v12, %v1084_v17 }
 0x26f   : > { %5319 = vpow2.f32 %v2546_v14  ;;  %v6674_v58 = vpop.trf.xlu0  ;;  %9708 = vst [vmem:[#allocation52_spill] sm:$0xff] %v6688_v45  ;;  %v6704_v13 = vpop.eup %5313  ;;  %v2794_v0 = vsel %vm360_vm0, %v6650_v56, 0.0  ;;  %v2204_v21 = vsel %vm360_vm0, %v6665_v37, -inf  ;;  %v6711_v38 = vmul.f32 %v6197_v12, %v1042_v61 }
 0x270   : > { %9707 = vst [vmem:[#allocation51_spill] sm:$0xff] %v6674_v58  ;;  %5032 = vmatmul.msk.bf16.gmra.mxu3 %vm624_vm2, %v6285_v41  ;;  %v6693_v48 = vunpack.c.l.b16 %v9709_v28  ;;  %5321 = vpow2.f32 %v2542_v53  ;;  %v2399_v41 = vsub.f32 %v6558_v35, %v6621_v42  ;;  %v2796_v57 = vsel %vm360_vm0, %v6671_v33, 0.0 }
 0x271   : > { %5323 = vpow2.f32 %v2544_v20  ;;  %v6713_v31 = vpop.eup %5315  ;;  %v3665_v35 = vpack.c.bf16 %v6644_v43, %v6644_v43  ;;  %v6720_v42 = vmul.f32 %v6197_v12, %v998_v18  ;;  %v6724_v26 = vunpack.c.l.b16 %v3661_v19 }
 0x272   : > { %v2554_v7 = vmul.f32 1.442695, %v2399_v41  ;;  %5325 = vpow2.f32 %v2562_v59  ;;  %v2206_v10 = vmax.f32 %v2204_v21, %v2205_v62  ;;  %v6728_v27 = vmul.f32 %v6713_v31, %v6607_v40 }
 0x273   : > { %v1001_v60 = vpop.f32.mrf.mxu3  ;;  %v2207_v43 = vsel %vm360_vm0, %v6700_v36, -inf  ;;  %v6736_v18 = vmul.f32 %v6713_v31, %v6551_v32  ;;  %v2791_v14 = vsel %vm360_vm0, %v6646_v50, 0.0  ;;  %v6748_v61 = vsel %vm360_vm0, %v6711_v38, -inf }
 0x274   : > { %v6722_v49 = vpop.eup %5317  ;;  %v1086_v3 = vpop.f32.mrf.mxu2  ;;  %5327 = vpow2.f32 %v2554_v7  ;;  %3308 = vrot.lane.b32.xlu0 %v6728_v27, %s5744_s22  ;;  %3900 = vmatpush.bf16.xpose.msrb.mxu0 %v3888_v55  ;;  %v3655_v32 = vpack.c.bf16 %v6688_v45, %v6688_v45  ;;  %v2798_v16 = vsel %vm360_vm0, %v6680_v1, 0.0  ;;  %v6756_v20 = vunpack.c.l.b16 %v3665_v35 }
 0x275   : > { %v6730_v15 = vpop.eup %5319  ;;  %v1045_v17 = vpop.f32.mrf.mxu1  ;;  %v2805_v29 = vsel %vm360_vm0, %v6722_v49, 0.0  ;;  %v2211_v19 = vsel %vm360_vm0, %v6720_v42, -inf  ;;  %3180 = vrot.lane.b32.xlu1 %v6736_v18, %s5742_s11  ;;  %v6764_v55 = vmul.f32 %v6583_v2, %v6391_v8  ;;  %v2801_v62 = vsel %vm360_vm0, %v6695_v52, 0.0 }
 0x276   : > { %v2806_v40 = vsel %vm360_vm0, %v6730_v15, 0.0  ;;  %v6752_v53 = vpop.eup %5321  ;;  %v2803_v41 = vsel %vm360_vm0, %v6704_v13, 0.0  ;;  %v6772_v21 = vmax.f32 %v2206_v10, %v2207_v43  ;;  %v6778_v7 = vpop.trf.xlu2  ;;  %v2213_v2 = vmax.f32 %v2211_v19, %v6748_v61 }
 0x277   : > { %v5250_v59 = vpop.trf.xlu0  ;;  %9710 = vst [vmem:[#allocation53_spill] sm:$0xff] %v6764_v55  ;;  %v6766_v28 = vpop.eup %5323  ;;  %v2792_v35 = vsel %vm360_vm0, %v6752_v53, 0.0  ;;  %v2807_v43 = vadd.f32 %v2806_v40, %v2805_v29  ;;  %v3822_v50 = vpack.c.b16 %v6724_v26, %v6661_v25  ;;  %v3657_v29 = vpack.c.bf16 %v6764_v55, %v6764_v55 }
 0x278   : > { %5034 = vmatmul.msk.bf16.gmra.mxu1 %vm624_vm2, %v6333_v44  ;;  %5053 = vmatmul.msk.bf16.vlgmr.msra.gmra.mxu0 %vm624_vm2, %v5250_v59  ;;  %v2793_v8 = vadd.f32 %v2792_v35, %v2791_v14  ;;  %v2799_v10 = vsel %vm360_vm0, %v6766_v28, 0.0  ;;  %v6786_v45 = vpop.eup %5325  ;;  %v3656_v44 = vpack.c.bf16 %v6678_v46, %v6678_v46  ;;  %v6792_v59 = vunpack.c.l.b16 %v3655_v32 }
 0x279   : > { %5036 = vmatmul.msk.bf16.gmra.mxu2 %vm624_vm2, %v6669_v22  ;;  %v2800_v58 = vadd.f32 %v2799_v10, %v2798_v16  ;;  %v6797_v14 = vmul.f32 %v6197_v12, %v1086_v3  ;;  %v9711_v40 = vpack.c.bf16 %v6424_v6, %v6424_v6  ;;  %v6807_v35 = vmul.f32 %v6197_v12, %v1045_v17 }
 0x27a   : > { %v6794_v61 = vpop.eup %5327  ;;  %v2795_v22 = vadd.f32 %v2794_v0, %v2793_v8  ;;  %v3040_v25 = vmul.f32 %v6713_v31, %v6593_v47  ;;  %v3790_v55 = vpack.c.b16 %v6792_v59, %v6549_v9  ;;  %v3853_v6 = vpack.c.b16 %v6756_v20, %v6659_v23 }
 0x27b   : > { %v1003_v19 = vpop.f32.mrf.mxu3  ;;  %v6804_v16 = vunpack.c.l.b16 %v9711_v40  ;;  %v2802_v32 = vadd.f32 %v2801_v62, %v2800_v58  ;;  %v2808_v0 = vsel %vm360_vm0, %v6794_v61, 0.0  ;;  %v2810_v17 = vsel %vm360_vm0, %v6786_v45, 0.0 }
 0x27c   : > { %v1089_v26 = vpop.f32.mrf.mxu2  ;;  %v2797_v3 = vadd.f32 %v2796_v57, %v2795_v22  ;;  %v2809_v10 = vadd.f32 %v2808_v0, %v2807_v43  ;;  %v6820_v40 = vmul.f32 %v6197_v12, %v1001_v60  ;;  %v3788_v58 = vunpack.c.l.b16 %v3656_v44 }
 0x27d   : > { %v1047_v8 = vpop.f32.mrf.mxu1  ;;  %v2804_v47 = vadd.f32 %v2803_v41, %v2802_v32  ;;  %v2214_v62 = vsel %vm360_vm0, %v6797_v14, -inf  ;;  %3436 = vrot.lane.b32.xlu1 %v3040_v25, %s5743_s15  ;;  %v3789_v43 = vunpack.c.l.b16 %v3657_v29  ;;  %v2219_v20 = vsel %vm360_vm0, %v6807_v35, -inf }
 0x27e   : > { %5329 = vrcp.f32 %v2797_v3  ;;  %v2811_v9 = vadd.f32 %v2810_v17, %v2809_v10  ;;  %v3682_v60 = vpack.c.bf16 %v3040_v25, %v3040_v25  ;;  %v6834_v41 = vmul.f32 %v6197_v12, %v1089_v26  ;;  %v6852_v0 = vpop.trf.xlu2 }
 0x27f   : > { %v6825_v57 = vpop.trf.xlu0  ;;  %5331 = vrcp.f32 %v2804_v47  ;;  %v6837_v44 = vmul.f32 %v6197_v12, %v1047_v8  ;;  %v9712_v59 = vpack.c.bf16 %v6414_v39, %v6414_v39  ;;  %v9713_v29 = vpack.c.bf16 %v6428_v30, %v6428_v30 }
 0x280   : > { %5037 = vmatmul.msk.bf16.vlgmr.msrb.gmra.mxu3 %vm624_vm2, %v6605_v51  ;;  %v3674_v32 = vpack.c.bf16 %v6736_v18, %v6736_v18  ;;  %v2218_v51 = vsel %vm360_vm0, %v6820_v40, -inf  ;;  %v6850_v26 = vmax.f32 %v2213_v2, %v2214_v62  ;;  %5333 = vrcp.f32 %v2811_v9 }
 0x281   : > { %1962 = vmatpush.bf16.msrb.mxu3 %v6460_v4  ;;  %v3848_v22 = vunpack.c.l.b16 %v9712_v59  ;;  %v3849_v25 = vunpack.c.l.b16 %v9713_v29  ;;  %v3829_v4 = vsel %vm360_vm0, %v3822_v50, 0  ;;  %v2220_v3 = vmax.f32 %v2218_v51, %v2219_v20 }
 0x282   : > { %v3791_v39 = vpack.c.b16 %v3789_v43, %v3788_v58  ;;  %v6856_v30 = vmul.f32 %v6197_v12, %v1003_v19  ;;  %v3821_v59 = vpack.c.b16 %v6804_v16, %v6693_v48  ;;  %v6861_v2 = vunpack.c.l.b16 %v3682_v60 }
 0x283   : > { %v1128_v8 = vpop.f32.mrf.mxu3  ;;  %v3852_v10 = vpack.c.b16 %v3849_v25, %v3848_v22  ;;  %v2221_v50 = vsel %vm360_vm0, %v6834_v41, -inf  ;;  %v6869_v58 = vsel %vm360_vm0, %v6837_v44, -inf  ;;  %v6872_v19 = vsel %vm360_vm0, %v3853_v6, 0 }
 0x284   : > { %v1091_v17 = vpop.f32.mrf.mxu2  ;;  %v2064_v47 = vmul.f32 %v6197_v12, %v1128_v8  ;;  %v6863_v62 = vpop.eup %5329  ;;  %v6876_v43 = vmul.f32 %v6713_v31, %v6545_v54  ;;  %v6920_v25 = vmax.f32 %v2220_v3, %v2221_v50 }
 0x285   : > { %v1172_v9 = vpop.f32.mrf.mxu1  ;;  %v6878_v48 = vpop.eup %5331  ;;  %v6882_v16 = vmul.f32 %v6863_v62, %v6752_v53  ;;  %v6886_v20 = vmul.f32 %v6863_v62, %v6671_v33  ;;  %v6889_v60 = vmul.f32 %v6197_v12, %v1091_v17  ;;  %v3798_v53 = vsel %vm360_vm0, %v3791_v39, 0 }
 0x286   : > { %9714 = vst [vmem:[#allocation54_spill] sm:$0xff] %v6876_v43  ;;  %v2209_v6 = vsel %vm360_vm0, %v2064_v47, -inf  ;;  %v6894_v22 = vmul.f32 %v6878_v48, %v6766_v28  ;;  %v6899_v31 = vmul.f32 %v6878_v48, %v6704_v13  ;;  %v6908_v33 = vsel %vm360_vm0, %v6856_v30, -inf  ;;  %v6918_v29 = vpop.eup %5333 }
 0x287   : > { %v2210_v54 = vmax.f32 %v6772_v21, %v2209_v6  ;;  %3182 = vrot.lane.b32.xlu2 %v6882_v16, %s5742_s11  ;;  %3438 = vrot.lane.b32.xlu0 %v6886_v20, %s5743_s15  ;;  %v6912_v28 = vmul.f32 %v6863_v62, %v6650_v56  ;;  %v3795_v21 = vsel %vm360_vm0, %v3790_v55, 0  ;;  %v6916_v13 = vsel %vm360_vm0, %v3821_v59, 0  ;;  %v5252_v39 = vpop.trf.xlu0 }
 0x288   : > { %v2227_v51 = vmax.f32 %v6908_v33, %v6869_v58  ;;  %3184 = vrot.lane.b32.xlu1 %v6894_v22, %s5742_s11  ;;  %v2228_v55 = vsel %vm360_vm0, %v6889_v60, -inf  ;;  %5039 = vmatmul.msk.bf16.vlgmr.msra.gmra.mxu1 %vm624_vm2, %v6353_v34  ;;  %v6935_v3 = vsel %vm360_vm0, %v3852_v10, 0  ;;  %v3684_v6 = vpack.c.bf16 %v6899_v31, %v6899_v31 }
 0x289   : > { %v2404_v8 = vsub.f32 %v6665_v37, %v2210_v54  ;;  %v2412_v17 = vsub.f32 %v6700_v36, %v2210_v54  ;;  %v2416_v59 = vsub.f32 %v2064_v47, %v2210_v54  ;;  %v3683_v37 = vpack.c.bf16 %v6886_v20, %v6886_v20  ;;  %5041 = vmatmul.msk.bf16.vlgmr.msra.gmra.mxu2 %vm624_vm2, %v6430_v63  ;;  %v6950_v20 = vpop.trf.xlu2 }
 0x28a   : > { %3806 = vmatpush.bf16.xpose.msra.mxu1 %v3798_v53  ;;  %v2408_v10 = vsub.f32 %v6653_v11, %v2210_v54  ;;  %v3039_v33 = vmul.f32 %v6918_v29, %v6794_v61  ;;  %3837 = vmatpush.bf16.xpose.msra.mxu2 %v3829_v4  ;;  %v6954_v63 = vmul.f32 %v6197_v12, %v1172_v9  ;;  %v6969_v9 = vunpack.c.l.b16 %v3674_v32 }
 0x28b   : > { %v2564_v58 = vmul.f32 1.442695, %v2404_v8  ;;  %v1130_v36 = vpop.f32.mrf.mxu3  ;;  %v2580_v47 = vmul.f32 1.442695, %v2412_v17  ;;  %5054 = vmatmul.msk.bf16.gmra.mxu0 %vm624_vm2, %v5252_v39  ;;  %v2588_v23 = vmul.f32 1.442695, %v2416_v59  ;;  %v3038_v53 = vmul.f32 %v6878_v48, %v6695_v52 }
 0x28c   : > { %v1216_v8 = vpop.f32.mrf.mxu2  ;;  %v2065_v34 = vmul.f32 %v6197_v12, %v1130_v36  ;;  %v3676_v54 = vpack.c.bf16 %v6894_v22, %v6894_v22  ;;  %v3043_v4 = vmul.f32 %v6918_v29, %v6786_v45  ;;  %v4005_v39 = vunpack.c.l.b16 %v3684_v6 }
 0x28d   : > { %v1174_v11 = vpop.f32.mrf.mxu1  ;;  %v6962_v61 = vmul.f32 %v6197_v12, %v1216_v8  ;;  %5335 = vpow2.f32 %v2564_v58  ;;  %v6974_v17 = vmul.f32 %v6918_v29, %v6730_v15  ;;  %v3681_v22 = vpack.c.bf16 %v3039_v33, %v3039_v33 }
 0x28e   : > { %v2216_v52 = vsel %vm360_vm0, %v2065_v34, -inf  ;;  %5337 = vpow2.f32 %v2580_v47  ;;  %v3685_v18 = vpack.c.bf16 %v3043_v4, %v3043_v4  ;;  %v6984_v32 = vsel %vm360_vm0, %v6954_v63, -inf }
 0x28f   : > { %3310 = vrot.lane.b32.xlu2 %v6912_v28, %s5744_s22  ;;  %3314 = vrot.lane.b32.xlu0 %v3039_v33, %s5744_s22  ;;  %v6980_v45 = vmax.f32 %v6850_v26, %v2216_v52  ;;  %5339 = vpow2.f32 %v2588_v23  ;;  %v3680_v59 = vpack.c.bf16 %v3038_v53, %v3038_v53  ;;  %v2572_v15 = vmul.f32 1.442695, %v2408_v10 }
 0x290   : > { %3312 = vrot.lane.b32.xlu1 %v3038_v53, %s5744_s22  ;;  %5038 = vmatmul.msk.bf16.gmra.mxu3 %vm624_vm2, %v6778_v7  ;;  %v6995_v23 = vsel %vm360_vm0, %v6962_v61, -inf  ;;  %v4006_v6 = vunpack.c.l.b16 %v3685_v18  ;;  %v3677_v47 = vpack.c.bf16 %v6974_v17, %v6974_v17  ;;  %v7001_v33 = vmul.f32 %v6197_v12, %v1174_v11 }
 0x291   : > { %v2405_v58 = vsub.f32 %v6720_v42, %v6980_v45  ;;  %v2409_v26 = vsub.f32 %v6711_v38, %v6980_v45  ;;  %v2417_v36 = vsub.f32 %v2065_v34, %v6980_v45  ;;  %5341 = vpow2.f32 %v2572_v15 }
 0x292   : > { %3807 = vmatpush.bf16.xpose.msra.mxu1 %v3795_v21  ;;  %v7003_v42 = vmax.f32 %v2227_v51, %v2228_v55  ;;  %v4008_v38 = vpack.c.b16 %v4006_v6, %v4005_v39  ;;  %3838 = vmatpush.bf16.xpose.msra.mxu2 %v6916_v13  ;;  %v4004_v53 = vunpack.c.l.b16 %v3683_v37  ;;  %v7008_v34 = vunpack.c.l.b16 %v3676_v54  ;;  %v7023_v54 = vpop.trf.xlu2 }
 0x293   : > { %v1133_v7 = vpop.f32.mrf.mxu3  ;;  %v2566_v10 = vmul.f32 1.442695, %v2405_v58  ;;  %v7006_v52 = vpop.eup %5335  ;;  %v2574_v18 = vmul.f32 1.442695, %v2409_v26  ;;  %v7016_v51 = vunpack.c.l.b16 %v3681_v22  ;;  %v7018_v55 = vunpack.c.l.b16 %v3680_v59 }
 0x294   : > { %v1218_v8 = vpop.f32.mrf.mxu2  ;;  %9715 = vst [vmem:[#allocation55_spill] sm:$0xff] %v7006_v52  ;;  %v2066_v56 = vmul.f32 %v6197_v12, %v1133_v7  ;;  %v7014_v15 = vpop.eup %5337  ;;  %v4015_v37 = vsel %vm360_vm0, %v4008_v38, 0  ;;  %v2590_v58 = vmul.f32 1.442695, %v2417_v36  ;;  %v3944_v26 = vunpack.c.l.b16 %v3677_v47 }
 0x295   : > { %v7012_v11 = vmul.f32 %v6197_v12, %v1218_v8  ;;  %v1177_v21 = vpop.f32.mrf.mxu1  ;;  %v7025_v39 = vpop.eup %5339  ;;  %4023 = vmatpush.bf16.xpose.msra.mxu0 %v4015_v37  ;;  %v7029_v6 = vsel %vm360_vm0, %v7001_v33, -inf  ;;  %v2812_v59 = vsel %vm360_vm0, %v7006_v52, 0.0  ;;  %5343 = vpow2.f32 %v2566_v10 }
 0x296   : > { %v2223_v22 = vsel %vm360_vm0, %v2066_v56, -inf  ;;  %v4007_v36 = vpack.c.b16 %v4004_v53, %v6861_v2  ;;  %v2815_v47 = vsel %vm360_vm0, %v7014_v15, 0.0  ;;  %5345 = vpow2.f32 %v2574_v18 }
 0x297   : > { %3440 = vrot.lane.b32.xlu2 %v6899_v31, %s5743_s15  ;;  %v7037_v7 = vmax.f32 %v6920_v25, %v2223_v22  ;;  %v7040_v38 = vpop.eup %5341  ;;  %v7047_v8 = vsel %vm360_vm0, %v7012_v11, -inf  ;;  %v7051_v31 = vmul.f32 %v6878_v48, %v6680_v1  ;;  %v2817_v53 = vsel %vm360_vm0, %v7025_v39, 0.0 }
 0x298   : > { %3442 = vrot.lane.b32.xlu1 %v3043_v4, %s5743_s15  ;;  %5040 = vmatmul.msk.bf16.gmra.mxu1 %vm624_vm2, %v6529_v5  ;;  %v7062_v4 = vmul.f32 %v6918_v29, %v6722_v49  ;;  %5347 = vpow2.f32 %v2590_v58  ;;  %v7067_v1 = vmul.f32 %v6197_v12, %v1177_v21  ;;  %v3946_v18 = vpack.c.b16 %v3944_v26, %v7008_v34 }
 0x299   : > { %9716 = vst [vmem:[#allocation56_spill] sm:$0xff] %v7051_v31  ;;  %v2406_v25 = vsub.f32 %v6820_v40, %v7037_v7  ;;  %v2414_v2 = vsub.f32 %v6834_v41, %v7037_v7  ;;  %v2418_v10 = vsub.f32 %v2066_v56, %v7037_v7  ;;  %5042 = vmatmul.msk.bf16.gmra.mxu2 %vm624_vm2, %v6612_v24  ;;  %v2813_v41 = vsel %vm360_vm0, %v7040_v38, 0.0  ;;  %v9718_v56 = vld [vmem:[#allocation18_spill] sm:$0xff] }
 0x29a   : > { %9717 = vst [vmem:[#allocation57_spill] sm:$0xff] %v7062_v4  ;;  %v4012_v24 = vsel %vm360_vm0, %v4007_v36, 0  ;;  %v2814_v22 = vadd.f32 %v2813_v41, %v2812_v59  ;;  %v3673_v34 = vpack.c.bf16 %v7062_v4, %v7062_v4  ;;  %v7094_v59 = vsel %vm360_vm0, %v7067_v1, -inf }
 0x29b   : > { %v1135_v40 = vpop.f32.mrf.mxu3  ;;  %v2568_v48 = vmul.f32 1.442695, %v2406_v25  ;;  %v2584_v5 = vmul.f32 1.442695, %v2414_v2  ;;  %5058 = vmatmul.msk.bf16.vlgmr.msrb.gmra.mxu0 %vm360_vm0, %v9718_v56  ;;  %v2592_v37 = vmul.f32 1.442695, %v2418_v10  ;;  %v7080_v13 = vpop.eup %5343  ;;  %v2413_v10 = vsub.f32 %v6797_v14, %v6980_v45 }
 0x29c   : > { %v2067_v49 = vmul.f32 %v6197_v12, %v1135_v40  ;;  %v1221_v29 = vpop.f32.mrf.mxu2  ;;  %9719 = vst [vmem:[#allocation18_spill] sm:$0xff] %v7080_v13  ;;  %v3672_v40 = vpack.c.bf16 %v7051_v31, %v7051_v31  ;;  %v7090_v26 = vpop.eup %5345  ;;  %v9720_v45 = vld [vmem:[#allocation48_spill] sm:$0xff] }
 0x29d   : > { %v1179_v58 = vpop.f32.mrf.mxu1  ;;  %v7084_v2 = vmul.f32 %v6197_v12, %v1221_v29  ;;  %5349 = vpow2.f32 %v2568_v48  ;;  %4024 = vmatpush.bf16.xpose.msra.mxu0 %v4012_v24  ;;  %v7105_v56 = vpop.trf.xlu2  ;;  %v2816_v48 = vadd.f32 %v2815_v47, %v2814_v22  ;;  %v7108_v29 = vsel %vm360_vm0, %v3946_v18, 0 }
 0x29e   : > { %v2230_v25 = vsel %vm360_vm0, %v2067_v49, -inf  ;;  %5351 = vpow2.f32 %v2584_v5  ;;  %v7110_v24 = vpop.eup %5347  ;;  %v3912_v18 = vunpack.c.l.b16 %v3672_v40  ;;  %v3913_v22 = vunpack.c.l.b16 %v3673_v34 }
 0x29f   : > { %v7097_v36 = vmax.f32 %v7003_v42, %v2230_v25  ;;  %3186 = vrot.lane.b32.xlu2 %v6974_v17, %s5742_s11  ;;  %v2819_v42 = vsel %vm360_vm0, %v7080_v13, 0.0  ;;  %5353 = vpow2.f32 %v2592_v37  ;;  %v7122_v47 = vsel %vm360_vm0, %v7084_v2, -inf }
 0x2a0   : > { %5043 = vmatmul.msk.bf16.vlgmr.msra.gmra.mxu3 %vm624_vm2, %v9720_v45  ;;  %v2818_v5 = vadd.f32 %v2817_v53, %v2816_v48  ;;  %v2820_v37 = vsel %vm360_vm0, %v7090_v26, 0.0  ;;  %v2582_v50 = vmul.f32 1.442695, %v2413_v10  ;;  %v7139_v34 = vsel %vm360_vm0, %v7110_v24, 0.0 }
 0x2a1   : > { %v2407_v14 = vsub.f32 %v6856_v30, %v7097_v36  ;;  %v2415_v17 = vsub.f32 %v6889_v60, %v7097_v36  ;;  %3868 = vmatpush.bf16.xpose.msra.mxu3 %v6872_v19  ;;  %v2419_v30 = vsub.f32 %v2067_v49, %v7097_v36  ;;  %v7129_v60 = vmul.f32 %v6197_v12, %v1179_v58 }
 0x2a2   : > { %5355 = vrcp.f32 %v2818_v5  ;;  %v9721_v19 = vpack.c.bf16 %v6882_v16, %v6882_v16  ;;  %v3915_v31 = vpack.c.b16 %v3913_v22, %v3912_v18  ;;  %v2821_v58 = vadd.f32 %v2820_v37, %v2819_v42  ;;  %v9726_v42 = vld [vmem:[#allocation51_spill] sm:$0xff] }
 0x2a3   : > { %v2586_v25 = vmul.f32 1.442695, %v2415_v17  ;;  %v1260_v21 = vpop.f32.mrf.mxu3  ;;  %v7135_v40 = vpop.eup %5349  ;;  %v2570_v49 = vmul.f32 1.442695, %v2407_v14  ;;  %v9722_v17 = vld [vmem:[#allocation50_spill] sm:$0xff]  ;;  %v7158_v14 = vsel %vm360_vm0, %v7129_v60, -inf }
 0x2a4   : > { %v1223_v45 = vpop.f32.mrf.mxu2  ;;  %v2076_v41 = vmul.f32 %v6197_v12, %v1260_v21  ;;  %v3942_v53 = vunpack.c.l.b16 %v9721_v19  ;;  %v7145_v21 = vmul.f32 %v6863_v62, %v9722_v17  ;;  %v7147_v10 = vpop.eup %5351  ;;  %v9725_v62 = vmax.f32 %v6984_v32, %v6995_v23 }
 0x2a5   : > { %v1304_v48 = vpop.f32.mrf.mxu1  ;;  %v7150_v16 = vmul.f32 %v6197_v12, %v1223_v45  ;;  %v7154_v4 = vpop.eup %5353  ;;  %5357 = vpow2.f32 %v2586_v25  ;;  %v2594_v13 = vmul.f32 1.442695, %v2419_v30  ;;  %v7167_v18 = vsel %vm360_vm0, %v7135_v40, 0.0 }
 0x2a6   : > { %9723 = vst [vmem:[#allocation48_spill] sm:$0xff] %v7145_v21  ;;  %v2235_v5 = vsel %vm360_vm0, %v2076_v41, -inf  ;;  %v2080_v19 = vmul.f32 %v6197_v12, %v1304_v48  ;;  %5359 = vpow2.f32 %v2582_v50  ;;  %v3945_v52 = vpack.c.b16 %v3942_v53, %v6969_v9  ;;  %v7183_v9 = vpop.permute.xlu2 %3428 }
 0x2a7   : > { %9724 = vst [vmem:[#allocation50_spill] sm:$0xff] %v7150_v16  ;;  %v2236_v17 = vmax.f32 %v9725_v62, %v2235_v5  ;;  %5361 = vpow2.f32 %v2570_v49  ;;  %v3671_v25 = vpack.c.bf16 %v7145_v21, %v7145_v21  ;;  %v7177_v32 = vsel %vm360_vm0, %v7147_v10, 0.0 }
 0x2a8   : > { %v2237_v45 = vsel %vm360_vm0, %v2080_v19, -inf  ;;  %v7173_v48 = vpop.eup %5355  ;;  %v7181_v50 = vsel %vm360_vm0, %v7154_v4, 0.0  ;;  %v7187_v23 = vsel %vm360_vm0, %v7150_v16, -inf  ;;  %5047 = vmatmul.msk.bf16.vlgmr.msrb.gmra.mxu1 %vm624_vm2, %v9726_v42  ;;  %v3922_v37 = vsel %vm360_vm0, %v3915_v31, 0 }
 0x2a9   : > { %v7169_v22 = vmax.f32 %v2236_v17, %v2237_v45  ;;  %3869 = vmatpush.bf16.xpose.msra.mxu3 %v6935_v3  ;;  %v7195_v30 = vmul.f32 %v7173_v48, %v7040_v38  ;;  %v7199_v53 = vmul.f32 %v7173_v48, %v7014_v15  ;;  %v7203_v49 = vmul.f32 %v7173_v48, %v7025_v39 }
 0x2aa   : > { %5049 = vmatmul.msk.bf16.vlgmr.msrb.gmra.mxu2 %vm624_vm2, %v6852_v0  ;;  %5363 = vpow2.f32 %v2594_v13  ;;  %3930 = vmatpush.bf16.xpose.msrb.mxu1 %v3922_v37  ;;  %v3911_v62 = vunpack.c.l.b16 %v3671_v25  ;;  %v9728_v13 = vpack.c.bf16 %v6876_v43, %v6876_v43  ;;  %v9730_v37 = vld [vmem:[#allocation23_spill] sm:$0xff]  ;;  %v9733_v43 = vld [vmem:[#allocation49_spill] sm:$0xff] }
 0x2ab   : > { %9727 = vst [vmem:[#allocation51_spill] sm:$0xff] %v7199_v53  ;;  %v2420_v5 = vsub.f32 %v6954_v63, %v7169_v22  ;;  %v1262_v3 = vpop.f32.mrf.mxu3  ;;  %v2428_v31 = vsub.f32 %v2076_v41, %v7169_v22  ;;  %v2432_v38 = vsub.f32 %v2080_v19, %v7169_v22  ;;  %3961 = vmatpush.bf16.xpose.msrb.mxu2 %v7108_v29  ;;  %v7212_v17 = vpop.eup %5357  ;;  %v3950_v63 = vsel %vm360_vm0, %v3945_v52, 0 }
 0x2ac   : > { %v1348_v15 = vpop.f32.mrf.mxu2  ;;  %3188 = vrot.lane.b32.xlu1 %v7195_v30, %s5742_s11  ;;  %3316 = vrot.lane.b32.xlu2 %v7199_v53, %s5744_s22  ;;  %v3910_v41 = vunpack.c.l.b16 %v9728_v13  ;;  %v9729_v29 = vsub.f32 %v6807_v35, %v7037_v7  ;;  %v7227_v45 = vpop.eup %5359  ;;  %v3977_v52 = vpack.c.b16 %v7016_v51, %v7018_v55  ;;  %v9731_v13 = vpack.c.bf16 %v6728_v27, %v6728_v27 }
 0x2ad   : > { %v1306_v0 = vpop.f32.mrf.mxu1  ;;  %3444 = vrot.lane.b32.xlu0 %v7203_v49, %s5743_s15  ;;  %v2596_v25 = vmul.f32 1.442695, %v2420_v5  ;;  %v2612_v42 = vmul.f32 1.442695, %v2428_v31  ;;  %5062 = vmatmul.msk.bf16.vlgmr.msra.gmra.mxu0 %vm360_vm0, %v9730_v37  ;;  %v7240_v35 = vpop.eup %5361  ;;  %v2620_v7 = vmul.f32 1.442695, %v2432_v38  ;;  %v9732_v31 = vpack.c.bf16 %v6912_v28, %v6912_v28 }
 0x2ae   : > { %v2576_v19 = vmul.f32 1.442695, %v9729_v29  ;;  %v7238_v39 = vunpack.c.l.b16 %v9731_v13  ;;  %v7243_v29 = vmul.f32 %v6197_v12, %v1262_v3  ;;  %v2822_v5 = vsel %vm360_vm0, %v7227_v45, 0.0 }
 0x2af   : > { %v7250_v37 = vunpack.c.l.b16 %v9732_v31  ;;  %5365 = vpow2.f32 %v2596_v25  ;;  %v2823_v51 = vadd.f32 %v2822_v5, %v2821_v58  ;;  %v2081_v27 = vmul.f32 %v6197_v12, %v1306_v0  ;;  %v3175_v31 = vpop.permute.xlu2 %3174 }
 0x2b0   : > { %v3914_v55 = vpack.c.b16 %v3911_v62, %v3910_v41  ;;  %v7255_v13 = vsel %vm360_vm0, %v7212_v17, 0.0  ;;  %5367 = vpow2.f32 %v2612_v42  ;;  %v2242_v38 = vsel %vm360_vm0, %v7243_v29, -inf  ;;  %5044 = vmatmul.msk.bf16.gmra.mxu3 %vm624_vm2, %v9733_v43  ;;  %v7263_v28 = vpop.eup %5363 }
 0x2b1   : > { %5369 = vpow2.f32 %v2620_v7  ;;  %v9734_v58 = vmax.f32 %v7029_v6, %v7047_v8  ;;  %v2825_v0 = vadd.f32 %v7139_v34, %v2823_v51  ;;  %v2244_v41 = vsel %vm360_vm0, %v2081_v27, -inf }
 0x2b2   : > { %v7271_v25 = vmul.f32 %v6197_v12, %v1348_v15  ;;  %v3919_v42 = vsel %vm360_vm0, %v3914_v55, 0  ;;  %5371 = vpow2.f32 %v2576_v19  ;;  %v2411_v43 = vsub.f32 %v6837_v44, %v7097_v36 }
 0x2b3   : > { %v2243_v62 = vmax.f32 %v9734_v58, %v2242_v38  ;;  %v1265_v5 = vpop.f32.mrf.mxu3  ;;  %5373 = vrcp.f32 %v2825_v0  ;;  %3962 = vmatpush.bf16.xpose.msrb.mxu2 %v3950_v63  ;;  %3931 = vmatpush.bf16.xpose.msrb.mxu1 %v3919_v42  ;;  %v7285_v15 = vsel %vm360_vm0, %v7263_v28, 0.0  ;;  %v2833_v53 = vsel %vm360_vm0, %v7240_v35, 0.0 }
 0x2b4   : > { %v7281_v8 = vmul.f32 %v6197_v12, %v1265_v5  ;;  %v1350_v34 = vpop.f32.mrf.mxu2  ;;  %v2578_v51 = vmul.f32 1.442695, %v2411_v43  ;;  %v7308_v5 = vsel %vm360_vm0, %v7271_v25, -inf }
 0x2b5   : > { %v7278_v6 = vmax.f32 %v2243_v62, %v2244_v41  ;;  %v1309_v19 = vpop.f32.mrf.mxu1  ;;  %v7291_v55 = vpop.eup %5365  ;;  %v9736_v41 = vld [vmem:[#allocation52_spill] sm:$0xff]  ;;  %v7317_v36 = vmul.f32 %v6197_v12, %v1350_v34 }
 0x2b6   : > { %9735 = vst [vmem:[#allocation23_spill] sm:$0xff] %v7291_v55  ;;  %v2249_v62 = vsel %vm360_vm0, %v7281_v8, -inf  ;;  %v7300_v0 = vpop.eup %5367  ;;  %v7304_v42 = vsel %vm360_vm0, %v9736_v41, %v3175_v31  ;;  %5375 = vpow2.f32 %v2578_v51 }
 0x2b7   : > { %v2421_v63 = vsub.f32 %v7001_v33, %v7278_v6  ;;  %v2425_v38 = vsub.f32 %v7012_v11, %v7278_v6  ;;  %v2433_v58 = vsub.f32 %v2081_v27, %v7278_v6  ;;  %v9737_v33 = vmax.f32 %v7094_v59, %v7122_v47  ;;  %v7314_v27 = vpop.eup %5369 }
 0x2b8   : > { %v2082_v11 = vmul.f32 %v6197_v12, %v1309_v19  ;;  %v7319_v31 = vpop.eup %5371  ;;  %v3984_v59 = vsel %vm360_vm0, %v3977_v52, 0  ;;  %v7329_v19 = vsel %vm360_vm0, %v7291_v55, 0.0  ;;  %5048 = vmatmul.msk.bf16.gmra.mxu1 %vm624_vm2, %v6825_v57  ;;  %v7350_v57 = vsel %vm360_vm0, %v7317_v36, -inf }
 0x2b9   : > { %v2250_v43 = vmax.f32 %v9737_v33, %v2249_v62  ;;  %v2598_v44 = vmul.f32 1.442695, %v2421_v63  ;;  %v2606_v7 = vmul.f32 1.442695, %v2425_v38  ;;  %v2622_v41 = vmul.f32 1.442695, %v2433_v58  ;;  %v7325_v47 = vpop.eup %5373 }
 0x2ba   : > { %v2251_v3 = vsel %vm360_vm0, %v2082_v11, -inf  ;;  %v2827_v34 = vsel %vm360_vm0, %v7319_v31, 0.0  ;;  %v7339_v38 = vmul.f32 %v7325_v47, %v7227_v45  ;;  %v7343_v52 = vmul.f32 %v7325_v47, %v7090_v26  ;;  %5050 = vmatmul.msk.bf16.gmra.mxu2 %vm624_vm2, %v7023_v54 }
 0x2bb   : > { %v2252_v51 = vmax.f32 %v2250_v43, %v2251_v3  ;;  %5377 = vpow2.f32 %v2598_v44  ;;  %v2828_v58 = vadd.f32 %v2827_v34, %v7167_v18  ;;  %v1267_v3 = vpop.f32.mrf.mxu3  ;;  %v7356_v26 = vsel %vm360_vm0, %v7300_v0, 0.0 }
 0x2bc   : > { %9738 = vst [vmem:[#allocation49_spill] sm:$0xff] %v7339_v38  ;;  %5379 = vpow2.f32 %v2606_v7  ;;  %v7360_v18 = vsel %vm360_vm0, %v7314_v27, 0.0  ;;  %3318 = vrot.lane.b32.xlu1 %v7339_v38, %s5744_s22  ;;  %3190 = vrot.lane.b32.xlu2 %v7343_v52, %s5742_s11  ;;  %v1353_v7 = vpop.f32.mrf.mxu2  ;;  %v7372_v55 = vmul.f32 %v6197_v12, %v1267_v3 }
 0x2bd   : > { %v2422_v62 = vsub.f32 %v7067_v1, %v2252_v51  ;;  %v2426_v45 = vsub.f32 %v7084_v2, %v2252_v51  ;;  %5381 = vpow2.f32 %v2622_v41  ;;  %v2830_v54 = vadd.f32 %v7177_v32, %v2828_v58  ;;  %v3173_v1 = vpop.permute.xlu1 %3172  ;;  %v7367_v2 = vpop.eup %5375 }
 0x2be   : > { %v2430_v44 = vsub.f32 %v7281_v8, %v2252_v51  ;;  %v2434_v33 = vsub.f32 %v2082_v11, %v2252_v51  ;;  %v1311_v16 = vpop.f32.mrf.mxu1  ;;  %v7376_v32 = vmul.f32 %v7325_v47, %v7110_v24  ;;  %v2256_v8 = vsel %vm360_vm0, %v7372_v55, -inf }
 0x2bf   : > { %v2600_v43 = vmul.f32 1.442695, %v2422_v62  ;;  %v2832_v34 = vadd.f32 %v7181_v50, %v2830_v54  ;;  %v2608_v63 = vmul.f32 1.442695, %v2426_v45  ;;  %v2834_v50 = vsel %vm360_vm0, %v7367_v2, 0.0 }
 0x2c0   : > { %v2616_v41 = vmul.f32 1.442695, %v2430_v44  ;;  %v2624_v58 = vmul.f32 1.442695, %v2434_v33  ;;  %5051 = vmatmul.msk.bf16.vlgmr.msrb.gmra.mxu3 %vm624_vm2, %v6950_v20  ;;  %v9740_v11 = vsub.f32 %v6962_v61, %v7169_v22  ;;  %v9741_v62 = vmax.f32 %v7158_v14, %v7187_v23  ;;  %v9742_v23 = vld [vmem:[#allocation47_spill] sm:$0xff] }
 0x2c1   : > { %5383 = vpow2.f32 %v2600_v43  ;;  %v7378_v21 = vpop.eup %5377  ;;  %v7397_v54 = vmul.f32 %v6197_v12, %v1353_v7  ;;  %3992 = vmatpush.bf16.xpose.msrb.mxu3 %v3984_v59  ;;  %v2835_v61 = vadd.f32 %v2834_v50, %v2833_v53  ;;  %v7404_v22 = vmul.f32 %v6197_v12, %v1311_v16 }
 0x2c2   : > { %9739 = vst [vmem:[#allocation52_spill] sm:$0xff] %v7378_v21  ;;  %5385 = vrcp.f32 %v2832_v34  ;;  %v2604_v24 = vmul.f32 1.442695, %v9740_v11  ;;  %v7389_v51 = vpop.eup %5379  ;;  %v2257_v45 = vmax.f32 %v9741_v62, %v2256_v8  ;;  %v3524_v59 = vsel %vm360_vm0, %v9742_v23, %v3173_v1 }
 0x2c3   : > { %5387 = vpow2.f32 %v2608_v63  ;;  %v7399_v44 = vpop.eup %5381  ;;  %v7408_v63 = vsel %vm360_vm0, %v7378_v21, 0.0  ;;  %v1392_v7 = vpop.f32.mrf.mxu3  ;;  %v7416_v33 = vsel %vm360_vm0, %v7389_v51, 0.0  ;;  %v2837_v16 = vadd.f32 %v7255_v13, %v2835_v61 }
 0x2c4   : > { %5389 = vpow2.f32 %v2616_v41  ;;  %3446 = vrot.lane.b32.xlu2 %v7376_v32, %s5743_s15  ;;  %v2258_v53 = vsel %vm360_vm0, %v7404_v22, -inf  ;;  %v7427_v1 = vsel %vm360_vm0, %v7399_v44, 0.0  ;;  %v7431_v41 = vsel %vm360_vm0, %v7397_v54, -inf  ;;  %v1355_v62 = vpop.f32.mrf.mxu2 }
 0x2c5   : > { %5391 = vpow2.f32 %v2624_v58  ;;  %v3301_v43 = vpop.permute.xlu1 %3300  ;;  %v7433_v58 = vmax.f32 %v2257_v45, %v2258_v53  ;;  %v2839_v11 = vadd.f32 %v7285_v15, %v2837_v16  ;;  %v7442_v61 = vmul.f32 %v6197_v12, %v1392_v7 }
 0x2c6   : > { %5393 = vpow2.f32 %v2604_v24  ;;  %v3557_v13 = vsel %vm3556_vm3, %v3524_v59, %v3301_v43  ;;  %v7476_v21 = vmul.f32 %v6197_v12, %v1355_v62 }
 0x2c7   : > { %v7423_v34 = vpop.eup %5383  ;;  %v3590_v24 = vsel %vm3589_vm4, %v3557_v13, %v7183_v9  ;;  %v2423_v43 = vsub.f32 %v7129_v60, %v7433_v58  ;;  %5395 = vrcp.f32 %v2839_v11  ;;  %v9744_v11 = vpack.c.b16 %v7250_v37, %v7238_v39 }
 0x2c8   : > { %9743 = vst [vmem:[#allocation47_spill] sm:$0xff] %v7423_v34  ;;  %v5386_v8 = vpop.eup %5385  ;;  %v2854_v50 = vsel %vm360_vm0, %v7423_v34, 0.0  ;;  %v2261_v37 = vsel %vm360_vm0, %v7442_v61, -inf }
 0x2c9   : > { %v7444_v23 = vpop.eup %5387  ;;  %v3050_v45 = vmul.f32 %v5386_v8, %v7319_v31  ;;  %v3054_v53 = vmul.f32 %v5386_v8, %v7147_v10  ;;  %v3058_v59 = vmul.f32 %v5386_v8, %v7154_v4  ;;  %3622 = vst [vmem:[%s7452_s21] sm:$0xff] %v3590_v24  ;;  %v2431_v31 = vsub.f32 %v7372_v55, %v7433_v58  ;;  %v1436_v4 = vpop.f32.mrf.mxu1 }
 0x2ca   : > { %v7455_v9 = vpop.eup %5389  ;;  %v2855_v15 = vsel %vm360_vm0, %v7444_v23, 0.0  ;;  %v2435_v10 = vsub.f32 %v7404_v22, %v7433_v58  ;;  %v3303_v24 = vpop.permute.xlu0 %3302  ;;  %v3981_v3 = vsel %vm360_vm0, %v9744_v11, 0  ;;  %v2602_v14 = vmul.f32 1.442695, %v2423_v43  ;;  %9745 = vst [vmem:[#allocation58_spill] sm:$0xff] %v7476_v21 }
 0x2cb   : > { %v7463_v7 = vpop.eup %5391  ;;  %v3692_v60 = vpack.c.bf16 %v3050_v45, %v3050_v45  ;;  %3192 = vrot.lane.b32.xlu1 %v3050_v45, %s5742_s11  ;;  %v3696_v16 = vpack.c.bf16 %v3054_v53, %v3054_v53  ;;  %3320 = vrot.lane.b32.xlu0 %v3054_v53, %s5744_s22  ;;  %v2856_v13 = vadd.f32 %v2855_v15, %v2854_v50  ;;  %v2857_v22 = vsel %vm360_vm0, %v7455_v9, 0.0  ;;  %v9746_v45 = vld [vmem:[#allocation15_spill] sm:$0xff]  ;;  %v9747_v50 = vld [vmem:[#allocation16_spill] sm:$0xff] }
 0x2cc   : > { %v7471_v55 = vpop.eup %5393  ;;  %v3700_v20 = vpack.c.bf16 %v3058_v59, %v3058_v59  ;;  %5055 = vmatmul.msk.bf16.vlgmr.msra.gmra.mxu1 %vm360_vm0, %v9746_v45  ;;  %5056 = vmatmul.msk.bf16.vlgmr.msra.gmra.mxu2 %vm360_vm0, %v9747_v50  ;;  %v2618_v39 = vmul.f32 1.442695, %v2431_v31  ;;  %v7485_v15 = vmul.f32 %v6197_v12, %v1436_v4  ;;  %v2859_v62 = vsel %vm360_vm0, %v7463_v7, 0.0 }
 0x2cd   : > { %v2858_v53 = vadd.f32 %v2857_v22, %v2856_v13  ;;  %3993 = vmatpush.bf16.xpose.msrb.mxu3 %v3981_v3  ;;  %v4067_v11 = vunpack.c.l.b16 %v3692_v60  ;;  %v7487_v43 = vunpack.c.l.b16 %v3696_v16  ;;  %v3558_v45 = vsel %vm3556_vm3, %v7304_v42, %v3303_v24  ;;  %v3431_v50 = vpop.permute.xlu1 %3430  ;;  %v5396_v4 = vpop.eup %5395 }
 0x2ce   : > { %v4129_v13 = vunpack.c.l.b16 %v3700_v20  ;;  %5397 = vpow2.f32 %v2602_v14  ;;  %v2626_v31 = vmul.f32 1.442695, %v2435_v10  ;;  %v2841_v22 = vsel %vm360_vm0, %v7471_v55, 0.0  ;;  %v7502_v42 = vpop.permute.xlu2 %3304  ;;  %v1394_v10 = vpop.f32.mrf.mxu3 }
 0x2cf   : > { %v7497_v3 = vsel %vm360_vm0, %v7476_v21, -inf  ;;  %v2262_v60 = vmax.f32 %v7308_v5, %v2261_v37  ;;  %v2842_v16 = vadd.f32 %v2841_v22, %v7329_v19  ;;  %v3591_v38 = vsel %vm3589_vm4, %v3558_v45, %v3431_v50  ;;  %v1480_v37 = vpop.f32.mrf.mxu2 }
 0x2d0   : > { %v2860_v24 = vadd.f32 %v2859_v62, %v2858_v53  ;;  %v3051_v20 = vmul.f32 %v5396_v4, %v7367_v2  ;;  %v3059_v14 = vmul.f32 %v5396_v4, %v7263_v28  ;;  %5399 = vpow2.f32 %v2618_v39  ;;  %3623 = vst [vmem:[%s7452_s21 + $0x8] sm:$0xff] %v3591_v38  ;;  %5052 = vmatmul.msk.bf16.gmra.mxu3 %vm624_vm2, %v7105_v56 }
 0x2d1   : > { %v2263_v21 = vsel %vm360_vm0, %v7485_v15, -inf  ;;  %v2844_v34 = vadd.f32 %v7356_v26, %v2842_v16  ;;  %v7511_v5 = vmul.f32 %v5386_v8, %v7135_v40  ;;  %v7514_v19 = vmul.f32 %v5396_v4, %v7240_v35  ;;  %v1438_v62 = vpop.f32.mrf.mxu1 }
 0x2d2   : > { %v3693_v28 = vpack.c.bf16 %v3051_v20, %v3051_v20  ;;  %3194 = vrot.lane.b32.xlu2 %v3051_v20, %s5742_s11  ;;  %v3701_v38 = vpack.c.bf16 %v3059_v14, %v3059_v14  ;;  %5401 = vpow2.f32 %v2626_v31  ;;  %v3055_v2 = vmul.f32 %v5396_v4, %v7212_v17  ;;  %v3177_v39 = vpop.permute.xlu0 %3176 }
 0x2d3   : > { %9748 = vst [vmem:[#allocation15_spill] sm:$0xff] %v7511_v5  ;;  %3448 = vrot.lane.b32.xlu1 %v3058_v59, %s5743_s15  ;;  %3450 = vrot.lane.b32.xlu0 %v3059_v14, %s5743_s15  ;;  %v2846_v40 = vadd.f32 %v7360_v18, %v2844_v34  ;;  %v3688_v35 = vpack.c.bf16 %v7511_v5, %v7511_v5  ;;  %5403 = vrcp.f32 %v2860_v24 }
 0x2d4   : > { %9749 = vst [vmem:[#allocation16_spill] sm:$0xff] %v7514_v19  ;;  %v3689_v26 = vpack.c.bf16 %v7514_v19, %v7514_v19  ;;  %v7528_v56 = vmul.f32 %v6197_v12, %v1394_v10  ;;  %v7530_v8 = vpop.eup %5397  ;;  %v4068_v59 = vunpack.c.l.b16 %v3693_v28  ;;  %v4130_v53 = vunpack.c.l.b16 %v3701_v38 }
 0x2d5   : > { %v2096_v17 = vmul.f32 %v6197_v12, %v1480_v37  ;;  %v2264_v45 = vmax.f32 %v2262_v60, %v2263_v21  ;;  %5405 = vrcp.f32 %v2846_v40  ;;  %v4036_v18 = vunpack.c.l.b16 %v3688_v35 }
 0x2d6   : > { %v4037_v34 = vunpack.c.l.b16 %v3689_v26  ;;  %v7533_v50 = vpop.eup %5399  ;;  %v4132_v31 = vpack.c.b16 %v4130_v53, %v4129_v13  ;;  %v3697_v22 = vpack.c.bf16 %v3055_v2, %v3055_v2  ;;  %v4070_v4 = vpack.c.b16 %v4068_v59, %v4067_v11  ;;  %v7560_v59 = vpop.permute.xlu2 %3434 }
 0x2d7   : > { %v9750_v16 = vpack.c.bf16 %v7203_v49, %v7203_v49  ;;  %v2268_v14 = vsel %vm360_vm0, %v7528_v56, -inf  ;;  %v2265_v10 = vsel %vm360_vm0, %v2096_v17, -inf  ;;  %v9751_v21 = vpack.c.bf16 %v7376_v32, %v7376_v32 }
 0x2d8   : > { %v4039_v24 = vpack.c.b16 %v4037_v34, %v4036_v18  ;;  %v7544_v37 = vpop.eup %5401  ;;  %v4139_v13 = vsel %vm360_vm0, %v4132_v31, 0  ;;  %v4077_v11 = vsel %vm360_vm0, %v4070_v4, 0  ;;  %v7548_v28 = vmax.f32 %v2264_v45, %v2265_v10  ;;  %v9752_v34 = vld [vmem:[#allocation19_spill] sm:$0xff]  ;;  %v1397_v4 = vpop.f32.mrf.mxu3 }
 0x2d9   : > { %v4127_v20 = vunpack.c.l.b16 %v9750_v16  ;;  %v4128_v60 = vunpack.c.l.b16 %v9751_v21  ;;  %v7551_v49 = vmul.f32 %v6197_v12, %v1438_v62  ;;  %4147 = vmatpush.bf16.xpose.msrb.mxu0 %v4139_v13  ;;  %4085 = vmatpush.bf16.xpose.msra.mxu2 %v4077_v11  ;;  %v3526_v40 = vsel %vm360_vm0, %v6678_v46, %v3177_v39  ;;  %v7558_v26 = vpop.eup %5403  ;;  %v9754_v21 = vld [vmem:[#allocation55_spill] sm:$0xff]  ;;  %v1441_v11 = vpop.f32.mrf.mxu1 }
 0x2da   : > { %v4046_v38 = vsel %vm360_vm0, %v4039_v24, 0  ;;  %v2429_v35 = vsub.f32 %v7243_v29, %v7278_v6  ;;  %v7562_v53 = vunpack.c.l.b16 %v3697_v22  ;;  %3322 = vrot.lane.b32.xlu2 %v3055_v2, %s5744_s22  ;;  %v2269_v62 = vmax.f32 %v7350_v57, %v2268_v14  ;;  %v9753_v57 = vld [vmem:[#allocation20_spill] sm:$0xff]  ;;  %v3179_v22 = vpop.permute.xlu1 %3178  ;;  %v1482_v14 = vpop.f32.mrf.mxu2 }
 0x2db   : > { %v4131_v32 = vpack.c.b16 %v4128_v60, %v4127_v20  ;;  %4054 = vmatpush.bf16.xpose.msra.mxu1 %v4046_v38  ;;  %v2436_v45 = vsub.f32 %v7271_v25, %v7548_v28  ;;  %v2444_v46 = vsub.f32 %v7485_v15, %v7548_v28  ;;  %v7570_v39 = vpop.eup %5405  ;;  %v7574_v29 = vsel %vm360_vm0, %v7533_v50, 0.0  ;;  %v3433_v13 = vpop.permute.xlu0 %3432 }
 0x2dc   : > { %v2448_v6 = vsub.f32 %v2096_v17, %v7548_v28  ;;  %v2270_v2 = vsel %vm360_vm0, %v7551_v49, -inf  ;;  %v2614_v18 = vmul.f32 1.442695, %v2429_v35  ;;  %5059 = vmatmul.msk.bf16.vlgmr.msrb.gmra.mxu1 %vm360_vm0, %v9752_v34  ;;  %5060 = vmatmul.msk.bf16.vlgmr.msrb.gmra.mxu2 %vm360_vm0, %v9753_v57  ;;  %v7585_v25 = vsel %vm360_vm0, %v7544_v37, 0.0  ;;  %v1832_v35 = vpop.f32.mrf.mxu0 }
 0x2dd   : > { %v7589_v15 = vmul.f32 %v7570_v39, %v7471_v55  ;;  %v2628_v31 = vmul.f32 1.442695, %v2436_v45  ;;  %v2644_v17 = vmul.f32 1.442695, %v2444_v46  ;;  %v4136_v20 = vsel %vm360_vm0, %v4131_v32, 0 }
 0x2de   : > { %5407 = vpow2.f32 %v2614_v18  ;;  %v2849_v24 = vadd.f32 %v7416_v33, %v7408_v63  ;;  %v2652_v55 = vmul.f32 1.442695, %v2448_v6  ;;  %v2271_v10 = vmax.f32 %v2269_v62, %v2270_v2  ;;  %v9756_v33 = vld [vmem:[#allocation18_spill] sm:$0xff] }
 0x2df   : > { %3196 = vrot.lane.b32.xlu1 %v7589_v15, %s5742_s11  ;;  %5409 = vpow2.f32 %v2628_v31  ;;  %v7600_v60 = vmul.f32 %v7173_v48, %v9754_v21  ;;  %v7604_v38 = vmul.f32 %v7570_v39, %v7314_v27  ;;  %v7608_v63 = vmul.f32 %v7570_v39, %v7300_v0 }
 0x2e0   : > { %5411 = vpow2.f32 %v2644_v17  ;;  %v7612_v32 = vmul.f32 %v7325_v47, %v9756_v33  ;;  %v9758_v62 = vpack.c.bf16 %v7195_v30, %v7195_v30  ;;  %v9759_v27 = vpack.c.bf16 %v7343_v52, %v7343_v52 }
 0x2e1   : > { %9755 = vst [vmem:[#allocation19_spill] sm:$0xff] %v7600_v60  ;;  %v3686_v48 = vpack.c.bf16 %v7600_v60, %v7600_v60  ;;  %v3559_v0 = vsel %vm3556_vm3, %v3526_v40, %v7502_v42  ;;  %4148 = vmatpush.bf16.xpose.msrb.mxu0 %v4136_v20  ;;  %v7628_v2 = vmul.f32 %v6197_v12, %v1397_v4  ;;  %5413 = vpow2.f32 %v2652_v55  ;;  %v3183_v52 = vpop.permute.xlu2 %3182  ;;  %v9760_v42 = vld [vmem:[#allocation53_spill] sm:$0xff] }
 0x2e2   : > { %9757 = vst [vmem:[#allocation20_spill] sm:$0xff] %v7612_v32  ;;  %v4065_v45 = vunpack.c.l.b16 %v9758_v62  ;;  %v4066_v46 = vunpack.c.l.b16 %v9759_v27  ;;  %v3687_v47 = vpack.c.bf16 %v7612_v32, %v7612_v32  ;;  %v3592_v6 = vsel %vm3589_vm4, %v3559_v0, %v3433_v13  ;;  %3452 = vrot.lane.b32.xlu2 %v7604_v38, %s5743_s15 }
 0x2e3   : > { %v2097_v18 = vmul.f32 %v6197_v12, %v1482_v14  ;;  %v3527_v40 = vsel %vm360_vm0, %v9760_v42, %v3179_v22  ;;  %3624 = vst [vmem:[%s7452_s21 + $0x10] sm:$0xff] %v3592_v6  ;;  %v4034_v31 = vunpack.c.l.b16 %v3686_v48  ;;  %v7642_v20 = vmul.f32 %v6197_v12, %v1441_v11  ;;  %v9761_v14 = vld [vmem:[#allocation17_spill] sm:$0xff]  ;;  %v3307_v6 = vpop.permute.xlu1 %3306  ;;  %v1399_v42 = vpop.f32.mrf.mxu3 }
 0x2e4   : > { %v4069_v34 = vpack.c.b16 %v4066_v46, %v4065_v45  ;;  %v7638_v57 = vpop.eup %5407  ;;  %v4035_v17 = vunpack.c.l.b16 %v3687_v47  ;;  %5057 = vmatmul.msk.bf16.vlgmr.msra.gmra.mxu3 %vm360_vm0, %v9761_v14  ;;  %v2275_v13 = vsel %vm360_vm0, %v7628_v2, -inf  ;;  %v7669_v47 = vmul.f32 %v6197_v12, %v1832_v35 }
 0x2e5   : > { %v2272_v4 = vsel %vm360_vm0, %v2097_v18, -inf  ;;  %v7646_v55 = vpop.eup %5409  ;;  %v2850_v21 = vsel %vm360_vm0, %v7638_v57, 0.0 }
 0x2e6   : > { %9762 = vst [vmem:[#allocation55_spill] sm:$0xff] %v7646_v55  ;;  %v4074_v22 = vsel %vm360_vm0, %v4069_v34, 0  ;;  %v7653_v33 = vmax.f32 %v2271_v10, %v2272_v4  ;;  %v7655_v48 = vpop.eup %5411  ;;  %v2851_v45 = vadd.f32 %v2850_v21, %v2849_v24  ;;  %v4038_v27 = vpack.c.b16 %v4035_v17, %v4034_v31  ;;  %v9764_v34 = vld [vmem:[#allocation48_spill] sm:$0xff] }
 0x2e7   : > { %4086 = vmatpush.bf16.xpose.msra.mxu2 %v4074_v22  ;;  %3324 = vrot.lane.b32.xlu1 %v7608_v63, %s5744_s22  ;;  %9763 = vst [vmem:[#allocation18_spill] sm:$0xff] %v7669_v47  ;;  %v3529_v24 = vsel %vm360_vm0, %v9764_v34, %v3183_v52  ;;  %v2276_v4 = vmax.f32 %v7431_v41, %v2275_v13  ;;  %v7676_v14 = vpop.eup %5413  ;;  %v2277_v21 = vsel %vm360_vm0, %v7642_v20, -inf  ;;  %v1443_v52 = vpop.f32.mrf.mxu1 }
 0x2e8   : > { %v2437_v46 = vsub.f32 %v7317_v36, %v7653_v33  ;;  %v2441_v10 = vsub.f32 %v7528_v56, %v7653_v33  ;;  %v2449_v0 = vsub.f32 %v2097_v18, %v7653_v33  ;;  %v2853_v31 = vadd.f32 %v7427_v1, %v2851_v45  ;;  %v1485_v36 = vpop.f32.mrf.mxu2  ;;  %v9765_v56 = vld [vmem:[#allocation26_spill] sm:$0xff]  ;;  %v1834_v45 = vpop.f32.mrf.mxu0 }
 0x2e9   : > { %v4043_v17 = vsel %vm360_vm0, %v4038_v27, 0  ;;  %5066 = vmatmul.msk.bf16.vlgmr.msrb.gmra.mxu0 %vm360_vm0, %v9765_v56  ;;  %v7684_v1 = vmul.f32 %v7558_v26, %v7463_v7  ;;  %v3560_v22 = vsel %vm3556_vm3, %v3527_v40, %v3307_v6  ;;  %v7688_v13 = vmul.f32 %v6197_v12, %v1399_v42  ;;  %v3311_v27 = vpop.permute.xlu2 %3310 }
 0x2ea   : > { %4055 = vmatpush.bf16.xpose.msra.mxu1 %v4043_v17  ;;  %v2630_v35 = vmul.f32 1.442695, %v2437_v46  ;;  %v2638_v18 = vmul.f32 1.442695, %v2441_v10  ;;  %5415 = vrcp.f32 %v2853_v31  ;;  %v2654_v41 = vmul.f32 1.442695, %v2449_v0 }
 0x2eb   : > { %v3716_v46 = vpack.c.bf16 %v7684_v1, %v7684_v1  ;;  %v3593_v10 = vsel %vm3589_vm4, %v3560_v22, %v7560_v59  ;;  %v2098_v7 = vmul.f32 %v6197_v12, %v1485_v36  ;;  %v2278_v34 = vmax.f32 %v2276_v4, %v2277_v21  ;;  %v9766_v17 = vld [vmem:[#allocation24_spill] sm:$0xff] }
 0x2ec   : > { %5417 = vpow2.f32 %v2630_v35  ;;  %3625 = vst [vmem:[%s7452_s21 + $0x18] sm:$0xff] %v3593_v10  ;;  %v7698_v40 = vsel %vm360_vm0, %v7688_v13, -inf  ;;  %v7702_v0 = vmul.f32 %v7558_v26, %v7455_v9  ;;  %v7706_v6 = vsel %vm360_vm0, %v7646_v55, 0.0 }
 0x2ed   : > { %5419 = vpow2.f32 %v2638_v18  ;;  %v7710_v59 = vsel %vm360_vm0, %v7655_v48, 0.0  ;;  %v7714_v42 = vsel %vm360_vm0, %v7676_v14, 0.0  ;;  %v2279_v31 = vsel %vm360_vm0, %v2098_v7, -inf }
 0x2ee   : > { %5064 = vmatmul.msk.bf16.vlgmr.msra.gmra.mxu2 %vm360_vm0, %v9766_v17  ;;  %5421 = vpow2.f32 %v2654_v41  ;;  %v7721_v9 = vsel %vm360_vm0, %v7669_v47, -inf  ;;  %v7724_v4 = vsel %vm3556_vm3, %v3529_v24, %v3311_v27  ;;  %v2280_v36 = vmax.f32 %v2278_v34, %v2279_v31 }
 0x2ef   : > { %9767 = vst [vmem:[#allocation53_spill] sm:$0xff] %v7721_v9  ;;  %v7726_v56 = vunpack.c.l.b16 %v3716_v46  ;;  %v2283_v35 = vmax.f32 %v7497_v3, %v7698_v40  ;;  %v3712_v18 = vpack.c.bf16 %v7702_v0, %v7702_v0  ;;  %v7733_v21 = vmul.f32 %v6197_v12, %v1443_v52  ;;  %v9768_v46 = vld [vmem:[#allocation21_spill] sm:$0xff]  ;;  %v3309_v40 = vpop.permute.xlu0 %3308 }
 0x2f0   : > { %v7735_v41 = vpop.eup %5415  ;;  %v2438_v22 = vsub.f32 %v7397_v54, %v2280_v36  ;;  %v2442_v10 = vsub.f32 %v7628_v2, %v2280_v36  ;;  %v2446_v24 = vsub.f32 %v7642_v20, %v2280_v36  ;;  %v7742_v27 = vmul.f32 %v7558_v26, %v7444_v23  ;;  %v9770_v20 = vld [vmem:[#allocation50_spill] sm:$0xff]  ;;  %v3181_v23 = vpop.permute.xlu1 %3180 }
 0x2f1   : > { %5063 = vmatmul.msk.bf16.vlgmr.msra.gmra.mxu1 %vm360_vm0, %v9768_v46  ;;  %v7750_v52 = vmul.f32 %v7735_v41, %v7638_v57  ;;  %v7754_v54 = vmul.f32 %v7735_v41, %v7389_v51  ;;  %v2450_v2 = vsub.f32 %v2098_v7, %v2280_v36  ;;  %v2427_v34 = vsub.f32 %v9770_v20, %v7433_v58  ;;  %v1487_v11 = vpop.f32.mrf.mxu2  ;;  %v1524_v51 = vpop.f32.mrf.mxu3  ;;  %v9773_v20 = vld [vmem:[#allocation22_spill] sm:$0xff] }
 0x2f2   : > { %v7746_v3 = vpop.eup %5417  ;;  %v7762_v17 = vmul.f32 %v7735_v41, %v7399_v44  ;;  %v2632_v46 = vmul.f32 1.442695, %v2438_v22  ;;  %v2640_v62 = vmul.f32 1.442695, %v2442_v10  ;;  %v4101_v57 = vpack.c.b16 %v7562_v53, %v7487_v43  ;;  %v1568_v53 = vpop.f32.mrf.mxu1 }
 0x2f3   : > { %9769 = vst [vmem:[#allocation17_spill] sm:$0xff] %v7746_v3  ;;  %v7758_v31 = vpop.eup %5419  ;;  %3326 = vrot.lane.b32.xlu0 %v7750_v52, %s5744_s22  ;;  %v7770_v58 = vsel %vm360_vm0, %v7746_v3, 0.0  ;;  %3198 = vrot.lane.b32.xlu2 %v7754_v54, %s5742_s11  ;;  %v7774_v7 = vunpack.c.l.b16 %v3712_v18  ;;  %v7777_v44 = vmul.f32 %v6197_v12, %v1834_v45  ;;  %v7781_v43 = vsel %vm360_vm0, %v7530_v8, 0.0  ;;  %v1837_v45 = vpop.f32.mrf.mxu0 }
 0x2f4   : > { %9771 = vst [vmem:[#allocation48_spill] sm:$0xff] %v7758_v31  ;;  %v7783_v36 = vpop.eup %5421  ;;  %3454 = vrot.lane.b32.xlu1 %v7762_v17, %s5743_s15  ;;  %5423 = vpow2.f32 %v2632_v46  ;;  %v2648_v10 = vmul.f32 1.442695, %v2446_v24  ;;  %v2284_v18 = vsel %vm360_vm0, %v7733_v21, -inf  ;;  %5061 = vmatmul.msk.bf16.vlgmr.msrb.gmra.mxu3 %vm360_vm0, %v9773_v20  ;;  %v7795_v30 = vsel %vm360_vm0, %v7758_v31, 0.0  ;;  %v9774_v20 = vld [vmem:[#allocation54_spill] sm:$0xff] }
 0x2f5   : > { %9772 = vst [vmem:[#allocation26_spill] sm:$0xff] %v7777_v44  ;;  %5425 = vpow2.f32 %v2640_v62  ;;  %v2656_v22 = vmul.f32 1.442695, %v2450_v2  ;;  %v3708_v24 = vpack.c.bf16 %v7742_v27, %v7742_v27  ;;  %v2610_v46 = vmul.f32 1.442695, %v2427_v34 }
 0x2f6   : > { %5427 = vpow2.f32 %v2648_v10  ;;  %v4108_v47 = vsel %vm360_vm0, %v4101_v57, 0  ;;  %v3528_v5 = vsel %vm360_vm0, %v9774_v20, %v3181_v23  ;;  %v2099_v19 = vmul.f32 %v6197_v12, %v1487_v11  ;;  %v7818_v57 = vpop.permute.xlu2 %3440  ;;  %v9778_v23 = vld [vmem:[#allocation47_spill] sm:$0xff] }
 0x2f7   : > { %4116 = vmatpush.bf16.xpose.msra.mxu3 %v4108_v47  ;;  %v7808_v16 = vmul.f32 %v6197_v12, %v1524_v51  ;;  %v7812_v62 = vsel %vm360_vm0, %v7783_v36, 0.0  ;;  %v2285_v2 = vmax.f32 %v2283_v35, %v2284_v18  ;;  %v7816_v34 = vsel %vm360_vm0, %v7777_v44, -inf }
 0x2f8   : > { %9776 = vst [vmem:[#allocation21_spill] sm:$0xff] %v7816_v34  ;;  %5429 = vpow2.f32 %v2610_v46  ;;  %v2286_v47 = vsel %vm360_vm0, %v2099_v19, -inf  ;;  %v7822_v11 = vmul.f32 %v6197_v12, %v1568_v53  ;;  %v7826_v51 = vmul.f32 %v7558_v26, %v9778_v23  ;;  %v3437_v10 = vpop.permute.xlu1 %3436 }
 0x2f9   : > { %9775 = vst [vmem:[#allocation24_spill] sm:$0xff] %v7808_v16  ;;  %5431 = vpow2.f32 %v2656_v22  ;;  %v7830_v35 = vunpack.c.l.b16 %v3708_v24  ;;  %v7832_v18 = vmax.f32 %v2285_v2, %v2286_v47  ;;  %v7835_v22 = vmul.f32 %v6197_v12, %v1837_v45  ;;  %v1526_v9 = vpop.f32.mrf.mxu3  ;;  %v1612_v53 = vpop.f32.mrf.mxu2 }
 0x2fa   : > { %9777 = vst [vmem:[#allocation50_spill] sm:$0xff] %v7822_v11  ;;  %v7828_v20 = vpop.eup %5423  ;;  %v3561_v46 = vsel %vm3556_vm3, %v3528_v5, %v3309_v40  ;;  %v7848_v45 = vsel %vm360_vm0, %v7808_v16, -inf  ;;  %v3439_v24 = vpop.permute.xlu0 %3438  ;;  %v9782_v40 = vld [vmem:[#allocation49_spill] sm:$0xff]  ;;  %v2289_v3 = vsel %vm360_vm0, %v7822_v11, -inf  ;;  %v3704_v55 = vpack.c.bf16 %v7826_v51, %v7826_v51 }
 0x2fb   : > { %9779 = vst [vmem:[#allocation22_spill] sm:$0xff] %v7826_v51  ;;  %v7838_v44 = vpop.eup %5425  ;;  %3456 = vrot.lane.b32.xlu0 %v7684_v1, %s5743_s15  ;;  %v2882_v26 = vsel %vm360_vm0, %v7828_v20, 0.0  ;;  %3328 = vrot.lane.b32.xlu2 %v7702_v0, %s5744_s22  ;;  %v3594_v5 = vsel %vm3589_vm4, %v3561_v46, %v3437_v10  ;;  %v9783_v2 = vpack.c.bf16 %v9782_v40, %v9782_v40  ;;  %v9784_v0 = vld [vmem:[#allocation58_spill] sm:$0xff]  ;;  %v1570_v46 = vpop.f32.mrf.mxu1 }
 0x2fc   : > { %9780 = vst [vmem:[#allocation54_spill] sm:$0xff] %v7828_v20  ;;  %v7854_v23 = vpop.eup %5427  ;;  %v2883_v1 = vsel %vm360_vm0, %v7838_v44, 0.0  ;;  %3200 = vrot.lane.b32.xlu1 %v7742_v27, %s5742_s11  ;;  %v2439_v34 = vsub.f32 %v9784_v0, %v7832_v18  ;;  %v2447_v60 = vsub.f32 %v7733_v21, %v7832_v18  ;;  %v2451_v10 = vsub.f32 %v2099_v19, %v7832_v18  ;;  %v1839_v40 = vpop.f32.mrf.mxu0  ;;  %v9785_v27 = vld [vmem:[#allocation51_spill] sm:$0xff] }
 0x2fd   : > { %9781 = vst [vmem:[#allocation47_spill] sm:$0xff] %v7835_v22  ;;  %v4097_v47 = vunpack.c.l.b16 %v9783_v2  ;;  %v2884_v2 = vadd.f32 %v2883_v1, %v2882_v26  ;;  %v9786_v20 = vpack.c.bf16 %v9785_v27, %v9785_v27  ;;  %v2885_v19 = vsel %vm360_vm0, %v7854_v23, 0.0 }
 0x2fe   : > { %3626 = vst [vmem:[%s7452_s21 + $0x20] sm:$0xff] %v3594_v5  ;;  %v7873_v32 = vpop.eup %5429  ;;  %v2634_v21 = vmul.f32 1.442695, %v2439_v34  ;;  %v2650_v5 = vmul.f32 1.442695, %v2447_v60  ;;  %v3595_v26 = vsel %vm3589_vm4, %v7724_v4, %v3439_v24  ;;  %v2290_v31 = vmax.f32 %v7848_v45, %v2289_v3 }
 0x2ff   : > { %v4096_v0 = vunpack.c.l.b16 %v9786_v20  ;;  %v7879_v1 = vpop.eup %5431  ;;  %v2886_v11 = vadd.f32 %v2885_v19, %v2884_v2  ;;  %v2862_v51 = vsel %vm360_vm0, %v7873_v32, 0.0  ;;  %v2658_v16 = vmul.f32 1.442695, %v2451_v10  ;;  %3627 = vst [vmem:[%s7452_s21 + $0x28] sm:$0xff] %v3595_v26 }
 0x300   : > { %v2863_v20 = vadd.f32 %v2862_v51, %v7781_v43  ;;  %5433 = vpow2.f32 %v2634_v21  ;;  %v7888_v60 = vsel %vm360_vm0, %v7835_v22, -inf  ;;  %v7892_v34 = vmul.f32 %v6197_v12, %v1612_v53 }
 0x301   : > { %v4100_v27 = vpack.c.b16 %v4097_v47, %v4096_v0  ;;  %5435 = vpow2.f32 %v2650_v5  ;;  %v9787_v24 = vsub.f32 %v7442_v61, %v7548_v28  ;;  %v2887_v43 = vsel %vm360_vm0, %v7879_v1, 0.0  ;;  %v1529_v45 = vpop.f32.mrf.mxu3  ;;  %v1614_v47 = vpop.f32.mrf.mxu2 }
 0x302   : > { %v2865_v51 = vadd.f32 %v7574_v29, %v2863_v20  ;;  %5437 = vpow2.f32 %v2658_v16  ;;  %v7900_v3 = vunpack.c.l.b16 %v3704_v55  ;;  %v2888_v2 = vadd.f32 %v2887_v43, %v2886_v11  ;;  %v3187_v0 = vpop.permute.xlu2 %3186  ;;  %v9789_v29 = vld [vmem:[#allocation23_spill] sm:$0xff]  ;;  %v9791_v55 = vld [vmem:[#allocation52_spill] sm:$0xff] }
 0x303   : > { %v4105_v4 = vsel %vm360_vm0, %v4100_v27, 0  ;;  %v2636_v10 = vmul.f32 1.442695, %v9787_v24  ;;  %v7903_v53 = vmul.f32 %v6197_v12, %v1526_v9  ;;  %v7906_v19 = vmul.f32 %v6197_v12, %v1570_v46 }
 0x304   : > { %4117 = vmatpush.bf16.xpose.msra.mxu3 %v4105_v4  ;;  %v7909_v61 = vmul.f32 %v6197_v12, %v1839_v40  ;;  %v2867_v28 = vadd.f32 %v7585_v25, %v2865_v51  ;;  %v7914_v16 = vmul.f32 %v7570_v39, %v9789_v29  ;;  %v7918_v11 = vmul.f32 %v7735_v41, %v9791_v55  ;;  %v3185_v39 = vpop.permute.xlu1 %3184  ;;  %v9795_v41 = vld [vmem:[#allocation57_spill] sm:$0xff]  ;;  %v2008_v24 = vpop.f32.mrf.mxu0 }
 0x305   : > { %5439 = vpow2.f32 %v2636_v10  ;;  %v2291_v9 = vsel %vm360_vm0, %v7892_v34, -inf  ;;  %v2296_v46 = vsel %vm360_vm0, %v7906_v19, -inf  ;;  %v9793_v40 = vpack.c.bf16 %v7589_v15, %v7589_v15  ;;  %v1573_v15 = vpop.f32.mrf.mxu1 }
 0x306   : > { %9788 = vst [vmem:[#allocation49_spill] sm:$0xff] %v7909_v61  ;;  %v9794_v25 = vpack.c.bf16 %v7754_v54, %v7754_v54  ;;  %v7930_v26 = vpop.eup %5433  ;;  %5441 = vrcp.f32 %v2867_v28  ;;  %v7934_v27 = vsel %vm360_vm0, %v9795_v41, %v3187_v0  ;;  %v3702_v20 = vpack.c.bf16 %v7914_v16, %v7914_v16  ;;  %v9799_v41 = vld [vmem:[#allocation56_spill] sm:$0xff] }
 0x307   : > { %9790 = vst [vmem:[#allocation58_spill] sm:$0xff] %v7914_v16  ;;  %v4189_v21 = vunpack.c.l.b16 %v9793_v40  ;;  %v3703_v4 = vpack.c.bf16 %v7918_v11, %v7918_v11  ;;  %v7940_v10 = vpop.eup %5435  ;;  %5443 = vrcp.f32 %v2888_v2  ;;  %v2295_v54 = vsel %vm360_vm0, %v7903_v53, -inf }
 0x308   : > { %9792 = vst [vmem:[#allocation51_spill] sm:$0xff] %v7918_v11  ;;  %v4190_v5 = vunpack.c.l.b16 %v9794_v25  ;;  %v9796_v51 = vpack.c.bf16 %v7762_v17, %v7762_v17  ;;  %v7947_v28 = vpop.eup %5437  ;;  %v7949_v29 = vmax.f32 %v2290_v31, %v2291_v9  ;;  %v2297_v55 = vmax.f32 %v2295_v54, %v2296_v46  ;;  %v9800_v31 = vld [vmem:[#allocation25_spill] sm:$0xff] }
 0x309   : > { %v7953_v40 = vsel %vm360_vm0, %v7909_v61, -inf  ;;  %v7955_v25 = vunpack.c.l.b16 %v3703_v4  ;;  %v7957_v2 = vunpack.c.l.b16 %v3702_v20  ;;  %v3530_v17 = vsel %vm360_vm0, %v9799_v41, %v3185_v39  ;;  %v7984_v39 = vpop.f32.mrf.mxu3  ;;  %v1617_v4 = vpop.f32.mrf.mxu2 }
 0x30a   : > { %v4193_v43 = vpack.c.b16 %v4190_v5, %v4189_v21  ;;  %v4252_v0 = vunpack.c.l.b16 %v9796_v51  ;;  %9797 = vst [vmem:[#allocation23_spill] sm:$0xff] %v7953_v40  ;;  %v9798_v21 = vpack.c.bf16 %v7604_v38, %v7604_v38  ;;  %v7965_v51 = vmul.f32 %v6197_v12, %v1614_v47 }
 0x30b   : > { %5065 = vmatmul.msk.bf16.vlgmr.msra.gmra.mxu3 %vm360_vm0, %v9800_v31  ;;  %v7969_v9 = vpop.eup %5439  ;;  %v7973_v46 = vsel %vm360_vm0, %v7940_v10, 0.0  ;;  %v7977_v20 = vsel %vm360_vm0, %v7947_v28, 0.0  ;;  %v7980_v38 = vmul.f32 %v6197_v12, %v1529_v45  ;;  %v2445_v47 = vsub.f32 %v7551_v49, %v7653_v33 }
 0x30c   : > { %v4251_v5 = vunpack.c.l.b16 %v9798_v21  ;;  %v2869_v54 = vsel %vm360_vm0, %v7969_v9, 0.0  ;;  %v7991_v41 = vsel %vm360_vm0, %v4193_v43, 0  ;;  %v5442_v61 = vpop.eup %5441  ;;  %v2298_v40 = vsel %vm360_vm0, %v7965_v51, -inf }
 0x30d   : > { %v2870_v45 = vadd.f32 %v2869_v54, %v7706_v6  ;;  %v2646_v49 = vmul.f32 1.442695, %v2445_v47  ;;  %v7997_v33 = vmul.f32 %v6197_v12, %v1573_v15  ;;  %v7999_v16 = vpop.eup %5443  ;;  %v3067_v11 = vmul.f32 %v5442_v61, %v7873_v32 }
 0x30e   : > { %v4255_v31 = vpack.c.b16 %v4252_v0, %v4251_v5  ;;  %v3075_v21 = vmul.f32 %v5442_v61, %v7544_v37  ;;  %v8004_v43 = vmul.f32 %v5442_v61, %v7530_v8  ;;  %v3071_v0 = vmul.f32 %v5442_v61, %v7533_v50  ;;  %v3313_v37 = vpop.permute.xlu1 %3312 }
 0x30f   : > { %v2872_v6 = vadd.f32 %v7710_v59, %v2870_v45  ;;  %v8010_v5 = vsel %vm360_vm0, %v7980_v38, -inf  ;;  %5445 = vpow2.f32 %v2646_v49  ;;  %v2877_v15 = vadd.f32 %v7795_v30, %v7770_v58  ;;  %3202 = vrot.lane.b32.xlu0 %v3067_v11, %s5742_s11  ;;  %v1575_v58 = vpop.f32.mrf.mxu1 }
 0x310   : > { %9801 = vst [vmem:[#allocation52_spill] sm:$0xff] %v8004_v43  ;;  %v3709_v47 = vpack.c.bf16 %v3067_v11, %v3067_v11  ;;  %v3717_v32 = vpack.c.bf16 %v3075_v21, %v3075_v21  ;;  %3458 = vrot.lane.b32.xlu2 %v3075_v21, %s5743_s15  ;;  %v3705_v8 = vpack.c.bf16 %v8004_v43, %v8004_v43  ;;  %v8019_v50 = vsel %vm360_vm0, %v4255_v31, 0  ;;  %v2010_v11 = vpop.f32.mrf.mxu0 }
 0x311   : > { %v3713_v59 = vpack.c.bf16 %v3071_v0, %v3071_v0  ;;  %3330 = vrot.lane.b32.xlu1 %v3071_v0, %s5744_s22  ;;  %v2874_v61 = vadd.f32 %v7714_v42, %v2872_v6  ;;  %v8023_v54 = vmax.f32 %v2297_v55, %v2298_v40  ;;  %v2303_v30 = vsel %vm360_vm0, %v7997_v33, -inf  ;;  %v1619_v40 = vpop.f32.mrf.mxu2  ;;  %v1656_v6 = vpop.f32.mrf.mxu3 }
 0x312   : > { %v4192_v21 = vunpack.c.l.b16 %v3709_v47  ;;  %v4254_v45 = vunpack.c.l.b16 %v3717_v32  ;;  %v4161_v49 = vunpack.c.l.b16 %v3705_v8  ;;  %v8028_v31 = vmul.f32 %v6197_v12, %v2008_v24 }
 0x313   : > { %v4223_v43 = vunpack.c.l.b16 %v3713_v59  ;;  %5447 = vrcp.f32 %v2874_v61  ;;  %v3563_v0 = vsel %vm3556_vm3, %v3530_v17, %v3313_v37  ;;  %v9803_v42 = vpack.c.bf16 %v7750_v52, %v7750_v52 }
 0x314   : > { %9802 = vst [vmem:[#allocation57_spill] sm:$0xff] %v8028_v31  ;;  %v4163_v22 = vpack.c.b16 %v4161_v49, %v7900_v3  ;;  %v4194_v47 = vpack.c.b16 %v4192_v21, %v7830_v35  ;;  %v4256_v32 = vpack.c.b16 %v4254_v45, %v7726_v56  ;;  %v3596_v24 = vsel %vm3589_vm4, %v3563_v0, %v7818_v57 }
 0x315   : > { %v4221_v55 = vunpack.c.l.b16 %v9803_v42  ;;  %v8039_v8 = vpop.eup %5445  ;;  %v4225_v59 = vpack.c.b16 %v4223_v43, %v7774_v7  ;;  %v2304_v17 = vmax.f32 %v8010_v5, %v2303_v30  ;;  %3628 = vst [vmem:[%s7452_s21 + $0x30] sm:$0xff] %v3596_v24  ;;  %v9804_v52 = vpack.c.bf16 %v7608_v63, %v7608_v63  ;;  %v3315_v5 = vpop.permute.xlu0 %3314 }
 0x316   : > { %v8048_v3 = vmul.f32 %v6197_v12, %v1617_v4  ;;  %v4170_v35 = vsel %vm360_vm0, %v4163_v22, 0  ;;  %v4201_v56 = vsel %vm360_vm0, %v4194_v47, 0  ;;  %v4263_v57 = vsel %vm360_vm0, %v4256_v32, 0  ;;  %v8060_v30 = vpop.permute.xlu2 %3316  ;;  %v3443_v42 = vpop.permute.xlu1 %3442 }
 0x317   : > { %v4220_v37 = vunpack.c.l.b16 %v9804_v52  ;;  %v2878_v61 = vsel %vm360_vm0, %v8039_v8, 0.0  ;;  %4178 = vmatpush.bf16.xpose.msrb.mxu1 %v4170_v35  ;;  %4209 = vmatpush.bf16.xpose.msrb.mxu2 %v4201_v56  ;;  %v4232_v7 = vsel %vm360_vm0, %v4225_v59, 0  ;;  %v8058_v4 = vmul.f32 %v6197_v12, %v7984_v39  ;;  %v9817_v52 = vld [vmem:[#allocation54_spill] sm:$0xff] }
 0x318   : > { %v2879_v43 = vadd.f32 %v2878_v61, %v2877_v15  ;;  %4271 = vmatpush.bf16.xpose.msra.mxu0 %v4263_v57  ;;  %v9805_v22 = vpack.c.b16 %v7955_v25, %v7957_v2  ;;  %4240 = vmatpush.bf16.xpose.msrb.mxu3 %v4232_v7  ;;  %v8068_v45 = vmul.f32 %v7999_v16, %v7879_v1  ;;  %v2305_v25 = vsel %vm360_vm0, %v8048_v3, -inf  ;;  %v2013_v47 = vpop.f32.mrf.mxu0 }
 0x319   : > { %v4224_v63 = vpack.c.b16 %v4221_v55, %v4220_v37  ;;  %v8072_v15 = vmul.f32 %v7999_v16, %v7838_v44  ;;  %v8075_v39 = vmul.f32 %v6197_v12, %v1575_v58  ;;  %v8077_v49 = vpop.eup %5447  ;;  %v8083_v2 = vmul.f32 %v6197_v12, %v2010_v11  ;;  %v1700_v55 = vpop.f32.mrf.mxu1 }
 0x31a   : > { %v4167_v21 = vsel %vm360_vm0, %v9805_v22, 0  ;;  %v2881_v0 = vadd.f32 %v7812_v62, %v2879_v43  ;;  %v8087_v1 = vmul.f32 %v7999_v16, %v7854_v23  ;;  %v8091_v44 = vmul.f32 %v8077_v49, %v7969_v9  ;;  %v1658_v59 = vpop.f32.mrf.mxu3  ;;  %v1744_v56 = vpop.f32.mrf.mxu2 }
 0x31b   : > { %9806 = vst [vmem:[#allocation56_spill] sm:$0xff] %v8075_v39  ;;  %v8095_v58 = vmul.f32 %v8077_v49, %v7655_v48  ;;  %v8099_v62 = vsel %vm360_vm0, %v8028_v31, -inf  ;;  %v3564_v11 = vsel %vm3556_vm3, %v7934_v27, %v3315_v5  ;;  %v8105_v23 = vmul.f32 %v8077_v49, %v7676_v14  ;;  %v9815_v5 = vld [vmem:[#allocation27_spill] sm:$0xff] }
 0x31c   : > { %9807 = vst [vmem:[#allocation25_spill] sm:$0xff] %v8083_v2  ;;  %5449 = vrcp.f32 %v2881_v0  ;;  %v3732_v9 = vpack.c.bf16 %v8068_v45, %v8068_v45  ;;  %v3724_v48 = vpack.c.bf16 %v8072_v15, %v8072_v15  ;;  %3204 = vrot.lane.b32.xlu2 %v8091_v44, %s5742_s11  ;;  %v4229_v27 = vsel %vm360_vm0, %v4224_v63, 0 }
 0x31d   : > { %9808 = vst [vmem:[#allocation59_spill] sm:$0xff] %v8099_v62  ;;  %3332 = vrot.lane.b32.xlu0 %v8095_v58, %s5744_s22  ;;  %v2309_v14 = vsel %vm360_vm0, %v8058_v4, -inf  ;;  %v8118_v32 = vmax.f32 %v2304_v17, %v2305_v25  ;;  %v2310_v24 = vsel %vm360_vm0, %v8075_v39, -inf  ;;  %3460 = vrot.lane.b32.xlu1 %v8105_v23, %s5743_s15  ;;  %v8128_v37 = vsel %vm360_vm0, %v8083_v2, -inf }
 0x31e   : > { %9809 = vst [vmem:[#allocation60_spill] sm:$0xff] %v8128_v37  ;;  %v3728_v35 = vpack.c.bf16 %v8087_v1, %v8087_v1  ;;  %v3597_v17 = vsel %vm3589_vm4, %v3564_v11, %v3443_v42  ;;  %v8137_v61 = vmul.f32 %v6197_v12, %v1619_v40  ;;  %v2112_v7 = vmul.f32 %v6197_v12, %v1656_v6  ;;  %v3191_v42 = vpop.permute.xlu2 %3190 }
 0x31f   : > { %3629 = vst [vmem:[%s7452_s21 + $0x38] sm:$0xff] %v3597_v17  ;;  %v2443_v43 = vsub.f32 %v7688_v13, %v7832_v18  ;;  %4179 = vmatpush.bf16.xpose.msrb.mxu1 %v4167_v21  ;;  %4210 = vmatpush.bf16.xpose.msrb.mxu2 %v7991_v41  ;;  %v8145_v63 = vunpack.c.l.b16 %v3732_v9  ;;  %v8147_v22 = vunpack.c.l.b16 %v3724_v48  ;;  %v2311_v0 = vmax.f32 %v2309_v14, %v2310_v24  ;;  %v9812_v14 = vld [vmem:[#allocation24_spill] sm:$0xff] }
 0x320   : > { %4272 = vmatpush.bf16.xpose.msra.mxu0 %v8019_v50  ;;  %4241 = vmatpush.bf16.xpose.msrb.mxu3 %v4229_v27  ;;  %v2293_v40 = vsel %vm360_vm0, %v2112_v7, -inf  ;;  %v8152_v25 = vmul.f32 %v6197_v12, %v1700_v55  ;;  %v8155_v13 = vmul.f32 %v6197_v12, %v1658_v59  ;;  %v8159_v41 = vunpack.c.l.b16 %v3728_v35  ;;  %v9811_v27 = vld [vmem:[#allocation48_spill] sm:$0xff]  ;;  %v2015_v17 = vpop.f32.mrf.mxu0 }
 0x321   : > { %v2642_v6 = vmul.f32 1.442695, %v2443_v43  ;;  %v2312_v21 = vsel %vm360_vm0, %v8137_v61, -inf  ;;  %v8164_v11 = vmax.f32 %v7949_v29, %v2293_v40  ;;  %v2889_v50 = vsel %vm360_vm0, %v7930_v26, 0.0  ;;  %v1702_v35 = vpop.f32.mrf.mxu1  ;;  %v9813_v43 = vld [vmem:[#allocation20_spill] sm:$0xff] }
 0x322   : > { %v8157_v18 = vpop.eup %5449  ;;  %v8177_v55 = vmul.f32 %v6197_v12, %v2013_v47  ;;  %v8196_v47 = vsel %vm360_vm0, %v8152_v25, -inf  ;;  %v8200_v40 = vsel %vm360_vm0, %v9813_v43, %v3191_v42  ;;  %v9816_v42 = vld [vmem:[#allocation28_spill] sm:$0xff]  ;;  %v8218_v57 = vmul.f32 %v6197_v12, %v1744_v56 }
 0x323   : > { %v8170_v9 = vmul.f32 %v8157_v18, %v8039_v8  ;;  %v8174_v48 = vmul.f32 %v8157_v18, %v7783_v36  ;;  %5451 = vpow2.f32 %v2642_v6  ;;  %v8181_v29 = vmul.f32 %v8157_v18, %v9811_v27 }
 0x324   : > { %9810 = vst [vmem:[#allocation61_spill] sm:$0xff] %v8177_v55  ;;  %v2452_v24 = vsub.f32 %v9812_v14, %v8164_v11  ;;  %v2460_v59 = vsub.f32 %v7892_v34, %v8164_v11  ;;  %v2464_v8 = vsub.f32 %v2112_v7, %v8164_v11  ;;  %v8192_v36 = vmax.f32 %v2311_v0, %v2312_v21  ;;  %v9814_v7 = vld [vmem:[#allocation50_spill] sm:$0xff] }
 0x325   : > { %3334 = vrot.lane.b32.xlu2 %v8170_v9, %s5744_s22  ;;  %3462 = vrot.lane.b32.xlu0 %v8174_v48, %s5743_s15  ;;  %v2300_v34 = vsel %vm360_vm0, %v8155_v13, -inf  ;;  %v8228_v6 = vsel %vm360_vm0, %v8177_v55, -inf  ;;  %v8251_v55 = vsel %vm360_vm0, %v8218_v57, -inf }
 0x326   : > { %3206 = vrot.lane.b32.xlu1 %v8181_v29, %s5742_s11  ;;  %v2660_v27 = vmul.f32 1.442695, %v2452_v24  ;;  %v2676_v0 = vmul.f32 1.442695, %v2460_v59  ;;  %v8209_v21 = vmax.f32 %v8023_v54, %v2300_v34  ;;  %5067 = vmatmul.msk.bf16.vlgmr.msrb.gmra.mxu1 %vm360_vm0, %v9815_v5  ;;  %v2684_v43 = vmul.f32 1.442695, %v2464_v8  ;;  %v1661_v59 = vpop.f32.mrf.mxu3  ;;  %v1746_v54 = vpop.f32.mrf.mxu2 }
 0x327   : > { %5068 = vmatmul.msk.bf16.vlgmr.msrb.gmra.mxu2 %vm360_vm0, %v9816_v42  ;;  %v8222_v24 = vmul.f32 %v7999_v16, %v9817_v52  ;;  %v9819_v34 = vld [vmem:[#allocation30_spill] sm:$0xff]  ;;  %9820 = vst [vmem:[#allocation24_spill] sm:$0xff] %v8228_v6  ;;  %v8235_v8 = vmul.f32 %v6197_v12, %v1702_v35  ;;  %v9821_v16 = vld [vmem:[#allocation29_spill] sm:$0xff] }
 0x328   : > { %5070 = vmatmul.msk.bf16.vlgmr.msra.gmra.mxu0 %vm360_vm0, %v9819_v34  ;;  %v2453_v5 = vsub.f32 %v7903_v53, %v8209_v21  ;;  %v2457_v56 = vsub.f32 %v7906_v19, %v8209_v21  ;;  %5069 = vmatmul.msk.bf16.vlgmr.msrb.gmra.mxu3 %vm360_vm0, %v9821_v16  ;;  %v3723_v34 = vpack.c.bf16 %v8181_v29, %v8181_v29  ;;  %5453 = vpow2.f32 %v2660_v27  ;;  %v8255_v29 = vpop.permute.xlu1 %3188 }
 0x329   : > { %9818 = vst [vmem:[#allocation48_spill] sm:$0xff] %v8222_v24  ;;  %v8239_v52 = vpop.eup %5451  ;;  %v2465_v53 = vsub.f32 %v8155_v13, %v8209_v21  ;;  %5455 = vpow2.f32 %v2676_v0  ;;  %v3720_v42 = vpack.c.bf16 %v8222_v24, %v8222_v24  ;;  %v8259_v13 = vsel %vm360_vm0, %v8235_v8, -inf }
 0x32a   : > { %v2890_v19 = vsel %vm360_vm0, %v8239_v52, 0.0  ;;  %v2662_v35 = vmul.f32 1.442695, %v2453_v5  ;;  %v2670_v14 = vmul.f32 1.442695, %v2457_v56  ;;  %5457 = vpow2.f32 %v2684_v43  ;;  %v9822_v5 = vld [vmem:[#allocation55_spill] sm:$0xff] }
 0x32b   : > { %v2891_v16 = vadd.f32 %v2890_v19, %v2889_v50  ;;  %v2114_v27 = vmul.f32 %v6197_v12, %v1661_v59  ;;  %v8263_v0 = vmul.f32 %v6197_v12, %v1746_v54  ;;  %v3902_v50 = vpop.f32.mrf.mxu0  ;;  %v8272_v56 = vmul.f32 %v8077_v49, %v9822_v5  ;;  %v9824_v19 = vld [vmem:[#allocation17_spill] sm:$0xff]  ;;  %v1705_v54 = vpop.f32.mrf.mxu1 }
 0x32c   : > { %5459 = vpow2.f32 %v2662_v35  ;;  %v8276_v59 = vmul.f32 %v8157_v18, %v9824_v19  ;;  %v2686_v35 = vmul.f32 1.442695, %v2465_v53  ;;  %4777 = vst.msk [vmem:[%s8289_s27 + $0x18] sm:$0xff] %vm360_vm0, %v3902_v50  ;;  %v8306_v19 = vpop.permute.xlu2 %3446  ;;  %v8367_v37 = vmul.f32 %v6197_v12, %v1705_v54 }
 0x32d   : > { %3464 = vrot.lane.b32.xlu2 %v8068_v45, %s5743_s15  ;;  %3208 = vrot.lane.b32.xlu0 %v8072_v15, %s5742_s11  ;;  %v2893_v43 = vadd.f32 %v7973_v46, %v2891_v16  ;;  %5461 = vpow2.f32 %v2670_v14  ;;  %9823 = vst [vmem:[#allocation20_spill] sm:$0xff] %v8272_v56  ;;  %v2307_v45 = vsel %vm360_vm0, %v2114_v27, -inf  ;;  %v8283_v15 = vsel %vm360_vm0, %v8263_v0, -inf }
 0x32e   : > { %9825 = vst [vmem:[#allocation50_spill] sm:$0xff] %v8276_v59  ;;  %3336 = vrot.lane.b32.xlu1 %v8087_v1, %s5744_s22  ;;  %v9826_v46 = vpack.c.bf16 %v8091_v44, %v8091_v44  ;;  %v8293_v18 = vpop.eup %5453  ;;  %v8297_v14 = vmul.f32 %v6197_v12, %v2015_v17  ;;  %v2308_v53 = vmax.f32 %v8118_v32, %v2307_v45  ;;  %v4314_v17 = vunpack.c.l.b16 %v3723_v34  ;;  %v8318_v16 = vpop.f32.mrf.mxu3 }
 0x32f   : > { %9827 = vst [vmem:[#allocation27_spill] sm:$0xff] %v8293_v18  ;;  %v2895_v1 = vadd.f32 %v7977_v20, %v2893_v43  ;;  %v8302_v5 = vpop.eup %5455  ;;  %v3718_v50 = vpack.c.bf16 %v8272_v56, %v8272_v56  ;;  %v3719_v20 = vpack.c.bf16 %v8276_v59, %v8276_v59  ;;  %v8314_v32 = vunpack.c.l.b16 %v3720_v42  ;;  %v8320_v44 = vpop.f32.mrf.mxu2 }
 0x330   : > { %v4313_v49 = vunpack.c.l.b16 %v9826_v46  ;;  %9828 = vst [vmem:[#allocation28_spill] sm:$0xff] %v8297_v14  ;;  %v8312_v43 = vpop.eup %5457  ;;  %v2454_v45 = vsub.f32 %v7980_v38, %v2308_v53  ;;  %v2458_v46 = vsub.f32 %v7997_v33, %v2308_v53  ;;  %v2462_v6 = vsub.f32 %v8048_v3, %v2308_v53 }
 0x331   : > { %9829 = vst [vmem:[#allocation54_spill] sm:$0xff] %v8312_v43  ;;  %5463 = vrcp.f32 %v2895_v1  ;;  %v2466_v59 = vsub.f32 %v2114_v27, %v2308_v53  ;;  %v4283_v34 = vunpack.c.l.b16 %v3719_v20  ;;  %v8329_v42 = vsel %vm360_vm0, %v8297_v14, -inf }
 0x332   : > { %v8322_v24 = vpop.eup %5459  ;;  %5465 = vpow2.f32 %v2686_v35  ;;  %9832 = vst [vmem:[#allocation55_spill] sm:$0xff] %v8329_v42  ;;  %v2664_v38 = vmul.f32 1.442695, %v2454_v45  ;;  %v2672_v1 = vmul.f32 1.442695, %v2458_v46  ;;  %v4317_v33 = vpack.c.b16 %v4314_v17, %v4313_v49  ;;  %v8347_v17 = vpop.permute.xlu1 %3318 }
 0x333   : > { %9830 = vst [vmem:[#allocation30_spill] sm:$0xff] %v8322_v24  ;;  %v8325_v56 = vpop.eup %5461  ;;  %v8333_v2 = vsel %vm360_vm0, %v8293_v18, 0.0  ;;  %v8337_v35 = vsel %vm360_vm0, %v8302_v5, 0.0  ;;  %v2680_v3 = vmul.f32 1.442695, %v2462_v6  ;;  %v4282_v27 = vunpack.c.l.b16 %v3718_v50  ;;  %v3904_v53 = vpop.f32.mrf.mxu0 }
 0x334   : > { %9831 = vst [vmem:[#allocation29_spill] sm:$0xff] %v8325_v56  ;;  %v8341_v20 = vsel %vm360_vm0, %v8312_v43, 0.0  ;;  %v8345_v45 = vsel %vm360_vm0, %v8322_v24, 0.0  ;;  %5467 = vpow2.f32 %v2664_v38  ;;  %v2688_v49 = vmul.f32 1.442695, %v2466_v59 }
 0x335   : > { %v8351_v46 = vsel %vm360_vm0, %v8325_v56, 0.0  ;;  %5469 = vpow2.f32 %v2672_v1  ;;  %v4286_v6 = vpack.c.b16 %v4283_v34, %v4282_v27  ;;  %v8354_v50 = vsel %vm360_vm0, %v4317_v33, 0  ;;  %v8369_v1 = vpop.f32.mrf.mxu1  ;;  %v3445_v27 = vpop.permute.xlu0 %3444 }
 0x336   : > { %5471 = vpow2.f32 %v2680_v3  ;;  %v9833_v14 = vpack.c.bf16 %v8170_v9, %v8170_v9  ;;  %v9834_v59 = vpack.c.bf16 %v8174_v48, %v8174_v48  ;;  %v9836_v48 = vpack.c.bf16 %v8095_v58, %v8095_v58 }
 0x337   : > { %v5464_v53 = vpop.eup %5463  ;;  %5473 = vpow2.f32 %v2688_v49 }
 0x338   : > { %v8359_v42 = vunpack.c.l.b16 %v9833_v14  ;;  %v8364_v38 = vunpack.c.l.b16 %v9834_v59  ;;  %v8371_v34 = vpop.eup %5465  ;;  %v3083_v33 = vmul.f32 %v5464_v53, %v8239_v52  ;;  %v3087_v3 = vmul.f32 %v5464_v53, %v7940_v10  ;;  %v9838_v52 = vld [vmem:[#allocation19_spill] sm:$0xff] }
 0x339   : > { %v3091_v9 = vmul.f32 %v5464_v53, %v7947_v28  ;;  %v8377_v14 = vmul.f32 %v5464_v53, %v7930_v26  ;;  %v8382_v54 = vunpack.c.l.b16 %v9836_v48  ;;  %v9837_v59 = vpack.c.bf16 %v8105_v23, %v8105_v23  ;;  %v8392_v28 = vpop.f32.mrf.mxu2  ;;  %v8394_v26 = vpop.f32.mrf.mxu3 }
 0x33a   : > { %v3532_v10 = vsel %vm360_vm0, %v9838_v52, %v8255_v29  ;;  %v3725_v53 = vpack.c.bf16 %v3083_v33, %v3083_v33  ;;  %3210 = vrot.lane.b32.xlu2 %v3083_v33, %s5742_s11  ;;  %v3729_v49 = vpack.c.bf16 %v3087_v3, %v3087_v3  ;;  %3338 = vrot.lane.b32.xlu0 %v3087_v3, %s5744_s22  ;;  %v8399_v48 = vsel %vm360_vm0, %v4286_v6, 0  ;;  %v8401_v23 = vpop.eup %5467  ;;  %v3195_v52 = vpop.permute.xlu2 %3194 }
 0x33b   : > { %9835 = vst [vmem:[#allocation17_spill] sm:$0xff] %v8377_v14  ;;  %v8387_v24 = vunpack.c.l.b16 %v9837_v59  ;;  %v3733_v58 = vpack.c.bf16 %v3091_v9, %v3091_v9  ;;  %3466 = vrot.lane.b32.xlu1 %v3091_v9, %s5743_s15  ;;  %v3721_v29 = vpack.c.bf16 %v8377_v14, %v8377_v14  ;;  %v4348_v59 = vpack.c.b16 %v8359_v42, %v8382_v54  ;;  %v8414_v6 = vpop.eup %5469  ;;  %v4026_v56 = vpop.f32.mrf.mxu0 }
 0x33c   : > { %9839 = vst [vmem:[#allocation19_spill] sm:$0xff] %v8401_v23  ;;  %v8412_v3 = vsel %vm360_vm0, %v8367_v37, -inf  ;;  %v4316_v31 = vunpack.c.l.b16 %v3725_v53  ;;  %v4347_v18 = vunpack.c.l.b16 %v3729_v49  ;;  %v2910_v9 = vsel %vm360_vm0, %v8401_v23, 0.0  ;;  %v8418_v14 = vpop.eup %5471 }
 0x33d   : > { %v4379_v33 = vpack.c.b16 %v8364_v38, %v8387_v24  ;;  %v4378_v62 = vunpack.c.l.b16 %v3733_v58  ;;  %v4285_v42 = vunpack.c.l.b16 %v3721_v29  ;;  %v2911_v24 = vsel %vm360_vm0, %v8414_v6, 0.0  ;;  %v8429_v39 = vpop.eup %5473  ;;  %4781 = vst.msk [vmem:[%s8289_s27 + $0x38] sm:$0xff] %vm360_vm0, %v4026_v56 }
 0x33e   : > { %v3565_v38 = vsel %vm3556_vm3, %v3532_v10, %v8060_v30  ;;  %v2115_v54 = vmul.f32 %v6197_v12, %v8318_v16  ;;  %v4318_v53 = vpack.c.b16 %v4316_v31, %v8147_v22  ;;  %v4349_v49 = vpack.c.b16 %v4347_v18, %v8159_v41  ;;  %v3193_v31 = vpop.permute.xlu1 %3192  ;;  %v3321_v18 = vpop.permute.xlu0 %3320 }
 0x33f   : > { %v4380_v58 = vpack.c.b16 %v4378_v62, %v8145_v63  ;;  %v2912_v23 = vadd.f32 %v2911_v24, %v2910_v9  ;;  %v4287_v29 = vpack.c.b16 %v4285_v42, %v8314_v32  ;;  %v2913_v43 = vsel %vm360_vm0, %v8418_v14, 0.0  ;;  %v1876_v9 = vpop.f32.mrf.mxu1 }
 0x340   : > { %v3598_v30 = vsel %vm3589_vm4, %v3565_v38, %v3445_v27  ;;  %v2314_v16 = vsel %vm360_vm0, %v2115_v54, -inf  ;;  %v4325_v22 = vsel %vm360_vm0, %v4318_v53, 0  ;;  %v4356_v62 = vsel %vm360_vm0, %v4349_v49, 0 }
 0x341   : > { %v4387_v63 = vsel %vm360_vm0, %v4380_v58, 0  ;;  %v2914_v41 = vadd.f32 %v2913_v43, %v2912_v23  ;;  %3630 = vst [vmem:[%s7452_s21 + $0x40] sm:$0xff] %v3598_v30  ;;  %v4294_v32 = vsel %vm360_vm0, %v4287_v29, 0  ;;  %4333 = vmatpush.bf16.xpose.msra.mxu2 %v4325_v22  ;;  %4364 = vmatpush.bf16.xpose.msra.mxu3 %v4356_v62  ;;  %v2915_v27 = vsel %vm360_vm0, %v8429_v39, 0.0  ;;  %v1790_v42 = vpop.f32.mrf.mxu3  ;;  %v1920_v58 = vpop.f32.mrf.mxu2 }
 0x342   : > { %v8446_v10 = vmax.f32 %v8192_v36, %v2314_v16  ;;  %v8450_v56 = vmul.f32 %v6197_v12, %v8320_v44  ;;  %4302 = vmatpush.bf16.xpose.msra.mxu1 %v4294_v32  ;;  %4395 = vmatpush.bf16.xpose.msrb.mxu0 %v4387_v63  ;;  %v8454_v23 = vmul.f32 %v6197_v12, %v8369_v1  ;;  %v3323_v16 = vpop.permute.xlu2 %3322 }
 0x343   : > { %v2916_v43 = vadd.f32 %v2915_v27, %v2914_v41  ;;  %v3566_v24 = vsel %vm3556_vm3, %v8200_v40, %v8347_v17  ;;  %v9840_v36 = vsub.f32 %v9814_v7, %v8164_v11  ;;  %v4353_v40 = vsel %vm360_vm0, %v4348_v59, 0  ;;  %v9841_v7 = vld [vmem:[#allocation16_spill] sm:$0xff]  ;;  %v9842_v41 = vld [vmem:[#allocation15_spill] sm:$0xff] }
 0x344   : > { %v2455_v44 = vsub.f32 %v8058_v4, %v8446_v10  ;;  %v2463_v53 = vsub.f32 %v8137_v61, %v8446_v10  ;;  %v2467_v49 = vsub.f32 %v2115_v54, %v8446_v10  ;;  %v8469_v1 = vsel %vm360_vm0, %v8450_v56, -inf }
 0x345   : > { %v2668_v38 = vmul.f32 1.442695, %v9840_v36  ;;  %v4384_v17 = vsel %vm360_vm0, %v4379_v33, 0  ;;  %v2332_v11 = vmax.f32 %v8412_v3, %v8469_v1  ;;  %v3599_v4 = vsel %vm3589_vm4, %v3566_v24, %v8306_v19  ;;  %v4028_v19 = vpop.f32.mrf.mxu0 }
 0x346   : > { %v3535_v61 = vsel %vm360_vm0, %v9841_v7, %v3195_v52  ;;  %v2666_v29 = vmul.f32 1.442695, %v2455_v44  ;;  %v2682_v54 = vmul.f32 1.442695, %v2463_v53  ;;  %v2690_v30 = vmul.f32 1.442695, %v2467_v49  ;;  %v3449_v27 = vpop.permute.xlu1 %3448  ;;  %v3451_v36 = vpop.permute.xlu0 %3450 }
 0x347   : > { %3631 = vst [vmem:[%s7452_s21 + $0x48] sm:$0xff] %v3599_v4  ;;  %v8482_v22 = vmul.f32 %v6197_v12, %v8392_v28  ;;  %v2124_v59 = vmul.f32 %v6197_v12, %v8394_v26  ;;  %5475 = vpow2.f32 %v2668_v38  ;;  %v8487_v33 = vmul.f32 %v6197_v12, %v1876_v9  ;;  %v9844_v53 = vld [vmem:[#allocation53_spill] sm:$0xff] }
 0x348   : > { %5477 = vrcp.f32 %v2916_v43  ;;  %v8491_v52 = vsel %vm360_vm0, %v8454_v23, -inf  ;;  %v8494_v62 = vmul.f32 %v6197_v12, %v1790_v42  ;;  %v8497_v63 = vmul.f32 %v6197_v12, %v1920_v58 }
 0x349   : > { %5479 = vpow2.f32 %v2666_v29  ;;  %v2319_v28 = vsel %vm360_vm0, %v2124_v59, -inf  ;;  %v8502_v26 = vsel %vm360_vm0, %v8487_v33, -inf  ;;  %v3534_v32 = vsel %vm360_vm0, %v9842_v41, %v3193_v31  ;;  %4334 = vmatpush.bf16.xpose.msra.mxu2 %v8354_v50  ;;  %4365 = vmatpush.bf16.xpose.msra.mxu3 %v4353_v40  ;;  %v1793_v38 = vpop.f32.mrf.mxu3  ;;  %v1878_v40 = vpop.f32.mrf.mxu1 }
 0x34a   : > { %5481 = vpow2.f32 %v2682_v54  ;;  %v3568_v9 = vsel %vm3556_vm3, %v3535_v61, %v3323_v16  ;;  %v8510_v42 = vsel %vm360_vm0, %v8482_v22, -inf  ;;  %v9843_v43 = vmax.f32 %v8196_v47, %v8251_v55  ;;  %4303 = vmatpush.bf16.xpose.msra.mxu1 %v8399_v48  ;;  %4396 = vmatpush.bf16.xpose.msrb.mxu0 %v4384_v17  ;;  %v1922_v54 = vpop.f32.mrf.mxu2 }
 0x34b   : > { %5483 = vpow2.f32 %v2690_v30  ;;  %v2326_v50 = vsel %vm360_vm0, %v8494_v62, -inf  ;;  %v8520_v31 = vsel %vm360_vm0, %v8497_v63, -inf  ;;  %v2461_v44 = vsub.f32 %v7965_v51, %v8209_v21 }
 0x34c   : > { %v2320_v24 = vmax.f32 %v9843_v43, %v2319_v28  ;;  %v3567_v47 = vsel %vm3556_vm3, %v3534_v32, %v3321_v18  ;;  %v9845_v48 = vmax.f32 %v8259_v13, %v8283_v15  ;;  %v3601_v21 = vsel %vm3589_vm4, %v3568_v9, %v3451_v36  ;;  %v9846_v28 = vld [vmem:[#allocation21_spill] sm:$0xff] }
 0x34d   : > { %v8533_v17 = vpop.eup %5475  ;;  %v2678_v4 = vmul.f32 1.442695, %v2461_v44  ;;  %v3600_v51 = vsel %vm3589_vm4, %v3567_v47, %v3449_v27  ;;  %v8538_v7 = vmul.f32 %v6197_v12, %v1793_v38  ;;  %v2908_v16 = vsel %vm360_vm0, %v8371_v34, 0.0  ;;  %3633 = vst [vmem:[%s7452_s21 + $0x58] sm:$0xff] %v3601_v21  ;;  %v8563_v27 = vpop.permute.xlu2 %3452  ;;  %v9850_v47 = vld [vmem:[#allocation34_spill] sm:$0xff] }
 0x34e   : > { %v8525_v55 = vmax.f32 %v2320_v24, %v9844_v53  ;;  %v2327_v49 = vmax.f32 %v9845_v48, %v2326_v50  ;;  %v8540_v18 = vpop.eup %5477  ;;  %v2897_v29 = vsel %vm360_vm0, %v8533_v17, 0.0  ;;  %3632 = vst [vmem:[%s7452_s21 + $0x50] sm:$0xff] %v3600_v51  ;;  %v9848_v24 = vld [vmem:[#allocation33_spill] sm:$0xff]  ;;  %v8577_v44 = vmul.f32 %v6197_v12, %v1878_v40  ;;  %v9849_v53 = vld [vmem:[#allocation31_spill] sm:$0xff] }
 0x34f   : > { %v8550_v30 = vpop.eup %5479  ;;  %v2898_v19 = vadd.f32 %v2897_v29, %v8333_v2  ;;  %5485 = vpow2.f32 %v2678_v4  ;;  %v2333_v9 = vsel %vm360_vm0, %v8538_v7, -inf  ;;  %v9847_v2 = vld [vmem:[#allocation32_spill] sm:$0xff]  ;;  %v8615_v1 = vmul.f32 %v8540_v18, %v8429_v39 }
 0x350   : > { %v2468_v13 = vsub.f32 %v8152_v25, %v8525_v55  ;;  %v2472_v15 = vsub.f32 %v8218_v57, %v8525_v55  ;;  %v2476_v61 = vsub.f32 %v2124_v59, %v8525_v55  ;;  %v8556_v41 = vmax.f32 %v2327_v49, %v9846_v28  ;;  %v8559_v57 = vpop.eup %5481  ;;  %5072 = vmatmul.msk.bf16.vlgmr.msra.gmra.mxu2 %vm360_vm0, %v9847_v2 }
 0x351   : > { %v8567_v43 = vpop.eup %5483  ;;  %5073 = vmatmul.msk.bf16.vlgmr.msra.gmra.mxu3 %vm360_vm0, %v9848_v24  ;;  %v2900_v38 = vadd.f32 %v8337_v35, %v2898_v19  ;;  %5071 = vmatmul.msk.bf16.vlgmr.msra.gmra.mxu1 %vm360_vm0, %v9849_v53  ;;  %v2905_v35 = vadd.f32 %v8351_v46, %v8345_v45  ;;  %v2334_v4 = vmax.f32 %v2332_v11, %v2333_v9  ;;  %v1881_v11 = vpop.f32.mrf.mxu1 }
 0x352   : > { %v2692_v59 = vmul.f32 1.442695, %v2468_v13  ;;  %v2700_v32 = vmul.f32 1.442695, %v2472_v15  ;;  %v2708_v36 = vmul.f32 1.442695, %v2476_v61  ;;  %v2469_v50 = vsub.f32 %v8235_v8, %v8556_v41  ;;  %5074 = vmatmul.msk.bf16.vlgmr.msrb.gmra.mxu0 %vm360_vm0, %v9850_v47  ;;  %v8617_v15 = vpop.permute.xlu1 %3196  ;;  %v1925_v9 = vpop.f32.mrf.mxu2 }
 0x353   : > { %v2473_v48 = vsub.f32 %v8263_v0, %v8556_v41  ;;  %v2477_v49 = vsub.f32 %v8494_v62, %v8556_v41  ;;  %v2902_v8 = vadd.f32 %v8341_v20, %v2900_v38  ;;  %v8594_v13 = vmul.f32 %v6197_v12, %v1922_v54  ;;  %v1795_v54 = vpop.f32.mrf.mxu3 }
 0x354   : > { %5487 = vpow2.f32 %v2692_v59  ;;  %v2694_v40 = vmul.f32 1.442695, %v2469_v50  ;;  %v8600_v62 = vsel %vm360_vm0, %v8559_v57, 0.0  ;;  %v8604_v20 = vsel %vm360_vm0, %v8577_v44, -inf  ;;  %v9852_v59 = vld [vmem:[#allocation47_spill] sm:$0xff] }
 0x355   : > { %5489 = vpow2.f32 %v2700_v32  ;;  %v2702_v51 = vmul.f32 1.442695, %v2473_v48  ;;  %v2710_v21 = vmul.f32 1.442695, %v2477_v49  ;;  %v8596_v0 = vpop.eup %5485  ;;  %v2336_v45 = vmax.f32 %v2334_v4, %v7888_v60 }
 0x356   : > { %5491 = vpow2.f32 %v2708_v36  ;;  %v2906_v46 = vsel %vm360_vm0, %v8596_v0, 0.0  ;;  %v8611_v3 = vsel %vm360_vm0, %v8594_v13, -inf  ;;  %v8637_v47 = vmul.f32 %v8540_v18, %v8414_v6 }
 0x357   : > { %5493 = vrcp.f32 %v2902_v8  ;;  %v2907_v61 = vadd.f32 %v2906_v46, %v2905_v35  ;;  %v2470_v29 = vsub.f32 %v8367_v37, %v2336_v45  ;;  %v2474_v60 = vsub.f32 %v8450_v56, %v2336_v45 }
 0x358   : > { %5495 = vpow2.f32 %v2694_v40  ;;  %v2478_v28 = vsub.f32 %v8538_v7, %v2336_v45  ;;  %v2482_v32 = vsub.f32 %v9852_v59, %v2336_v45  ;;  %v3199_v7 = vpop.permute.xlu2 %3198  ;;  %v8641_v48 = vmul.f32 %v8540_v18, %v8418_v14  ;;  %v9854_v14 = vld [vmem:[#allocation54_spill] sm:$0xff] }
 0x359   : > { %5497 = vpow2.f32 %v2702_v51  ;;  %v2909_v37 = vadd.f32 %v2908_v16, %v2907_v61  ;;  %v2696_v36 = vmul.f32 1.442695, %v2470_v29  ;;  %v2704_v56 = vmul.f32 1.442695, %v2474_v60  ;;  %v9857_v60 = vld [vmem:[#allocation51_spill] sm:$0xff] }
 0x35a   : > { %v8621_v19 = vpop.eup %5487  ;;  %5499 = vpow2.f32 %v2710_v21  ;;  %v2712_v53 = vmul.f32 1.442695, %v2478_v28  ;;  %v2720_v35 = vmul.f32 1.442695, %v2482_v32  ;;  %v3748_v8 = vpack.c.bf16 %v8615_v1, %v8615_v1 }
 0x35b   : > { %9851 = vst [vmem:[#allocation16_spill] sm:$0xff] %v8621_v19  ;;  %v8627_v2 = vpop.eup %5489  ;;  %v2924_v24 = vsel %vm360_vm0, %v8621_v19, 0.0  ;;  %5501 = vrcp.f32 %v2909_v37  ;;  %v8665_v45 = vsel %vm360_vm0, %v8567_v43, 0.0  ;;  %v8683_v28 = vsel %vm360_vm0, %v9857_v60, %v3199_v7  ;;  %v1883_v7 = vpop.f32.mrf.mxu1 }
 0x35c   : > { %v8631_v38 = vpop.eup %5491  ;;  %v2925_v50 = vsel %vm360_vm0, %v8627_v2, 0.0  ;;  %5503 = vpow2.f32 %v2696_v36  ;;  %v3740_v59 = vpack.c.bf16 %v8637_v47, %v8637_v47  ;;  %v8691_v37 = vunpack.c.l.b16 %v3748_v8 }
 0x35d   : > { %v8643_v49 = vpop.eup %5493  ;;  %v2926_v16 = vadd.f32 %v2925_v50, %v2924_v24  ;;  %v2927_v46 = vsel %vm360_vm0, %v8631_v38, 0.0  ;;  %5505 = vpow2.f32 %v2704_v56  ;;  %v3744_v56 = vpack.c.bf16 %v8641_v48, %v8641_v48 }
 0x35e   : > { %v8647_v40 = vpop.eup %5495  ;;  %v8651_v4 = vmul.f32 %v8643_v49, %v8533_v17  ;;  %v8655_v6 = vmul.f32 %v8643_v49, %v8302_v5  ;;  %v8659_v51 = vmul.f32 %v8643_v49, %v9854_v14  ;;  %5507 = vpow2.f32 %v2712_v53 }
 0x35f   : > { %9853 = vst [vmem:[#allocation15_spill] sm:$0xff] %v8647_v40  ;;  %v8661_v21 = vpop.eup %5497  ;;  %v2931_v17 = vsel %vm360_vm0, %v8647_v40, 0.0  ;;  %v8673_v61 = vadd.f32 %v2927_v46, %v2926_v16  ;;  %5509 = vpow2.f32 %v2720_v35  ;;  %v8698_v50 = vmul.f32 %v6197_v12, %v1881_v11  ;;  %v3325_v16 = vpop.permute.xlu1 %3324 }
 0x360   : > { %9855 = vst [vmem:[#allocation53_spill] sm:$0xff] %v8661_v21  ;;  %v8671_v5 = vpop.eup %5499  ;;  %3212 = vrot.lane.b32.xlu1 %v8651_v4, %s5742_s11  ;;  %3340 = vrot.lane.b32.xlu2 %v8655_v6, %s5744_s22  ;;  %v2932_v29 = vsel %vm360_vm0, %v8661_v21, 0.0  ;;  %v2127_v53 = vmul.f32 %v6197_v12, %v1795_v54  ;;  %v8706_v8 = vmul.f32 %v6197_v12, %v1925_v9  ;;  %v1927_v9 = vpop.f32.mrf.mxu2  ;;  %v8732_v39 = vunpack.c.l.b16 %v3740_v59 }
 0x361   : > { %9856 = vst [vmem:[#allocation21_spill] sm:$0xff] %v8671_v5  ;;  %3468 = vrot.lane.b32.xlu0 %v8659_v51, %s5743_s15  ;;  %v2933_v24 = vadd.f32 %v2932_v29, %v2931_v17  ;;  %v2934_v36 = vsel %vm360_vm0, %v8671_v5, 0.0  ;;  %v8700_v14 = vpop.eup %5501  ;;  %v9861_v17 = vld [vmem:[#allocation56_spill] sm:$0xff]  ;;  %v1964_v29 = vpop.f32.mrf.mxu3  ;;  %v8737_v58 = vunpack.c.l.b16 %v3744_v56  ;;  %v9865_v5 = vmax.f32 %v8491_v52, %v8510_v42 }
 0x362   : > { %9858 = vst [vmem:[#allocation32_spill] sm:$0xff] %v8698_v50  ;;  %v2459_v35 = vsub.f32 %v9861_v17, %v8446_v10  ;;  %v8710_v60 = vpop.eup %5503  ;;  %v8722_v54 = vmul.f32 %v8700_v14, %v8371_v34  ;;  %v9863_v10 = vld [vmem:[#allocation29_spill] sm:$0xff]  ;;  %v2340_v32 = vsel %vm360_vm0, %v2127_v53, -inf  ;;  %v8741_v34 = vsel %vm360_vm0, %v8698_v50, -inf  ;;  %v8743_v25 = vpop.permute.xlu2 %3328 }
 0x363   : > { %v8702_v46 = vadd.f32 %v2934_v36, %v2933_v24  ;;  %9860 = vst [vmem:[#allocation31_spill] sm:$0xff] %v8706_v8  ;;  %v8718_v24 = vmul.f32 %v8700_v14, %v8596_v0  ;;  %v8724_v36 = vpop.eup %5505  ;;  %v8728_v17 = vmul.f32 %v8700_v14, %v9863_v10  ;;  %v2938_v11 = vsel %vm360_vm0, %v8710_v60, 0.0  ;;  %v9864_v10 = vld [vmem:[#allocation58_spill] sm:$0xff] }
 0x364   : > { %9862 = vst [vmem:[#allocation34_spill] sm:$0xff] %v8710_v60  ;;  %v2939_v0 = vsel %vm360_vm0, %v8724_v36, 0.0  ;;  %v3536_v40 = vsel %vm360_vm0, %v9864_v10, %v8617_v15  ;;  %v8748_v19 = vpop.eup %5507  ;;  %v2341_v21 = vmax.f32 %v9865_v5, %v2340_v32  ;;  %v8755_v56 = vsel %vm360_vm0, %v8706_v8, -inf  ;;  %v3809_v10 = vpop.f32.mrf.mxu1 }
 0x365   : > { %9859 = vst [vmem:[#allocation33_spill] sm:$0xff] %v8702_v46  ;;  %v2940_v59 = vadd.f32 %v2939_v0, %v2938_v11  ;;  %v2674_v46 = vmul.f32 1.442695, %v2459_v35  ;;  %v8757_v50 = vpop.eup %5509  ;;  %v2941_v52 = vsel %vm360_vm0, %v8748_v19, 0.0  ;;  %v8768_v42 = vmul.f32 %v6197_v12, %v1883_v7  ;;  %v9867_v35 = vld [vmem:[#allocation23_spill] sm:$0xff] }
 0x366   : > { %v3569_v15 = vsel %vm3556_vm3, %v3536_v40, %v3325_v16  ;;  %v8776_v11 = vmax.f32 %v2341_v21, %v9867_v35  ;;  %v2943_v0 = vsel %vm360_vm0, %v8757_v50, 0.0  ;;  %v8783_v40 = vmul.f32 %v6197_v12, %v1927_v9  ;;  %4774 = vst.msk [vmem:[%s8289_s27] sm:$0xff] %vm360_vm0, %v3809_v10 }
 0x367   : > { %9866 = vst [vmem:[#allocation47_spill] sm:$0xff] %v8768_v42  ;;  %v2942_v32 = vadd.f32 %v2941_v52, %v2940_v59  ;;  %5511 = vpow2.f32 %v2674_v46  ;;  %v3602_v7 = vsel %vm3589_vm4, %v3569_v15, %v8563_v27  ;;  %v2140_v16 = vmul.f32 %v6197_v12, %v1964_v29  ;;  %v3327_v52 = vpop.permute.xlu0 %3326 }
 0x368   : > { %3342 = vrot.lane.b32.xlu1 %v8718_v24, %s5744_s22  ;;  %3470 = vrot.lane.b32.xlu2 %v8722_v54, %s5743_s15  ;;  %v2471_v59 = vsub.f32 %v8454_v23, %v8776_v11  ;;  %v2475_v21 = vsub.f32 %v8482_v22, %v8776_v11  ;;  %v2479_v46 = vsub.f32 %v2127_v53, %v8776_v11  ;;  %v2917_v9 = vsel %vm360_vm0, %v8550_v30, 0.0  ;;  %v3455_v23 = vpop.permute.xlu1 %3454 }
 0x369   : > { %3214 = vrot.lane.b32.xlu0 %v8728_v17, %s5742_s11  ;;  %v2944_v5 = vadd.f32 %v2943_v0, %v2942_v32  ;;  %3634 = vst [vmem:[%s7452_s21 + $0x60] sm:$0xff] %v3602_v7  ;;  %v8798_v29 = vsel %vm360_vm0, %v8768_v42, -inf  ;;  %v2347_v15 = vsel %vm360_vm0, %v2140_v16, -inf  ;;  %v1966_v22 = vpop.f32.mrf.mxu3  ;;  %v3570_v7 = vsel %vm3556_vm3, %v8683_v28, %v3327_v52  ;;  %v9869_v42 = vld [vmem:[#allocation18_spill] sm:$0xff]  ;;  %v9870_v0 = vld [vmem:[#allocation19_spill] sm:$0xff] }
 0x36a   : > { %v2698_v53 = vmul.f32 1.442695, %v2471_v59  ;;  %v2706_v32 = vmul.f32 1.442695, %v2475_v21  ;;  %v2714_v35 = vmul.f32 1.442695, %v2479_v46  ;;  %v9868_v27 = vmax.f32 %v8502_v26, %v8520_v31  ;;  %v3840_v21 = vpop.f32.mrf.mxu2  ;;  %v8834_v31 = vpop.permute.xlu2 %3458 }
 0x36b   : > { %v8809_v60 = vsel %vm360_vm0, %v8783_v40, -inf  ;;  %v2480_v59 = vsub.f32 %v9869_v42, %v8525_v55  ;;  %v8820_v8 = vmul.f32 %v8540_v18, %v9870_v0  ;;  %v3603_v28 = vsel %vm3589_vm4, %v3570_v7, %v3455_v23  ;;  %4775 = vst.msk [vmem:[%s8289_s27 + $0x8] sm:$0xff] %vm360_vm0, %v3840_v21  ;;  %v9871_v55 = vld [vmem:[#allocation59_spill] sm:$0xff] }
 0x36c   : > { %v2348_v10 = vmax.f32 %v9868_v27, %v2347_v15  ;;  %5513 = vpow2.f32 %v2698_v53  ;;  %v8824_v52 = vmul.f32 %v6197_v12, %v1966_v22  ;;  %3635 = vst [vmem:[%s7452_s21 + $0x68] sm:$0xff] %v3603_v28  ;;  %v9872_v42 = vld [vmem:[#allocation27_spill] sm:$0xff]  ;;  %v3811_v7 = vpop.f32.mrf.mxu1  ;;  %v9876_v28 = vld [vmem:[#allocation60_spill] sm:$0xff] }
 0x36d   : > { %v8816_v46 = vpop.eup %5511  ;;  %5515 = vpow2.f32 %v2706_v32  ;;  %v8840_v27 = vmul.f32 %v8643_v49, %v9872_v42  ;;  %v2716_v15 = vmul.f32 1.442695, %v2480_v59  ;;  %v9873_v32 = vld [vmem:[#allocation57_spill] sm:$0xff] }
 0x36e   : > { %v2918_v26 = vsel %vm360_vm0, %v8816_v46, 0.0  ;;  %v2350_v18 = vmax.f32 %v2348_v10, %v9871_v55  ;;  %5517 = vpow2.f32 %v2714_v35 }
 0x36f   : > { %5519 = vpow2.f32 %v2716_v15 }
 0x370   : > { %3472 = vrot.lane.b32.xlu1 %v8615_v1, %s5743_s15  ;;  %3216 = vrot.lane.b32.xlu2 %v8637_v47, %s5742_s11  ;;  %v2919_v1 = vadd.f32 %v2918_v26, %v2917_v9  ;;  %v2354_v47 = vsel %vm360_vm0, %v8824_v52, -inf  ;;  %v2484_v23 = vsub.f32 %v8487_v33, %v2350_v18  ;;  %v2488_v22 = vsub.f32 %v8497_v63, %v2350_v18  ;;  %v9875_v9 = vld [vmem:[#allocation30_spill] sm:$0xff] }
 0x371   : > { %3344 = vrot.lane.b32.xlu0 %v8641_v48, %s5744_s22  ;;  %v2492_v53 = vsub.f32 %v2140_v16, %v2350_v18  ;;  %v2496_v0 = vsub.f32 %v9873_v32, %v2350_v18  ;;  %v9874_v48 = vmax.f32 %v8604_v20, %v8611_v3  ;;  %v8855_v10 = vmul.f32 %v8700_v14, %v9875_v9  ;;  %v9877_v32 = vld [vmem:[#allocation25_spill] sm:$0xff] }
 0x372   : > { %v2921_v49 = vadd.f32 %v8600_v62, %v2919_v1  ;;  %5521 = vrcp.f32 %v2944_v5  ;;  %v2724_v59 = vmul.f32 1.442695, %v2484_v23  ;;  %v2732_v33 = vmul.f32 1.442695, %v2488_v22  ;;  %v8859_v16 = vpop.eup %5513  ;;  %v3842_v18 = vpop.f32.mrf.mxu2 }
 0x373   : > { %v2355_v35 = vmax.f32 %v9874_v48, %v2354_v47  ;;  %v3736_v63 = vpack.c.bf16 %v8820_v8, %v8820_v8  ;;  %v2740_v62 = vmul.f32 1.442695, %v2492_v53  ;;  %v3734_v20 = vpack.c.bf16 %v8840_v27, %v8840_v27  ;;  %v8865_v3 = vpop.eup %5515 }
 0x374   : > { %v2923_v21 = vadd.f32 %v8665_v45, %v2921_v49  ;;  %v2945_v14 = vsel %vm360_vm0, %v8859_v16, 0.0  ;;  %5523 = vpow2.f32 %v2724_v59  ;;  %v2748_v5 = vmul.f32 1.442695, %v2496_v0  ;;  %v8871_v42 = vpop.eup %5517 }
 0x375   : > { %v2357_v26 = vmax.f32 %v2355_v35, %v9876_v28  ;;  %v3735_v55 = vpack.c.bf16 %v8855_v10, %v8855_v10  ;;  %v2946_v45 = vsel %vm360_vm0, %v8865_v3, 0.0  ;;  %v2948_v23 = vsel %vm360_vm0, %v8871_v42, 0.0  ;;  %v8880_v53 = vpop.eup %5519 }
 0x376   : > { %5525 = vrcp.f32 %v2923_v21  ;;  %v2947_v47 = vadd.f32 %v2946_v45, %v2945_v14  ;;  %v2929_v9 = vsel %vm360_vm0, %v8880_v53, 0.0  ;;  %v9879_v14 = vpack.c.bf16 %v8651_v4, %v8651_v4 }
 0x377   : > { %v2485_v1 = vsub.f32 %v8577_v44, %v2357_v26  ;;  %v2489_v15 = vsub.f32 %v8594_v13, %v2357_v26  ;;  %5527 = vpow2.f32 %v2732_v33  ;;  %v2493_v22 = vsub.f32 %v8824_v52, %v2357_v26  ;;  %v3205_v13 = vpop.permute.xlu2 %3204 }
 0x378   : > { %5529 = vpow2.f32 %v2740_v62  ;;  %v2497_v0 = vsub.f32 %v9877_v32, %v2357_v26  ;;  %v8883_v48 = vpop.eup %5521  ;;  %v8885_v35 = vadd.f32 %v2948_v23, %v2947_v47  ;;  %v2367_v44 = vmax.f32 %v8798_v29, %v8809_v60  ;;  %v9878_v62 = vld [vmem:[#allocation20_spill] sm:$0xff]  ;;  %v9895_v29 = vld [vmem:[#allocation55_spill] sm:$0xff] }
 0x379   : > { %v2726_v7 = vmul.f32 1.442695, %v2485_v1  ;;  %v2734_v49 = vmul.f32 1.442695, %v2489_v15  ;;  %5531 = vpow2.f32 %v2748_v5  ;;  %v8891_v52 = vunpack.c.l.b16 %v3736_v63 }
 0x37a   : > { %v2930_v59 = vadd.f32 %v2929_v9, %v8673_v61  ;;  %v8894_v33 = vunpack.c.l.b16 %v3734_v20  ;;  %v8896_v21 = vpop.eup %5523  ;;  %v8900_v28 = vsel %vm360_vm0, %v9878_v62, %v3205_v13  ;;  %v2742_v26 = vmul.f32 1.442695, %v2493_v22  ;;  %v8940_v13 = vpop.permute.xlu0 %3456 }
 0x37b   : > { %5533 = vpow2.f32 %v2726_v7  ;;  %v8905_v5 = vunpack.c.l.b16 %v9879_v14  ;;  %v2952_v61 = vsel %vm360_vm0, %v8896_v21, 0.0  ;;  %v2750_v20 = vmul.f32 1.442695, %v2497_v0  ;;  %v4150_v14 = vpop.f32.mrf.mxu0 }
 0x37c   : > { %5535 = vpow2.f32 %v2734_v49  ;;  %v5526_v63 = vpop.eup %5525  ;;  %v4407_v18 = vunpack.c.l.b16 %v3735_v55  ;;  %v9880_v32 = vpack.c.bf16 %v8728_v17, %v8728_v17  ;;  %4785 = vst.msk [vmem:[%s8289_s27 + $0x58] sm:$0xff] %vm360_vm0, %v4150_v14 }
 0x37d   : > { %5537 = vrcp.f32 %v2930_v59  ;;  %v8909_v45 = vpop.eup %5527  ;;  %v3099_v1 = vmul.f32 %v5526_v63, %v8816_v46  ;;  %v3103_v15 = vmul.f32 %v5526_v63, %v8559_v57  ;;  %v3107_v47 = vmul.f32 %v5526_v63, %v8567_v43 }
 0x37e   : > { %v8915_v23 = vmul.f32 %v5526_v63, %v8550_v30  ;;  %v8917_v4 = vpop.eup %5529  ;;  %v2953_v22 = vsel %vm360_vm0, %v8909_v45, 0.0  ;;  %v8924_v55 = vunpack.c.l.b16 %v9880_v32  ;;  %v9881_v46 = vpack.c.bf16 %v8655_v6, %v8655_v6  ;;  %v3201_v63 = vpop.permute.xlu1 %3200 }
 0x37f   : > { %v9882_v57 = vpack.c.bf16 %v8718_v24, %v8718_v24  ;;  %v8936_v43 = vpop.eup %5531  ;;  %v3741_v7 = vpack.c.bf16 %v3099_v1, %v3099_v1  ;;  %3218 = vrot.lane.b32.xlu1 %v3099_v1, %s5742_s11  ;;  %v3745_v49 = vpack.c.bf16 %v3103_v15, %v3103_v15  ;;  %3346 = vrot.lane.b32.xlu2 %v3103_v15, %s5744_s22  ;;  %5539 = vpow2.f32 %v2742_v26  ;;  %v8974_v14 = vpop.permute.xlu2 %3334 }
 0x380   : > { %v8929_v0 = vunpack.c.l.b16 %v9881_v46  ;;  %v3749_v17 = vpack.c.bf16 %v3107_v47, %v3107_v47  ;;  %3474 = vrot.lane.b32.xlu0 %v3107_v47, %s5743_s15  ;;  %v2954_v24 = vadd.f32 %v2953_v22, %v2952_v61  ;;  %v2955_v9 = vsel %vm360_vm0, %v8917_v4, 0.0  ;;  %v1969_v47 = vpop.f32.mrf.mxu3 }
 0x381   : > { %v8934_v30 = vunpack.c.l.b16 %v9882_v57  ;;  %v8942_v6 = vpop.eup %5533  ;;  %v3737_v59 = vpack.c.bf16 %v8915_v23, %v8915_v23  ;;  %v4410_v62 = vpack.c.b16 %v4407_v18, %v8894_v33  ;;  %v4440_v15 = vunpack.c.l.b16 %v3741_v7 }
 0x382   : > { %v8950_v1 = vpop.eup %5535  ;;  %v4471_v32 = vunpack.c.l.b16 %v3745_v49  ;;  %v4502_v26 = vunpack.c.l.b16 %v3749_v17  ;;  %5541 = vpow2.f32 %v2750_v20  ;;  %v2956_v22 = vadd.f32 %v2955_v9, %v2954_v24 }
 0x383   : > { %v8954_v61 = vpop.eup %5537  ;;  %v2957_v46 = vsel %vm360_vm0, %v8936_v43, 0.0  ;;  %v4409_v57 = vunpack.c.l.b16 %v3737_v59  ;;  %v2959_v33 = vsel %vm360_vm0, %v8942_v6, 0.0  ;;  %v4442_v18 = vpack.c.b16 %v4440_v15, %v8732_v39  ;;  %v3933_v39 = vpop.f32.mrf.mxu1 }
 0x384   : > { %v4473_v7 = vpack.c.b16 %v4471_v32, %v8737_v58  ;;  %v4504_v20 = vpack.c.b16 %v4502_v26, %v8691_v37  ;;  %v8965_v49 = vmul.f32 %v8954_v61, %v8880_v53  ;;  %v2958_v17 = vadd.f32 %v2957_v46, %v2956_v22  ;;  %4778 = vst.msk [vmem:[%s8289_s27 + $0x20] sm:$0xff] %vm360_vm0, %v3933_v39 }
 0x385   : > { %v4411_v24 = vpack.c.b16 %v4409_v57, %v8891_v52  ;;  %v8970_v9 = vmul.f32 %v8954_v61, %v8631_v38  ;;  %v2960_v59 = vsel %vm360_vm0, %v8950_v1, 0.0  ;;  %v8976_v58 = vpop.eup %5539  ;;  %v4449_v37 = vsel %vm360_vm0, %v4442_v18, 0 }
 0x386   : > { %v4480_v53 = vsel %vm360_vm0, %v4473_v7, 0  ;;  %v4511_v15 = vsel %vm360_vm0, %v4504_v20, 0  ;;  %v8983_v52 = vmul.f32 %v8954_v61, %v8627_v2  ;;  %4457 = vmatpush.bf16.xpose.msrb.mxu2 %v4449_v37  ;;  %v4415_v32 = vsel %vm360_vm0, %v4410_v62, 0  ;;  %v9885_v62 = vld [vmem:[#allocation26_spill] sm:$0xff] }
 0x387   : > { %v4418_v38 = vsel %vm360_vm0, %v4411_v24, 0  ;;  %4488 = vmatpush.bf16.xpose.msrb.mxu3 %v4480_v53  ;;  %v4441_v26 = vpack.c.b16 %v8924_v55, %v8905_v5  ;;  %v9883_v22 = vpack.c.bf16 %v8659_v51, %v8659_v51  ;;  %5543 = vrcp.f32 %v2958_v17  ;;  %4519 = vmatpush.bf16.xpose.msra.mxu0 %v4511_v15  ;;  %v9886_v17 = vld [vmem:[#allocation22_spill] sm:$0xff]  ;;  %v3203_v53 = vpop.permute.xlu0 %3202 }
 0x388   : > { %v8994_v57 = vpop.eup %5541  ;;  %4426 = vmatpush.bf16.xpose.msrb.mxu1 %v4418_v38  ;;  %v3762_v2 = vpack.c.bf16 %v8965_v49, %v8965_v49  ;;  %v3758_v18 = vpack.c.bf16 %v8970_v9, %v8970_v9  ;;  %v2961_v7 = vadd.f32 %v2960_v59, %v2959_v33  ;;  %3476 = vrot.lane.b32.xlu2 %v8965_v49, %s5743_s15  ;;  %v2962_v51 = vsel %vm360_vm0, %v8976_v58, 0.0  ;;  %v4152_v33 = vpop.f32.mrf.mxu0 }
 0x389   : > { %v4499_v46 = vunpack.c.l.b16 %v9883_v22  ;;  %3348 = vrot.lane.b32.xlu1 %v8970_v9, %s5744_s22  ;;  %v9884_v5 = vpack.c.bf16 %v8722_v54, %v8722_v54  ;;  %v2481_v20 = vsub.f32 %v9885_v62, %v8556_v41  ;;  %v3538_v24 = vsel %vm360_vm0, %v9886_v17, %v3201_v63  ;;  %v3331_v59 = vpop.permute.xlu1 %3330  ;;  %3220 = vrot.lane.b32.xlu0 %v8983_v52, %s5742_s11  ;;  %v1971_v41 = vpop.f32.mrf.mxu3 }
 0x38a   : > { %v2963_v39 = vadd.f32 %v2962_v51, %v2961_v7  ;;  %v4472_v37 = vpack.c.b16 %v8934_v30, %v8929_v0  ;;  %v3571_v54 = vsel %vm3556_vm3, %v3538_v24, %v8743_v25  ;;  %v2142_v15 = vmul.f32 %v6197_v12, %v1969_v47  ;;  %v3964_v7 = vpop.f32.mrf.mxu2  ;;  %v9887_v47 = vld [vmem:[#allocation52_spill] sm:$0xff] }
 0x38b   : > { %v4500_v55 = vunpack.c.l.b16 %v9884_v5  ;;  %v2964_v63 = vsel %vm360_vm0, %v8994_v57, 0.0  ;;  %v2718_v22 = vmul.f32 1.442695, %v2481_v20  ;;  %v3604_v5 = vsel %vm3589_vm4, %v3571_v54, %v8940_v13  ;;  %4779 = vst.msk [vmem:[%s8289_s27 + $0x28] sm:$0xff] %vm360_vm0, %v3964_v7  ;;  %v9055_v54 = vpop.permute.xlu2 %3464  ;;  %v9894_v7 = vld [vmem:[#allocation61_spill] sm:$0xff] }
 0x38c   : > { %v2965_v51 = vadd.f32 %v2964_v63, %v2963_v39  ;;  %3636 = vst [vmem:[%s7452_s21 + $0x70] sm:$0xff] %v3604_v5  ;;  %v2361_v0 = vsel %vm360_vm0, %v2142_v15, -inf  ;;  %v9028_v25 = vmul.f32 %v8883_v48, %v8748_v19  ;;  %v9032_v30 = vmul.f32 %v8883_v48, %v8724_v36  ;;  %v3935_v19 = vpop.f32.mrf.mxu1 }
 0x38d   : > { %v4503_v38 = vpack.c.b16 %v4500_v55, %v4499_v46  ;;  %5545 = vpow2.f32 %v2718_v22  ;;  %v3539_v46 = vsel %vm360_vm0, %v9887_v47, %v3203_v53  ;;  %v9888_v13 = vmax.f32 %v8741_v34, %v8755_v56  ;;  %v9045_v20 = vpop.eup %5543  ;;  %v9889_v56 = vld [vmem:[#allocation24_spill] sm:$0xff] }
 0x38e   : > { %v9041_v62 = vmul.f32 %v8883_v48, %v8757_v50  ;;  %v4446_v36 = vsel %vm360_vm0, %v4441_v26, 0  ;;  %v4477_v17 = vsel %vm360_vm0, %v4472_v37, 0  ;;  %v3572_v24 = vsel %vm3556_vm3, %v3539_v46, %v3331_v59  ;;  %v9890_v59 = vld [vmem:[#allocation49_spill] sm:$0xff]  ;;  %v9891_v37 = vld [vmem:[#allocation34_spill] sm:$0xff] }
 0x38f   : > { %v2362_v55 = vmax.f32 %v9888_v13, %v2361_v0  ;;  %v2143_v33 = vmul.f32 %v6197_v12, %v1971_v41  ;;  %v3754_v34 = vpack.c.bf16 %v8983_v52, %v8983_v52  ;;  %4458 = vmatpush.bf16.xpose.msrb.mxu2 %v4446_v36  ;;  %4489 = vmatpush.bf16.xpose.msrb.mxu3 %v4477_v17  ;;  %v4508_v50 = vsel %vm360_vm0, %v4503_v38, 0  ;;  %v9892_v41 = vld [vmem:[#allocation32_spill] sm:$0xff]  ;;  %v9893_v38 = vld [vmem:[#allocation31_spill] sm:$0xff]  ;;  %v3333_v0 = vpop.permute.xlu0 %3332 }
 0x390   : > { %v3605_v26 = vsel %vm3589_vm4, %v3572_v24, %v8834_v31  ;;  %5547 = vrcp.f32 %v2965_v51  ;;  %4427 = vmatpush.bf16.xpose.msrb.mxu1 %v4415_v32  ;;  %4520 = vmatpush.bf16.xpose.msra.mxu0 %v4508_v50  ;;  %v2483_v52 = vsub.f32 %v9890_v59, %v8776_v11  ;;  %v9065_v53 = vmul.f32 %v8883_v48, %v9891_v37  ;;  %v9896_v50 = vld [vmem:[#allocation33_spill] sm:$0xff] }
 0x391   : > { %v2364_v39 = vmax.f32 %v2362_v55, %v9889_v56  ;;  %3637 = vst [vmem:[%s7452_s21 + $0x78] sm:$0xff] %v3605_v26  ;;  %v2368_v12 = vsel %vm360_vm0, %v2143_v33, -inf  ;;  %v3760_v32 = vpack.c.bf16 %v9028_v25, %v9028_v25  ;;  %v3764_v51 = vpack.c.bf16 %v9041_v62, %v9041_v62  ;;  %v3871_v47 = vpop.f32.mrf.mxu3  ;;  %v3461_v19 = vpop.permute.xlu1 %3460  ;;  %v9898_v59 = vld [vmem:[#allocation37_spill] sm:$0xff] }
 0x392   : > { %v2369_v11 = vmax.f32 %v2367_v44, %v2368_v12  ;;  %v2722_v48 = vmul.f32 1.442695, %v2483_v52  ;;  %v3573_v55 = vsel %vm3556_vm3, %v8900_v28, %v3333_v0  ;;  %v3966_v36 = vpop.f32.mrf.mxu2  ;;  %v9081_v17 = vunpack.c.l.b16 %v3754_v34  ;;  %4776 = vst.msk [vmem:[%s8289_s27 + $0x10] sm:$0xff] %vm360_vm0, %v3871_v47  ;;  %v9897_v34 = vld [vmem:[#allocation36_spill] sm:$0xff]  ;;  %v9899_v52 = vld [vmem:[#allocation47_spill] sm:$0xff] }
 0x393   : > { %v2486_v63 = vsub.f32 %v9892_v41, %v2364_v39  ;;  %v2490_v22 = vsub.f32 %v9893_v38, %v2364_v39  ;;  %v2494_v5 = vsub.f32 %v2142_v15, %v2364_v39  ;;  %v2498_v31 = vsub.f32 %v9894_v7, %v2364_v39  ;;  %v9077_v46 = vpop.eup %5545  ;;  %v9900_v38 = vld [vmem:[#allocation35_spill] sm:$0xff]  ;;  %v9902_v7 = vld [vmem:[#allocation28_spill] sm:$0xff] }
 0x394   : > { %v2936_v24 = vsel %vm360_vm0, %v9077_v46, 0.0  ;;  %v2371_v44 = vmax.f32 %v2369_v11, %v9895_v29  ;;  %5549 = vpow2.f32 %v2722_v48  ;;  %v3606_v28 = vsel %vm3589_vm4, %v3573_v55, %v3461_v19  ;;  %v4057_v26 = vpop.f32.mrf.mxu1 }
 0x395   : > { %v2728_v13 = vmul.f32 1.442695, %v2486_v63  ;;  %v2736_v15 = vmul.f32 1.442695, %v2490_v22  ;;  %v2744_v60 = vmul.f32 1.442695, %v2494_v5  ;;  %v2937_v56 = vadd.f32 %v2936_v24, %v9896_v50 }
 0x396   : > { %v2752_v39 = vmul.f32 1.442695, %v2498_v31  ;;  %v9090_v12 = vpop.eup %5547  ;;  %5076 = vmatmul.msk.bf16.vlgmr.msrb.gmra.mxu2 %vm360_vm0, %v9897_v34  ;;  %5077 = vmatmul.msk.bf16.vlgmr.msrb.gmra.mxu3 %vm360_vm0, %v9898_v59  ;;  %v2487_v37 = vsub.f32 %v9899_v52, %v2371_v44  ;;  %v2491_v41 = vsub.f32 %v8783_v40, %v2371_v44  ;;  %v2495_v63 = vsub.f32 %v2143_v33, %v2371_v44  ;;  %v9901_v22 = vld [vmem:[#allocation38_spill] sm:$0xff] }
 0x397   : > { %5551 = vpow2.f32 %v2728_v13  ;;  %5075 = vmatmul.msk.bf16.vlgmr.msrb.gmra.mxu1 %vm360_vm0, %v9900_v38  ;;  %5078 = vmatmul.msk.bf16.vlgmr.msra.gmra.mxu0 %vm360_vm0, %v9901_v22  ;;  %v9102_v5 = vunpack.c.l.b16 %v3760_v32  ;;  %v2499_v31 = vsub.f32 %v9902_v7, %v2371_v44  ;;  %3638 = vst [vmem:[%s7452_s21 + $0x80] sm:$0xff] %v3606_v28  ;;  %v3752_v11 = vpack.c.bf16 %v9065_v53, %v9065_v53  ;;  %v3211_v13 = vpop.permute.xlu2 %3210  ;;  %v3463_v55 = vpop.permute.xlu0 %3462  ;;  %v9904_v59 = vld [vmem:[#allocation50_spill] sm:$0xff]  ;;  %v9905_v38 = vld [vmem:[#allocation53_spill] sm:$0xff] }
 0x398   : > { %5553 = vpow2.f32 %v2736_v15  ;;  %v2730_v48 = vmul.f32 1.442695, %v2487_v37  ;;  %v2738_v40 = vmul.f32 1.442695, %v2491_v41  ;;  %v2746_v33 = vmul.f32 1.442695, %v2495_v63 }
 0x399   : > { %5555 = vrcp.f32 %v2937_v56  ;;  %v9108_v0 = vunpack.c.l.b16 %v3764_v51  ;;  %v2754_v47 = vmul.f32 1.442695, %v2499_v31  ;;  %4782 = vst.msk [vmem:[%s8289_s27 + $0x40] sm:$0xff] %vm360_vm0, %v4057_v26  ;;  %v3756_v32 = vpack.c.bf16 %v9032_v30, %v9032_v30  ;;  %v3873_v24 = vpop.f32.mrf.mxu3 }
 0x39a   : > { %5557 = vpow2.f32 %v2744_v60  ;;  %v9114_v15 = vpop.eup %5549  ;;  %v9118_v19 = vmul.f32 %v9045_v20, %v8936_v43  ;;  %v9122_v51 = vmul.f32 %v9045_v20, %v8917_v4  ;;  %v9126_v36 = vmul.f32 %v9045_v20, %v8909_v45  ;;  %v3207_v43 = vpop.permute.xlu1 %3206 }
 0x39b   : > { %5559 = vpow2.f32 %v2752_v39  ;;  %v2950_v29 = vsel %vm360_vm0, %v9114_v15, 0.0  ;;  %v9132_v44 = vunpack.c.l.b16 %v3752_v11  ;;  %v4088_v50 = vpop.f32.mrf.mxu2  ;;  %v9137_v4 = vunpack.c.l.b16 %v3758_v18  ;;  %v9903_v39 = vld [vmem:[#allocation17_spill] sm:$0xff] }
 0x39c   : > { %5561 = vpow2.f32 %v2730_v48  ;;  %v9145_v28 = vsel %vm360_vm0, %v9903_v39, %v3211_v13  ;;  %v2951_v26 = vadd.f32 %v2950_v29, %v8885_v35  ;;  %4783 = vst.msk [vmem:[%s8289_s27 + $0x48] sm:$0xff] %vm360_vm0, %v4088_v50  ;;  %v9152_v18 = vunpack.c.l.b16 %v3756_v32  ;;  %v4059_v37 = vpop.f32.mrf.mxu1  ;;  %v9906_v35 = vld [vmem:[#allocation21_spill] sm:$0xff] }
 0x39d   : > { %v9128_v60 = vpop.eup %5551  ;;  %5563 = vpow2.f32 %v2738_v40  ;;  %v3541_v52 = vsel %vm360_vm0, %v9904_v59, %v3207_v43  ;;  %v9907_v40 = vld [vmem:[#allocation16_spill] sm:$0xff] }
 0x39e   : > { %v9139_v56 = vpop.eup %5553  ;;  %v2966_v45 = vsel %vm360_vm0, %v9128_v60, 0.0  ;;  %5565 = vpow2.f32 %v2746_v33  ;;  %v3574_v48 = vsel %vm3556_vm3, %v3541_v52, %v8974_v14  ;;  %v9167_v33 = vmul.f32 %v8954_v61, %v9907_v40 }
 0x39f   : > { %v5556_v34 = vpop.eup %5555  ;;  %v2967_v9 = vsel %vm360_vm0, %v9139_v56, 0.0  ;;  %5567 = vpow2.f32 %v2754_v47  ;;  %v9908_v47 = vld [vmem:[#allocation15_spill] sm:$0xff]  ;;  %v9181_v61 = vunpack.c.l.b16 %v3762_v2  ;;  %v3607_v39 = vsel %vm3589_vm4, %v3574_v48, %v3463_v55  ;;  %v3209_v40 = vpop.permute.xlu0 %3208 }
 0x3a0   : > { %v9156_v41 = vpop.eup %5557  ;;  %v3121_v63 = vmul.f32 %v5556_v34, %v9077_v46  ;;  %v3113_v22 = vmul.f32 %v5556_v34, %v9905_v38  ;;  %v3117_v7 = vmul.f32 %v5556_v34, %v9906_v35  ;;  %v2968_v31 = vadd.f32 %v2967_v9, %v2966_v45  ;;  %3639 = vst [vmem:[%s7452_s21 + $0x88] sm:$0xff] %v3607_v39 }
 0x3a1   : > { %v9161_v11 = vpop.eup %5559  ;;  %5569 = vrcp.f32 %v2951_v26  ;;  %v9170_v13 = vmul.f32 %v5556_v34, %v9908_v47  ;;  %v2969_v29 = vsel %vm360_vm0, %v9156_v41, 0.0  ;;  %v3995_v59 = vpop.f32.mrf.mxu3  ;;  %v3750_v55 = vpack.c.bf16 %v9167_v33, %v9167_v33 }
 0x3a2   : > { %v9172_v32 = vpop.eup %5561  ;;  %3478 = vrot.lane.b32.xlu1 %v3121_v63, %s5743_s15  ;;  %3222 = vrot.lane.b32.xlu2 %v3113_v22, %s5742_s11  ;;  %v3755_v46 = vpack.c.bf16 %v3113_v22, %v3113_v22  ;;  %v3759_v24 = vpack.c.bf16 %v3117_v7, %v3117_v7  ;;  %v3763_v43 = vpack.c.bf16 %v3121_v63, %v3121_v63  ;;  %v2971_v34 = vsel %vm360_vm0, %v9161_v11, 0.0 }
 0x3a3   : > { %v9183_v14 = vpop.eup %5563  ;;  %3350 = vrot.lane.b32.xlu0 %v3117_v7, %s5744_s22  ;;  %v2970_v50 = vadd.f32 %v2969_v29, %v2968_v31  ;;  %v2973_v45 = vsel %vm360_vm0, %v9172_v32, 0.0  ;;  %v3751_v38 = vpack.c.bf16 %v9170_v13, %v9170_v13  ;;  %4780 = vst.msk [vmem:[%s8289_s27 + $0x30] sm:$0xff] %vm360_vm0, %v3995_v59  ;;  %v4090_v22 = vpop.f32.mrf.mxu2  ;;  %v3774_v7 = vpack.c.bf16 %v9122_v51, %v9122_v51 }
 0x3a4   : > { %v9189_v26 = vpop.eup %5565  ;;  %v2974_v49 = vsel %vm360_vm0, %v9183_v14, 0.0  ;;  %v9196_v2 = vunpack.c.l.b16 %v3755_v46  ;;  %v9198_v9 = vunpack.c.l.b16 %v3759_v24  ;;  %v9218_v29 = vunpack.c.l.b16 %v3763_v43  ;;  %v9909_v22 = vld [vmem:[#allocation48_spill] sm:$0xff] }
 0x3a5   : > { %v9200_v52 = vpop.eup %5567  ;;  %v2972_v37 = vadd.f32 %v2971_v34, %v2970_v50  ;;  %v2975_v63 = vadd.f32 %v2974_v49, %v2973_v45  ;;  %v2976_v35 = vsel %vm360_vm0, %v9189_v26, 0.0  ;;  %v3337_v49 = vpop.permute.xlu1 %3336  ;;  %v3542_v43 = vsel %vm360_vm0, %v9909_v22, %v3209_v40 }
 0x3a6   : > { %v4565_v31 = vpack.c.b16 %v9196_v2, %v9081_v17  ;;  %v4596_v48 = vpack.c.b16 %v9198_v9, %v9137_v4  ;;  %v2978_v24 = vsel %vm360_vm0, %v9200_v52, 0.0 }
 0x3a7   : > { %v5570_v47 = vpop.eup %5569  ;;  %5571 = vrcp.f32 %v2972_v37  ;;  %v2977_v46 = vadd.f32 %v2976_v35, %v2975_v63  ;;  %v4530_v37 = vunpack.c.l.b16 %v3750_v55  ;;  %v4531_v63 = vunpack.c.l.b16 %v3751_v38  ;;  %v4181_v35 = vpop.f32.mrf.mxu1 }
 0x3a8   : > { %v3123_v50 = vmul.f32 %v5570_v47, %v9114_v15  ;;  %v3119_v45 = vmul.f32 %v5570_v47, %v8871_v42  ;;  %v9223_v39 = vmul.f32 %v5570_v47, %v8865_v3  ;;  %v9226_v34 = vmul.f32 %v5570_v47, %v8859_v16  ;;  %v4274_v15 = vpop.f32.mrf.mxu0  ;;  %4786 = vst.msk [vmem:[%s8289_s27 + $0x60] sm:$0xff] %vm360_vm0, %v4181_v35 }
 0x3a9   : > { %v2979_v59 = vadd.f32 %v2978_v24, %v2977_v46  ;;  %4789 = vst.msk [vmem:[%s8289_s27 + $0x78] sm:$0xff] %vm360_vm0, %v4274_v15  ;;  %v9252_v46 = vmul.f32 %v9090_v12, %v8950_v1  ;;  %v4534_v22 = vpack.c.b16 %v4531_v63, %v4530_v37  ;;  %v3575_v35 = vsel %vm3556_vm3, %v3542_v43, %v3337_v49 }
 0x3aa   : > { %3352 = vrot.lane.b32.xlu2 %v9028_v25, %s5744_s22  ;;  %3224 = vrot.lane.b32.xlu1 %v9032_v30, %s5742_s11  ;;  %v3765_v3 = vpack.c.bf16 %v3123_v50, %v3123_v50  ;;  %v3757_v16 = vpack.c.bf16 %v9223_v39, %v9223_v39  ;;  %v3753_v42 = vpack.c.bf16 %v9226_v34, %v9226_v34 }
 0x3ab   : > { %3480 = vrot.lane.b32.xlu0 %v9041_v62, %s5743_s15  ;;  %5573 = vrcp.f32 %v2979_v59  ;;  %v3761_v55 = vpack.c.bf16 %v3119_v45, %v3119_v45  ;;  %v4627_v25 = vpack.c.b16 %v9218_v29, %v9181_v61  ;;  %v9246_v30 = vmul.f32 %v9090_v12, %v8976_v58  ;;  %v3997_v62 = vpop.f32.mrf.mxu3 }
 0x3ac   : > { %v4626_v38 = vunpack.c.l.b16 %v3765_v3  ;;  %v4564_v40 = vunpack.c.l.b16 %v3757_v16  ;;  %v4533_v47 = vunpack.c.l.b16 %v3753_v42  ;;  %v9257_v58 = vmul.f32 %v9090_v12, %v8994_v57  ;;  %v4212_v57 = vpop.f32.mrf.mxu2  ;;  %v3339_v63 = vpop.permute.xlu0 %3338 }
 0x3ad   : > { %v5572_v24 = vpop.eup %5571  ;;  %v4595_v59 = vunpack.c.l.b16 %v3761_v55  ;;  %v3608_v1 = vsel %vm3589_vm4, %v3575_v35, %v9055_v54  ;;  %4787 = vst.msk [vmem:[%s8289_s27 + $0x68] sm:$0xff] %vm360_vm0, %v4212_v57  ;;  %v3771_v57 = vpack.c.bf16 %v9252_v46, %v9252_v46 }
 0x3ae   : > { %v4535_v15 = vpack.c.b16 %v4533_v47, %v9132_v44  ;;  %v4566_v3 = vpack.c.b16 %v4564_v40, %v9152_v18  ;;  %v4628_v16 = vpack.c.b16 %v4626_v38, %v9108_v0  ;;  %3640 = vst [vmem:[%s7452_s21 + $0x90] sm:$0xff] %v3608_v1  ;;  %v9267_v37 = vmul.f32 %v5572_v24, %v9156_v41  ;;  %v3467_v38 = vpop.permute.xlu1 %3466 }
 0x3af   : > { %v4597_v42 = vpack.c.b16 %v4595_v59, %v9102_v5  ;;  %v9270_v49 = vmul.f32 %v5572_v24, %v9139_v56  ;;  %v9274_v44 = vmul.f32 %v9045_v20, %v8896_v21  ;;  %v9283_v5 = vmul.f32 %v9090_v12, %v8942_v6  ;;  %v4183_v21 = vpop.f32.mrf.mxu1 }
 0x3b0   : > { %v4542_v18 = vsel %vm360_vm0, %v4535_v15, 0  ;;  %v4573_v0 = vsel %vm360_vm0, %v4566_v3, 0  ;;  %v4635_v54 = vsel %vm360_vm0, %v4628_v16, 0  ;;  %v9287_v20 = vmul.f32 %v5572_v24, %v9128_v60  ;;  %v4276_v40 = vpop.f32.mrf.mxu0 }
 0x3b1   : > { %v5574_v41 = vpop.eup %5573  ;;  %4550 = vmatpush.bf16.xpose.msra.mxu1 %v4542_v18  ;;  %4581 = vmatpush.bf16.xpose.msra.mxu2 %v4573_v0  ;;  %v4604_v56 = vsel %vm360_vm0, %v4597_v42, 0  ;;  %v9290_v43 = vmul.f32 %v5572_v24, %v9161_v11  ;;  %v3766_v55 = vpack.c.bf16 %v9274_v44, %v9274_v44  ;;  %v4539_v6 = vsel %vm360_vm0, %v4534_v22, 0 }
 0x3b2   : > { %3482 = vrot.lane.b32.xlu2 %v3123_v50, %s5743_s15  ;;  %3354 = vrot.lane.b32.xlu1 %v3119_v45, %s5744_s22  ;;  %v3576_v12 = vsel %vm3556_vm3, %v9145_v28, %v3339_v63  ;;  %v9300_v60 = vmul.f32 %v5574_v41, %v9200_v52  ;;  %v9303_v11 = vmul.f32 %v5574_v41, %v9189_v26  ;;  %v4570_v50 = vsel %vm360_vm0, %v4565_v31, 0 }
 0x3b3   : > { %3226 = vrot.lane.b32.xlu0 %v9223_v39, %s5742_s11  ;;  %4612 = vmatpush.bf16.xpose.msra.mxu3 %v4604_v56  ;;  %v3609_v28 = vsel %vm3589_vm4, %v3576_v12, %v3467_v38  ;;  %v9313_v45 = vmul.f32 %v5574_v41, %v9183_v14  ;;  %v9316_v52 = vmul.f32 %v5574_v41, %v9172_v32  ;;  %v4601_v26 = vsel %vm360_vm0, %v4596_v48, 0  ;;  %v4119_v39 = vpop.f32.mrf.mxu3 }
 0x3b4   : > { %4643 = vmatpush.bf16.xpose.msrb.mxu0 %v4635_v54  ;;  %3641 = vst [vmem:[%s7452_s21 + $0x98] sm:$0xff] %v3609_v28  ;;  %v3768_v17 = vpack.c.bf16 %v9287_v20, %v9287_v20  ;;  %v3772_v2 = vpack.c.bf16 %v9270_v49, %v9270_v49  ;;  %v3776_v14 = vpack.c.bf16 %v9267_v37, %v9267_v37  ;;  %v4214_v59 = vpop.f32.mrf.mxu2  ;;  %v4632_v18 = vsel %vm360_vm0, %v4627_v25, 0 }
 0x3b5   : > { %4784 = vst.msk [vmem:[%s8289_s27 + $0x50] sm:$0xff] %vm360_vm0, %v4119_v39  ;;  %v3769_v32 = vpack.c.bf16 %v9316_v52, %v9316_v52  ;;  %v3773_v4 = vpack.c.bf16 %v9313_v45, %v9313_v45  ;;  %v3777_v9 = vpack.c.bf16 %v9303_v11, %v9303_v11  ;;  %v3780_v31 = vpack.c.bf16 %v9290_v43, %v9290_v43  ;;  %v9915_v59 = vld [vmem:[#allocation43_spill] sm:$0xff] }
 0x3b6   : > { %v4656_v48 = vunpack.c.l.b16 %v3768_v17  ;;  %v4687_v47 = vunpack.c.l.b16 %v3772_v2  ;;  %v4718_v62 = vunpack.c.l.b16 %v3776_v14  ;;  %v3781_v24 = vpack.c.bf16 %v9300_v60, %v9300_v60 }
 0x3b7   : > { %v4657_v22 = vunpack.c.l.b16 %v3769_v32  ;;  %v4688_v35 = vunpack.c.l.b16 %v3773_v4  ;;  %v4719_v15 = vunpack.c.l.b16 %v3777_v9  ;;  %v4749_v3 = vunpack.c.l.b16 %v3780_v31  ;;  %v9911_v9 = vld [vmem:[#allocation40_spill] sm:$0xff] }
 0x3b8   : > { %v4750_v16 = vunpack.c.l.b16 %v3781_v24  ;;  %v3767_v1 = vpack.c.bf16 %v9283_v5, %v9283_v5  ;;  %v3770_v42 = vpack.c.bf16 %v9126_v36, %v9126_v36  ;;  %v4686_v12 = vunpack.c.l.b16 %v3771_v57  ;;  %v9914_v24 = vld [vmem:[#allocation45_spill] sm:$0xff] }
 0x3b9   : > { %4551 = vmatpush.bf16.xpose.msra.mxu1 %v4539_v6  ;;  %4582 = vmatpush.bf16.xpose.msra.mxu2 %v4570_v50  ;;  %v4659_v0 = vpack.c.b16 %v4657_v22, %v4656_v48  ;;  %v4690_v54 = vpack.c.b16 %v4688_v35, %v4687_v47  ;;  %v4721_v41 = vpack.c.b16 %v4719_v15, %v4718_v62  ;;  %v4654_v28 = vunpack.c.l.b16 %v3766_v55 }
 0x3ba   : > { %3484 = vrot.lane.b32.xlu1 %v9118_v19, %s5743_s15  ;;  %3228 = vrot.lane.b32.xlu2 %v9126_v36, %s5742_s11  ;;  %v4752_v56 = vpack.c.b16 %v4750_v16, %v4749_v3  ;;  %v4655_v63 = vunpack.c.l.b16 %v3767_v1  ;;  %v4685_v21 = vunpack.c.l.b16 %v3770_v42  ;;  %v3775_v6 = vpack.c.bf16 %v9246_v30, %v9246_v30  ;;  %v3341_v62 = vpop.permute.xlu2 %3340 }
 0x3bb   : > { %3356 = vrot.lane.b32.xlu0 %v9122_v51, %s5744_s22  ;;  %4613 = vmatpush.bf16.xpose.msra.mxu3 %v4601_v26  ;;  %v4666_v61 = vsel %vm360_vm0, %v4659_v0, 0  ;;  %v4697_v29 = vsel %vm360_vm0, %v4690_v54, 0  ;;  %v4728_v25 = vsel %vm360_vm0, %v4721_v41, 0  ;;  %v4121_v38 = vpop.f32.mrf.mxu3  ;;  %v3778_v50 = vpack.c.bf16 %v9118_v19, %v9118_v19  ;;  %v9910_v19 = vld [vmem:[#allocation39_spill] sm:$0xff]  ;;  %v9912_v51 = vld [vmem:[#allocation41_spill] sm:$0xff] }
 0x3bc   : > { %4644 = vmatpush.bf16.xpose.msrb.mxu0 %v4632_v18  ;;  %v4759_v36 = vsel %vm360_vm0, %v4752_v56, 0  ;;  %v4689_v40 = vpack.c.b16 %v4686_v12, %v4685_v21  ;;  %v4716_v26 = vunpack.c.l.b16 %v3774_v7  ;;  %v4717_v39 = vunpack.c.l.b16 %v3775_v6  ;;  %v9913_v7 = vld [vmem:[#allocation42_spill] sm:$0xff] }
 0x3bd   : > { %v3779_v17 = vpack.c.bf16 %v9257_v58, %v9257_v58  ;;  %v4658_v2 = vpack.c.b16 %v4655_v63, %v4654_v28  ;;  %v4747_v32 = vunpack.c.l.b16 %v3778_v50 }
 0x3be   : > { %v4720_v14 = vpack.c.b16 %v4717_v39, %v4716_v26  ;;  %v4694_v48 = vsel %vm360_vm0, %v4689_v40, 0 }
 0x3bf   : > { %v4748_v4 = vunpack.c.l.b16 %v3779_v17  ;;  %v4663_v31 = vsel %vm360_vm0, %v4658_v2, 0 }
 0x3c0   : > { %5079 = vmatmul.msk.bf16.vlgmr.msra.gmra.mxu1 %vm360_vm0, %v9910_v19  ;;  %5080 = vmatmul.msk.bf16.vlgmr.msra.gmra.mxu2 %vm360_vm0, %v9911_v9  ;;  %v4725_v47 = vsel %vm360_vm0, %v4720_v14, 0 }
 0x3c1   : > { %4674 = vmatpush.bf16.xpose.msrb.mxu1 %v4666_v61  ;;  %4705 = vmatpush.bf16.xpose.msrb.mxu2 %v4697_v29  ;;  %v4751_v55 = vpack.c.b16 %v4748_v4, %v4747_v32 }
 0x3c2   : > { %3358 = vrot.lane.b32.xlu2 %v9246_v30, %s5744_s22  ;;  %3230 = vrot.lane.b32.xlu1 %v9252_v46, %s5742_s11  ;;  %v3471_v3 = vpop.permute.xlu2 %3470 }
 0x3c3   : > { %4736 = vmatpush.bf16.xpose.msrb.mxu3 %v4728_v25  ;;  %5082 = vmatmul.msk.bf16.vlgmr.msrb.gmra.mxu0 %vm360_vm0, %v9913_v7  ;;  %v4243_v30 = vpop.f32.mrf.mxu3  ;;  %v4756_v46 = vsel %vm360_vm0, %v4751_v55, 0 }
 0x3c4   : > { %4767 = vmatpush.bf16.xpose.msra.mxu0 %v4759_v36  ;;  %5081 = vmatmul.msk.bf16.vlgmr.msra.gmra.mxu3 %vm360_vm0, %v9912_v51  ;;  %4788 = vst.msk [vmem:[%s8289_s27 + $0x70] sm:$0xff] %vm360_vm0, %v4243_v30 }
 0x3c5   : > { %3232 = vrot.lane.b32.xlu0 %v9270_v49, %s5742_s11 }
 0x3c9   : > { %4675 = vmatpush.bf16.xpose.msrb.mxu1 %v4663_v31  ;;  %4706 = vmatpush.bf16.xpose.msrb.mxu2 %v4694_v48 }
 0x3ca   : > { %3360 = vrot.lane.b32.xlu1 %v9267_v37, %s5744_s22  ;;  %3234 = vrot.lane.b32.xlu2 %v9313_v45, %s5742_s11  ;;  %v9916_v37 = vld [vmem:[#allocation44_spill] sm:$0xff]  ;;  %v3217_v21 = vpop.permute.xlu2 %3216 }
 0x3cb   : > { %4737 = vmatpush.bf16.xpose.msrb.mxu3 %v4725_v47  ;;  %v4245_v49 = vpop.f32.mrf.mxu3  ;;  %v3546_v61 = vsel %vm360_vm0, %v8820_v8, %v3217_v21 }
 0x3cc   : > { %4768 = vmatpush.bf16.xpose.msra.mxu0 %v4756_v46 }
 0x3cd   : > { %3362 = vrot.lane.b32.xlu0 %v9303_v11, %s5744_s22  ;;  %v9917_v11 = vld [vmem:[#allocation46_spill] sm:$0xff] }
 0x3ce   : > { %v4305_v45 = vpop.f32.mrf.mxu1 }
 0x3cf   : > { %v4398_v22 = vpop.f32.mrf.mxu0  ;;  %4790 = vst.msk [vmem:[%s8289_s27 + $0x80] sm:$0xff] %vm360_vm0, %v4305_v45 }
 0x3d0   : > { %5083 = vmatmul.msk.bf16.vlgmr.msrb.gmra.mxu1 %vm360_vm0, %v9914_v24  ;;  %5084 = vmatmul.msk.bf16.vlgmr.msrb.gmra.mxu2 %vm360_vm0, %v9915_v59  ;;  %4793 = vst.msk [vmem:[%s8289_s27 + $0x98] sm:$0xff] %vm360_vm0, %v4398_v22 }
 0x3d2   : > { %3490 = vrot.lane.b32.xlu1 %v9300_v60, %s5743_s15  ;;  %3488 = vrot.lane.b32.xlu2 %v9290_v43, %s5743_s15  ;;  %v3213_v35 = vpop.permute.xlu1 %3212 }
 0x3d3   : > { %5086 = vmatmul.msk.bf16.vlgmr.msra.gmra.mxu0 %vm360_vm0, %v9917_v11  ;;  %v3544_v60 = vsel %vm360_vm0, %v8840_v27, %v3213_v35  ;;  %v3469_v43 = vpop.permute.xlu0 %3468  ;;  %v4336_v1 = vpop.f32.mrf.mxu2 }
 0x3d4   : > { %5085 = vmatmul.msk.bf16.vlgmr.msrb.gmra.mxu3 %vm360_vm0, %v9916_v37  ;;  %v3577_v15 = vsel %vm3556_vm3, %v3544_v60, %v3341_v62  ;;  %v4367_v42 = vpop.f32.mrf.mxu3  ;;  %4791 = vst.msk [vmem:[%s8289_s27 + $0x88] sm:$0xff] %vm360_vm0, %v4336_v1 }
 0x3d5   : > { %3486 = vrot.lane.b32.xlu0 %v9257_v58, %s5743_s15  ;;  %v3610_v16 = vsel %vm3589_vm4, %v3577_v15, %v3469_v43  ;;  %4792 = vst.msk [vmem:[%s8289_s27 + $0x90] sm:$0xff] %vm360_vm0, %v4367_v42  ;;  %s5655_s15 = scalar_lea.hbm %s9570_s6, 512 }
 0x3d6   : > { %3642 = vst [vmem:[%s7452_s21 + $0xa0] sm:$0xff] %v3610_v16  ;;  %v4307_v58 = vpop.f32.mrf.mxu1  ;;  %p5657_p9 = scmp.lt.s32.totalorder %s5655_s15, %s5651_s7 }
 0x3d7   : > { %v4400_v57 = vpop.f32.mrf.mxu0 }
 0x3d8   : > { %p5658_p2 = por %p5657_p9, %p5656_p11 }
 0x3da   : > { %v3343_v27 = vpop.permute.xlu1 %3342  ;;  %p5659_p10 = pnand %p5658_p2, %p5654_p8 }
 0x3db   : > { %v3215_v18 = vpop.permute.xlu0 %3214  ;;  %v4338_v56 = vpop.f32.mrf.mxu2 }
 0x3dc   : > { %v3545_v0 = vsel %vm360_vm0, %v8855_v10, %v3215_v18  ;;  %v4369_v63 = vpop.f32.mrf.mxu3  ;;  %v3347_v10 = vpop.permute.xlu2 %3346 }
 0x3dd   : > { %v3578_v54 = vsel %vm3556_vm3, %v3545_v0, %v3343_v27 }
 0x3de   : > { %v3611_v41 = vsel %vm3589_vm4, %v3578_v54, %v3471_v3 }
 0x3df   : > { %3643 = vst [vmem:[%s7452_s21 + $0xa8] sm:$0xff] %v3611_v41 }
 0x3e2   : > { %v3473_v12 = vpop.permute.xlu1 %3472 }
 0x3e3   : > { %v3345_v29 = vpop.permute.xlu0 %3344 }
 0x3e4   : > { %v3579_v25 = vsel %vm3556_vm3, %v3546_v61, %v3345_v29  ;;  %v3477_v26 = vpop.permute.xlu2 %3476 }
 0x3e5   : > { %v3612_v6 = vsel %vm3589_vm4, %v3579_v25, %v3473_v12 }
 0x3e6   : > { %3644 = vst [vmem:[%s7452_s21 + $0xb0] sm:$0xff] %v3612_v6 }
 0x3f1   : > { %v3219_v36 = vpop.permute.xlu1 %3218 }
 0x3f2   : > { %v3547_v38 = vsel %vm360_vm0, %v8915_v23, %v3219_v36  ;;  %v3475_v50 = vpop.permute.xlu0 %3474 }
 0x3f3   : > { %v3580_v40 = vsel %vm3556_vm3, %v3547_v38, %v3347_v10 }
 0x3f4   : > { %v3613_v28 = vsel %vm3589_vm4, %v3580_v40, %v3475_v50 }
 0x3f5   : > { %3645 = vst [vmem:[%s7452_s21 + $0xb8] sm:$0xff] %v3613_v28 }
 0x3fb   : > { %v3349_v8 = vpop.permute.xlu1 %3348  ;;  %v3221_v39 = vpop.permute.xlu0 %3220 }
 0x3fc   : > { %v3548_v17 = vsel %vm360_vm0, %v9167_v33, %v3221_v39  ;;  %v3223_v23 = vpop.permute.xlu2 %3222 }
 0x3fd   : > { %v3581_v2 = vsel %vm3556_vm3, %v3548_v17, %v3349_v8  ;;  %v3549_v19 = vsel %vm360_vm0, %v9170_v13, %v3223_v23 }
 0x3fe   : > { %v3614_v14 = vsel %vm3589_vm4, %v3581_v2, %v3477_v26 }
 0x3ff   : > { %3646 = vst [vmem:[%s7452_s21 + $0xc0] sm:$0xff] %v3614_v14 }
 0x404   : > { %v3353_v32 = vpop.permute.xlu2 %3352 }
 0x40c   : > { %v3483_v33 = vpop.permute.xlu2 %3482 }
 0x414   : > { %v3479_v4 = vpop.permute.xlu1 %3478  ;;  %v4429_v51 = vpop.f32.mrf.mxu1 }
 0x415   : > { %v3351_v9 = vpop.permute.xlu0 %3350  ;;  %v4522_v7 = vpop.f32.mrf.mxu0  ;;  %4794 = vst.msk [vmem:[%s8289_s27 + $0xa0] sm:$0xff] %vm360_vm0, %v4429_v51 }
 0x416   : > { %v3582_v55 = vsel %vm3556_vm3, %v3549_v19, %v3351_v9  ;;  %4797 = vst.msk [vmem:[%s8289_s27 + $0xb8] sm:$0xff] %vm360_vm0, %v4522_v7  ;;  %v3229_v37 = vpop.permute.xlu2 %3228 }
 0x417   : > { %v3615_v31 = vsel %vm3589_vm4, %v3582_v55, %v3479_v4  ;;  %v3552_v16 = vsel %vm360_vm0, %v9274_v44, %v3229_v37 }
 0x418   : > { %3647 = vst [vmem:[%s7452_s21 + $0xc8] sm:$0xff] %v3615_v31 }
 0x419   : > { %v4460_v48 = vpop.f32.mrf.mxu2  ;;  %v4491_v47 = vpop.f32.mrf.mxu3 }
 0x41a   : > { %4795 = vst.msk [vmem:[%s8289_s27 + $0xa8] sm:$0xff] %vm360_vm0, %v4460_v48 }
 0x41b   : > { %4796 = vst.msk [vmem:[%s8289_s27 + $0xb0] sm:$0xff] %vm360_vm0, %v4491_v47 }
 0x41c   : > { %v3225_v30 = vpop.permute.xlu1 %3224  ;;  %v4431_v62 = vpop.f32.mrf.mxu1 }
 0x41d   : > { %v3550_v13 = vsel %vm360_vm0, %v9065_v53, %v3225_v30  ;;  %v3481_v46 = vpop.permute.xlu0 %3480  ;;  %v4524_v24 = vpop.f32.mrf.mxu0 }
 0x41e   : > { %v3583_v49 = vsel %vm3556_vm3, %v3550_v13, %v3353_v32  ;;  %v3359_v15 = vpop.permute.xlu2 %3358 }
 0x41f   : > { %v3616_v59 = vsel %vm3589_vm4, %v3583_v49, %v3481_v46 }
 0x420   : > { %3648 = vst [vmem:[%s7452_s21 + $0xd0] sm:$0xff] %v3616_v59 }
 0x421   : > { %v4462_v11 = vpop.f32.mrf.mxu2  ;;  %v4493_v45 = vpop.f32.mrf.mxu3 }
 0x424   : > { %v3355_v22 = vpop.permute.xlu1 %3354 }
 0x425   : > { %v3227_v35 = vpop.permute.xlu0 %3226 }
 0x426   : > { %v3551_v53 = vsel %vm360_vm0, %v9226_v34, %v3227_v35  ;;  %v3235_v34 = vpop.permute.xlu2 %3234 }
 0x427   : > { %v3584_v60 = vsel %vm3556_vm3, %v3551_v53, %v3355_v22 }
 0x428   : > { %v3617_v43 = vsel %vm3589_vm4, %v3584_v60, %v3483_v33 }
 0x429   : > { %3649 = vst [vmem:[%s7452_s21 + $0xd8] sm:$0xff] %v3617_v43 }
 0x42c   : > { %v3485_v3 = vpop.permute.xlu1 %3484 }
 0x42d   : > { %v3357_v1 = vpop.permute.xlu0 %3356 }
 0x42e   : > { %v3585_v42 = vsel %vm3556_vm3, %v3552_v16, %v3357_v1  ;;  %v3489_v54 = vpop.permute.xlu2 %3488 }
 0x42f   : > { %v3618_v58 = vsel %vm3589_vm4, %v3585_v42, %v3485_v3 }
 0x430   : > { %3650 = vst [vmem:[%s7452_s21 + $0xe0] sm:$0xff] %v3618_v58 }
 0x434   : > { %v3231_v57 = vpop.permute.xlu1 %3230 }
 0x435   : > { %v3553_v61 = vsel %vm360_vm0, %v9283_v5, %v3231_v57 }
 0x436   : > { %v3586_v36 = vsel %vm3556_vm3, %v3553_v61, %v3359_v15 }
 0x437   : > { %v3233_v27 = vpop.permute.xlu0 %3232 }
 0x438   : > { %v3554_v18 = vsel %vm360_vm0, %v9287_v20, %v3233_v27  ;;  %v3555_v20 = vsel %vm360_vm0, %v9316_v52, %v3235_v34 }
 0x43c   : > { %v3361_v0 = vpop.permute.xlu1 %3360 }
 0x43d   : > { %v3587_v44 = vsel %vm3556_vm3, %v3554_v18, %v3361_v0  ;;  %v4553_v41 = vpop.f32.mrf.mxu1 }
 0x43e   : > { %v3620_v56 = vsel %vm3589_vm4, %v3587_v44, %v3489_v54  ;;  %4798 = vst.msk [vmem:[%s8289_s27 + $0xc0] sm:$0xff] %vm360_vm0, %v4553_v41 }
 0x43f   : > { %v3363_v63 = vpop.permute.xlu0 %3362  ;;  %3652 = vst [vmem:[%s7452_s21 + $0xf0] sm:$0xff] %v3620_v56 }
 0x440   : > { %v4646_v21 = vpop.f32.mrf.mxu0  ;;  %v3588_v12 = vsel %vm3556_vm3, %v3555_v20, %v3363_v63 }
 0x441   : > { %4801 = vst.msk [vmem:[%s8289_s27 + $0xd8] sm:$0xff] %vm360_vm0, %v4646_v21 }
 0x443   : > { %v4584_v29 = vpop.f32.mrf.mxu2 }
 0x444   : > { %v3491_v25 = vpop.permute.xlu1 %3490  ;;  %4799 = vst.msk [vmem:[%s8289_s27 + $0xc8] sm:$0xff] %vm360_vm0, %v4584_v29 }
 0x445   : > { %v3621_v6 = vsel %vm3589_vm4, %v3588_v12, %v3491_v25  ;;  %v4555_v10 = vpop.f32.mrf.mxu1 }
 0x446   : > { %3653 = vst [vmem:[%s7452_s21 + $0xf8] sm:$0xff] %v3621_v6 }
 0x447   : > { %v4615_v52 = vpop.f32.mrf.mxu3  ;;  %v3487_v38 = vpop.permute.xlu0 %3486 }
 0x448   : > { %4800 = vst.msk [vmem:[%s8289_s27 + $0xd0] sm:$0xff] %vm360_vm0, %v4615_v52  ;;  %v3619_v5 = vsel %vm3589_vm4, %v3586_v36, %v3487_v38  ;;  %v4648_v40 = vpop.f32.mrf.mxu0 }
 0x449   : > { %3651 = vst [vmem:[%s7452_s21 + $0xe8] sm:$0xff] %v3619_v5 }
 0x44a   : > { %5662 = shalt.err (!%p5659_p10)
}
 0x44b   : > { %s5745_s21 = smov 128   ;;  %s5746_s16 = smov 8   ;;  %v4586_v50 = vpop.f32.mrf.mxu2 }
 0x44c   : > { %5110 = dma.vmem_to_hbm [thread:$0]  (%p5854_p3), %s4844_s20, 4096, %s4846_s28, %s4812_s9, %s5745_s21, %s5745_s21, %s5746_s16  }
 0x44d   : > { %v4677_v28 = vpop.f32.mrf.mxu1  ;;  %s4824_s7 = scalar_lea.hbm %s9569_s5, %s5100_s30  ;;  %s4825_s10 = sshll.u32 %s8289_s27, 4  ;;  %s4826_s10 = int_to_ptr.vmem [resolvable:$true] %s4825_s10 }
 0x44e   : > { %4802 = vst.msk [vmem:[%s8289_s27 + $0xe0] sm:$0xff] %vm360_vm0, %v4677_v28  ;;  %s4827_s11 = sshll.u32 %s4824_s7, 4  ;;  %s4807_s0 = scalar_lea.sflag [#allocation5], %s5884_s8  ;;  %s4828_s11 = int_to_ptr.hbm [resolvable:$true] %s4827_s11 }
 0x44f   : > { %v4617_v26 = vpop.f32.mrf.mxu3  ;;  %s5677_s20 = sshra.s32 %s4828_s11, 4  ;;  %s5683_s15 = scalar_lea.hbm %s9569_s5, 512  ;;  %s5678_s20 = int_to_ptr.hbm [resolvable:$true] %s5677_s20 }
 0x450   : > { %v4770_v8 = vpop.f32.mrf.mxu0  ;;  %s5679_s30 = scalar_lea.hbm %s5678_s20, 256  ;;  %p5684_p5 = scmp.lt.s32.totalorder %s5678_s20, %s9569_s5 }
 0x451   : > { %4805 = vst.msk [vmem:[%s8289_s27 + $0xf8] sm:$0xff] %vm360_vm0, %v4770_v8  ;;  %p5680_p12 = scmp.ne.s32.totalorder %s5678_s20, %s5679_s30  ;;  %p5685_p7 = scmp.lt.s32.totalorder %s5683_s15, %s5679_s30 }
 0x453   : > { %v4708_v39 = vpop.f32.mrf.mxu2  ;;  %p5681_p13 = pnand %p5680_p12, %p5854_p3  ;;  %p5686_p1 = por %p5685_p7, %p5684_p5 }
 0x454   : > { %4803 = vst.msk [vmem:[%s8289_s27 + $0xe8] sm:$0xff] %vm360_vm0, %v4708_v39 }
 0x455   : > { %v4679_v17 = vpop.f32.mrf.mxu1  ;;  %p5682_p0 = pneg %p5681_p13 }
 0x457   : > { %v4739_v2 = vpop.f32.mrf.mxu3  ;;  %p5687_p4 = pnand %p5686_p1, %p5682_p0 }
 0x458   : > { %4804 = vst.msk [vmem:[%s8289_s27 + $0xf0] sm:$0xff] %vm360_vm0, %v4739_v2  ;;  %v4772_v14 = vpop.f32.mrf.mxu0 }
 0x459   : > { %5690 = shalt.err (!%p5687_p4)
}
 0x45a   : > { %5109 = dma.vmem_to_hbm [thread:$0]  (%p5854_p3), %s4826_s10, 4096, %s4828_s11, %s4807_s0, %s5745_s21, %s5745_s21, %s5746_s16  }
 0x45b   : > { %v4710_v23 = vpop.f32.mrf.mxu2 }
 0x45f   : > { %v4741_v32 = vpop.f32.mrf.mxu3 }
 0x460 PF: > { %s4860_s8 = sand.u32 1, %s5725_s23   ;;  %p9918_p8 = scmp.ge.s32.totalorder %s5737_s26, 2 }
 0x461   : > { %s4861_s27 = scalar_lea.sflag [#allocation5], %s4860_s8 }
 0x462   : > { %p5122_p11 = pnand %p9918_p8, %p5820_p6 }
 0x464   : > { %p5123_p9 = pneg %p5122_p11 }
 0x466   : > { %5716 = dma.done.wait (%p5123_p9), %s4861_s27, 4096  }
 0x467   : > { %5718 = vsyncadd (%p5123_p9), %s4861_s27, 4294963200  ;;  %s4871_s13 = scalar_lea.sflag [#allocation10], %s4860_s8 }
 0x468   : > { %5720 = dma.done.wait (%p5123_p9), %s4871_s13, 4096  }
 0x469   : > { %5722 = vsyncadd (%p5123_p9), %s4871_s13, 4294963200  ;;  %p25_p3 = scmp.ge.s32.totalorder %s5838_s12, 4   ;;  %s9919_s23 = smov %s5729_s24 }
 0x46a   : > { %s9920_s24 = smov %s5733_s25  ;;  %s9921_s25 = smov %s5850_s17 }
 0x46b   : > { %s9922_s26 = smov %s5838_s12  ;;  %27 = sbr.rel (!%p25_p3) target bundleno = 10 (0xa), region = 106 }
 0x470   :  { %4877 = vsyncpa [#allocation4], 1 }
 0x471   :  { %4879 = vsyncpa [#allocation4 + $0x1], 1 }
 0x472   :  { %4880 = vsyncpa [#allocation7], 1 }
 0x473   :  { %4881 = vsyncpa [#allocation5], 1 }
 0x474   :  { %4883 = vsyncpa [#allocation5 + $0x1], 1 }
 0x475   :  { %4884 = vsyncpa [#allocation10], 1 }
 0x476   :  { %4886 = vsyncpa [#allocation10 + $0x1], 1 }

</bundles_post_ra>
